<compile_context>
chip_gen: v6e
topology: v6e:2x2x1
jax: 0.10.0
libtpu: 0.0.40
codegen_flags: <defaults>
</compile_context>

<pallas_src>
import jax
import jax.numpy as jnp
from jax import lax
from jax.experimental import pallas as pl
from jax.experimental.pallas import tpu as pltpu


# ----------------------------- Pallas kernel -----------------------------

def cnn_fused_kernel(x_ref,
                     w1_ref, s1_ref,
                     w2_ref, s2_ref,
                     w3_ref, s3_ref,
                     w4_ref, b4_ref,
                     fcw_ref, fcb_ref,
                     out_ref):
    """Whole CNN forward for one batch element (both ears in one slab).

    x_ref  : (2, 16, L)   f32   input, ears stacked
    w{1-3} : (C_out,3C_in) bf16 tap-stacked conv weights with BN scale folded in
    s{1-3} : (C_out, 1)   f32   fused shift = scale*(bias-mean) + beta
    w4     : (256, 768)   bf16  conv4 tap-stacked weights (no BN)
    b4     : (256, 1)     f32   conv4 bias (added after pooling)
    fcw    : (256, 2)     f32   fc1 weight as [channel, ear(left,right)]
    fcb    : (1, 1)       f32   fc1 bias
    out    : (1, 128)     f32   sigmoid(logit) broadcast over lanes (lane-dense store)
    """
    E, Cin, L = x_ref.shape
    Lt = E * L

    x = x_ref[...].astype(jnp.float32)
    # Both ears concatenated along the lane axis -> (16, 2L).
    xcat = jnp.concatenate([x[0], x[1]], axis=1)

    # Boundary masks, hoisted once and reused by all four layers.  They implement
    # the conv zero-padding AND prevent cross-ear leakage at the slab boundary.
    pos = lax.broadcasted_iota(jnp.int32, (1, Lt), 1)
    mask_m1 = (pos != 0) & (pos != L)            # position whose t-1 neighbour is invalid
    mask_p1 = (pos != L - 1) & (pos != Lt - 1)   # position whose t+1 neighbour is invalid

    def tap_stack(h):
        # [x_{t-1}; x_t; x_{t+1}] stacked on sublanes -> (3C, 2L).
        # pltpu.roll requires non-negative shifts: the "+1" shift is a rotation by Lt-1.
        h_m1 = jnp.where(mask_m1, pltpu.roll(h, shift=1, axis=1), 0.0)
        h_p1 = jnp.where(mask_p1, pltpu.roll(h, shift=Lt - 1, axis=1), 0.0)
        return jnp.concatenate([h_m1, h, h_p1], axis=0)

    def conv_bn_relu(h, w_ref, s_ref):
        # One MXU matmul per layer (taps folded into K), bf16 operands, f32 accumulate;
        # BN + conv bias folded into a single f32 FMA, then ReLU.
        stacked = tap_stack(h).astype(jnp.bfloat16)
        y = jnp.dot(w_ref[...], stacked, preferred_element_type=jnp.float32)
        return jnp.maximum(y + s_ref[...], 0.0)

    h1 = conv_bn_relu(xcat, w1_ref, s1_ref)      # (64,  2L)
    h2 = conv_bn_relu(h1, w2_ref, s2_ref)        # (128, 2L)
    h3 = conv_bn_relu(h2, w3_ref, s3_ref)        # (256, 2L)

    # conv4 (no BN/ReLU) commutes with AdaptiveAvgPool1d(1):
    #   mean_t conv4(h3) = W4cat @ mean_t(tap_stack(h3)) + b4
    # The boundary masks make the per-ear means exact (edge corrections built in).
    h3cat = tap_stack(h3)                                              # (768, 2L) f32
    inv_l = 1.0 / L
    v_left = jnp.sum(h3cat[:, :L], axis=1, keepdims=True) * inv_l      # (768, 1)
    v_right = jnp.sum(h3cat[:, L:], axis=1, keepdims=True) * inv_l     # (768, 1)
    vmean = jnp.concatenate([v_left, v_right], axis=1).astype(jnp.bfloat16)  # (768, 2)
    pooled = jnp.dot(w4_ref[...], vmean,
                     preferred_element_type=jnp.float32) + b4_ref[...]  # (256, 2)

    # fc1(512 -> 1) + Sigmoid fused here (pooled features never round-trip HBM).
    prod = pooled * fcw_ref[...]                                        # (256, 2)
    logit = jnp.sum(jnp.sum(prod, axis=0, keepdims=True),
                    axis=1, keepdims=True) + fcb_ref[...]               # (1, 1)
    prob = jax.nn.sigmoid(logit)
    out_ref[...] = jnp.broadcast_to(prob, out_ref.shape).astype(out_ref.dtype)


# ----------------------------- Wrapper -----------------------------

def cnn_forward(x, flat_params):
    B, E, Cin, L = x.shape
    assert E == 2 and Cin == 16

    out = pl.pallas_call(
        cnn_fused_kernel,
        out_shape=jax.ShapeDtypeStruct((B, 1, 128), jnp.float32),
        grid_spec=pltpu.PrefetchScalarGridSpec(
            num_scalar_prefetch=0,
            grid=(B,),
            in_specs=[pl.BlockSpec((None, E, Cin, L), lambda b: (b, 0, 0, 0))]
                     + [pl.BlockSpec(p.shape, lambda b, n=p.ndim: (0,) * n)
                        for p in flat_params],
            out_specs=pl.BlockSpec((None, 1, 128), lambda b: (b, 0, 0)),
        ),
        compiler_params=pltpu.CompilerParams(
            dimension_semantics=("parallel",)),
    )(x, *flat_params)

    return out[:, 0, :1]                      # (B, 1)


# ----------------------------- Parameters -----------------------------

def init_params(key):
    """PyTorch-layout parameters (Conv1d: (C_out, C_in, K); BN eval-mode stats)."""
    ks = jax.random.split(key, 16)

    def conv(kw, kb, cout, cin, k=3):
        w = jax.random.normal(kw, (cout, cin, k), jnp.float32) / jnp.sqrt(float(cin * k))
        b = 0.01 * jax.random.normal(kb, (cout,), jnp.float32)
        return w, b

    def bn(kg, kb, c):
        return dict(gamma=1.0 + 0.1 * jax.random.normal(kg, (c,), jnp.float32),
                    beta=0.1 * jax.random.normal(kb, (c,), jnp.float32),
                    mean=jnp.zeros((c,), jnp.float32),     # eval-mode running stats
                    var=jnp.ones((c,), jnp.float32))

    return dict(
        conv1=conv(ks[0], ks[1], 64, 16),   bn1=bn(ks[2], ks[3], 64),
        conv2=conv(ks[4], ks[5], 128, 64),  bn2=bn(ks[6], ks[7], 128),
        conv3=conv(ks[8], ks[9], 256, 128), bn3=bn(ks[10], ks[11], 256),
        conv4=conv(ks[12], ks[13], 256, 256),
        fc_w=jax.random.normal(ks[14], (1, 512), jnp.float32) / jnp.sqrt(512.0),
        fc_b=0.01 * jax.random.normal(ks[15], (1,), jnp.float32),
    )


def prepare_params(params, eps=1e-5):
    """Fold BN + bias into weights, stack conv taps, cast MXU operands to bf16."""
    def tap_cat(w):   # (C_out, C_in, 3) -> (C_out, 3*C_in) with [tap0 | tap1 | tap2]
        return jnp.concatenate([w[:, :, 0], w[:, :, 1], w[:, :, 2]], axis=1)

    def fuse(convp, bnp):
        w, b = convp
        scale = bnp["gamma"] / jnp.sqrt(bnp["var"] + eps)
        w_fused = w * scale[:, None, None]
        shift = scale * (b - bnp["mean"]) + bnp["beta"]
        return tap_cat(w_fused).astype(jnp.bfloat16), shift[:, None].astype(jnp.float32)

    w1, s1 = fuse(params["conv1"], params["bn1"])
    w2, s2 = fuse(params["conv2"], params["bn2"])
    w3, s3 = fuse(params["conv3"], params["bn3"])

    w4, b4 = params["conv4"]
    w4cat = tap_cat(w4).astype(jnp.bfloat16)
    b4col = b4[:, None].astype(jnp.float32)

    fcw = params["fc_w"][0]                                        # (512,)
    fcw2 = jnp.stack([fcw[:256], fcw[256:]], axis=1)               # (256, 2) [left|right]
    fcb = params["fc_b"].reshape(1, 1).astype(jnp.float32)

    return [w1, s1, w2, s2, w3, s3, w4cat, b4col,
            fcw2.astype(jnp.float32), fcb]


# ----------------------------- Pure-JAX reference -----------------------------

def cnn_reference(x, params, eps=1e-5):
    hi = jax.lax.Precision.HIGHEST

    def conv1d(h, w, b):
        y = lax.conv_general_dilated(h, w, window_strides=(1,), padding=((1, 1),),
                                     dimension_numbers=("NCH", "OIH", "NCH"),
                                     precision=hi)
        return y + b[None, :, None]

    def bn(h, p):
        scale = p["gamma"] / jnp.sqrt(p["var"] + eps)
        return h * scale[None, :, None] + (p["beta"] - p["mean"] * scale)[None, :, None]

    def branch(h):
        h = jax.nn.relu(bn(conv1d(h, *params["conv1"]), params["bn1"]))
        h = jax.nn.relu(bn(conv1d(h, *params["conv2"]), params["bn2"]))
        h = jax.nn.relu(bn(conv1d(h, *params["conv3"]), params["bn3"]))
        h = conv1d(h, *params["conv4"])
        return jnp.mean(h, axis=-1)                                # (B, 256)

    combined = jnp.concatenate([branch(x[:, 0]), branch(x[:, 1])], axis=1)   # (B, 512)
    logit = jnp.dot(combined, params["fc_w"].T, precision=hi) + params["fc_b"]
    return jax.nn.sigmoid(logit)


# ----------------------------- Demo -----------------------------

if __name__ == "__main__":
    key = jax.random.PRNGKey(0)
    kx, kp = jax.random.split(key)

    B, L = 2, 128
    x = jax.random.normal(kx, (B, 2, 16, L), jnp.float32)
    params = init_params(kp)
    flat = prepare_params(params)

    out = jax.jit(cnn_forward)(x, flat)
    jax.block_until_ready(out)

    assert out.shape == (B, 1)
    assert bool(jnp.all((out >= 0.0) & (out <= 1.0)))

    ref = cnn_reference(x, params)
    assert bool(jnp.allclose(out, ref, atol=3e-2)), (out, ref)   # bf16 MXU operands

    print("KERNEL_OK")
</pallas_src>

<mosaic_0001>
module attributes {stable_mosaic.version = 11 : i64} {
  func.func @cnn_fused_kernel(%arg0: i32, %arg1: memref<1x2x16x128xf32, #tpu.memory_space<vmem>>, %arg2: memref<64x48xbf16, #tpu.memory_space<vmem>>, %arg3: memref<64x1xf32, #tpu.memory_space<vmem>>, %arg4: memref<128x192xbf16, #tpu.memory_space<vmem>>, %arg5: memref<128x1xf32, #tpu.memory_space<vmem>>, %arg6: memref<256x384xbf16, #tpu.memory_space<vmem>>, %arg7: memref<256x1xf32, #tpu.memory_space<vmem>>, %arg8: memref<256x768xbf16, #tpu.memory_space<vmem>>, %arg9: memref<256x1xf32, #tpu.memory_space<vmem>>, %arg10: memref<256x2xf32, #tpu.memory_space<vmem>>, %arg11: memref<1x1xf32, #tpu.memory_space<vmem>>, %arg12: memref<1x1x128xf32, #tpu.memory_space<vmem>>) attributes {dimension_semantics = [#tpu.dimension_semantics<parallel>], iteration_bounds = array<i64: 2>, scalar_prefetch = 0 : i64, scratch_operands = 0 : i64, tpu.core_type = #tpu.core_type<tc>, window_params = [{transform_indices = @transform_0, window_bounds = array<i64: 1, 2, 16, 128>}, {pipeline_mode = #tpu.pipeline_mode<synchronous>, transform_indices = @transform_1, window_bounds = array<i64: 64, 48>}, {pipeline_mode = #tpu.pipeline_mode<synchronous>, transform_indices = @transform_2, window_bounds = array<i64: 64, 1>}, {pipeline_mode = #tpu.pipeline_mode<synchronous>, transform_indices = @transform_3, window_bounds = array<i64: 128, 192>}, {pipeline_mode = #tpu.pipeline_mode<synchronous>, transform_indices = @transform_4, window_bounds = array<i64: 128, 1>}, {pipeline_mode = #tpu.pipeline_mode<synchronous>, transform_indices = @transform_5, window_bounds = array<i64: 256, 384>}, {pipeline_mode = #tpu.pipeline_mode<synchronous>, transform_indices = @transform_6, window_bounds = array<i64: 256, 1>}, {pipeline_mode = #tpu.pipeline_mode<synchronous>, transform_indices = @transform_7, window_bounds = array<i64: 256, 768>}, {pipeline_mode = #tpu.pipeline_mode<synchronous>, transform_indices = @transform_8, window_bounds = array<i64: 256, 1>}, {pipeline_mode = #tpu.pipeline_mode<synchronous>, transform_indices = @transform_9, window_bounds = array<i64: 256, 2>}, {pipeline_mode = #tpu.pipeline_mode<synchronous>, transform_indices = @transform_10, window_bounds = array<i64: 1, 1>}, {transform_indices = @transform_11, window_bounds = array<i64: 1, 1, 128>}]} {
    %c0 = arith.constant 0 : index
    %c0_0 = arith.constant 0 : index
    %c0_1 = arith.constant 0 : index
    %c0_2 = arith.constant 0 : index
    %0 = vector.load %arg1[%c0, %c0_0, %c0_1, %c0_2] : memref<1x2x16x128xf32, #tpu.memory_space<vmem>>, vector<1x2x16x128xf32>
    %1 = vector.shape_cast %0 : vector<1x2x16x128xf32> to vector<2x16x128xf32>
    %2 = vector.extract_strided_slice %1 {offsets = [0, 0, 0], sizes = [1, 16, 128], strides = [1, 1, 1]} : vector<2x16x128xf32> to vector<1x16x128xf32>
    %3 = vector.shape_cast %2 : vector<1x16x128xf32> to vector<16x128xf32>
    %4 = vector.extract_strided_slice %1 {offsets = [1, 0, 0], sizes = [1, 16, 128], strides = [1, 1, 1]} : vector<2x16x128xf32> to vector<1x16x128xf32>
    %5 = vector.shape_cast %4 : vector<1x16x128xf32> to vector<16x128xf32>
    %6 = tpu.concatenate %3, %5 in 1 : vector<16x128xf32>, vector<16x128xf32> -> vector<16x256xf32>
    %7 = tpu.iota {dimensions = array<i32: 1>} : vector<1x256xi32>
    %c0_i32 = arith.constant 0 : i32
    %8 = vector.broadcast %c0_i32 : i32 to vector<1x256xi32>
    %9 = arith.cmpi ne, %7, %8 : vector<1x256xi32>
    %c128_i32 = arith.constant 128 : i32
    %10 = vector.broadcast %c128_i32 : i32 to vector<1x256xi32>
    %11 = arith.cmpi ne, %7, %10 : vector<1x256xi32>
    %12 = arith.andi %9, %11 : vector<1x256xi1>
    %c127_i32 = arith.constant 127 : i32
    %13 = vector.broadcast %c127_i32 : i32 to vector<1x256xi32>
    %14 = arith.cmpi ne, %7, %13 : vector<1x256xi32>
    %c255_i32 = arith.constant 255 : i32
    %15 = vector.broadcast %c255_i32 : i32 to vector<1x256xi32>
    %16 = arith.cmpi ne, %7, %15 : vector<1x256xi32>
    %17 = arith.andi %14, %16 : vector<1x256xi1>
    %c1_i32 = arith.constant 1 : i32
    %18 = tpu.dynamic_rotate %6 by %c1_i32 dim 1 : vector<16x256xf32>, i32 -> vector<16x256xf32>
    %cst = arith.constant 0.000000e+00 : f32
    %19 = vector.shape_cast %12 : vector<1x256xi1> to vector<1x256xi1>
    %20 = vector.broadcast %19 : vector<1x256xi1> to vector<16x256xi1>
    %21 = vector.broadcast %cst : f32 to vector<16x256xf32>
    %22 = arith.select %20, %18, %21 : vector<16x256xi1>, vector<16x256xf32>
    %c255_i32_3 = arith.constant 255 : i32
    %23 = tpu.dynamic_rotate %6 by %c255_i32_3 dim 1 : vector<16x256xf32>, i32 -> vector<16x256xf32>
    %cst_4 = arith.constant 0.000000e+00 : f32
    %24 = vector.shape_cast %17 : vector<1x256xi1> to vector<1x256xi1>
    %25 = vector.broadcast %24 : vector<1x256xi1> to vector<16x256xi1>
    %26 = vector.broadcast %cst_4 : f32 to vector<16x256xf32>
    %27 = arith.select %25, %23, %26 : vector<16x256xi1>, vector<16x256xf32>
    %28 = tpu.concatenate %22, %6, %27 in 0 : vector<16x256xf32>, vector<16x256xf32>, vector<16x256xf32> -> vector<48x256xf32>
    %29 = arith.truncf %28 : vector<48x256xf32> to vector<48x256xbf16>
    %c0_5 = arith.constant 0 : index
    %c0_6 = arith.constant 0 : index
    %30 = vector.load %arg2[%c0_5, %c0_6] : memref<64x48xbf16, #tpu.memory_space<vmem>>, vector<64x48xbf16>
    %cst_7 = arith.constant dense<0.000000e+00> : vector<64x256xf32>
    %31 = tpu.matmul %30, %29, %cst_7 {dimension_numbers = #tpu.dot_dimension_numbers<[1], [0], [0], [1], [0, 0, 1, 1], [], []>} : vector<64x48xbf16>, vector<48x256xbf16>, vector<64x256xf32> -> vector<64x256xf32>
    %c0_8 = arith.constant 0 : index
    %c0_9 = arith.constant 0 : index
    %32 = vector.load %arg3[%c0_8, %c0_9] : memref<64x1xf32, #tpu.memory_space<vmem>>, vector<64x1xf32>
    %33 = vector.broadcast %32 : vector<64x1xf32> to vector<64x256xf32>
    %34 = arith.addf %31, %33 : vector<64x256xf32>
    %cst_10 = arith.constant 0.000000e+00 : f32
    %35 = vector.broadcast %cst_10 : f32 to vector<64x256xf32>
    %36 = arith.maximumf %34, %35 : vector<64x256xf32>
    %c1_i32_11 = arith.constant 1 : i32
    %37 = tpu.dynamic_rotate %36 by %c1_i32_11 dim 1 : vector<64x256xf32>, i32 -> vector<64x256xf32>
    %cst_12 = arith.constant 0.000000e+00 : f32
    %38 = vector.shape_cast %12 : vector<1x256xi1> to vector<1x256xi1>
    %39 = vector.broadcast %38 : vector<1x256xi1> to vector<64x256xi1>
    %40 = vector.broadcast %cst_12 : f32 to vector<64x256xf32>
    %41 = arith.select %39, %37, %40 : vector<64x256xi1>, vector<64x256xf32>
    %c255_i32_13 = arith.constant 255 : i32
    %42 = tpu.dynamic_rotate %36 by %c255_i32_13 dim 1 : vector<64x256xf32>, i32 -> vector<64x256xf32>
    %cst_14 = arith.constant 0.000000e+00 : f32
    %43 = vector.shape_cast %17 : vector<1x256xi1> to vector<1x256xi1>
    %44 = vector.broadcast %43 : vector<1x256xi1> to vector<64x256xi1>
    %45 = vector.broadcast %cst_14 : f32 to vector<64x256xf32>
    %46 = arith.select %44, %42, %45 : vector<64x256xi1>, vector<64x256xf32>
    %47 = tpu.concatenate %41, %36, %46 in 0 : vector<64x256xf32>, vector<64x256xf32>, vector<64x256xf32> -> vector<192x256xf32>
    %48 = arith.truncf %47 : vector<192x256xf32> to vector<192x256xbf16>
    %c0_15 = arith.constant 0 : index
    %c0_16 = arith.constant 0 : index
    %49 = vector.load %arg4[%c0_15, %c0_16] : memref<128x192xbf16, #tpu.memory_space<vmem>>, vector<128x192xbf16>
    %cst_17 = arith.constant dense<0.000000e+00> : vector<128x256xf32>
    %50 = tpu.matmul %49, %48, %cst_17 {dimension_numbers = #tpu.dot_dimension_numbers<[1], [0], [0], [1], [0, 0, 1, 1], [], []>} : vector<128x192xbf16>, vector<192x256xbf16>, vector<128x256xf32> -> vector<128x256xf32>
    %c0_18 = arith.constant 0 : index
    %c0_19 = arith.constant 0 : index
    %51 = vector.load %arg5[%c0_18, %c0_19] : memref<128x1xf32, #tpu.memory_space<vmem>>, vector<128x1xf32>
    %52 = vector.broadcast %51 : vector<128x1xf32> to vector<128x256xf32>
    %53 = arith.addf %50, %52 : vector<128x256xf32>
    %cst_20 = arith.constant 0.000000e+00 : f32
    %54 = vector.broadcast %cst_20 : f32 to vector<128x256xf32>
    %55 = arith.maximumf %53, %54 : vector<128x256xf32>
    %c1_i32_21 = arith.constant 1 : i32
    %56 = tpu.dynamic_rotate %55 by %c1_i32_21 dim 1 : vector<128x256xf32>, i32 -> vector<128x256xf32>
    %cst_22 = arith.constant 0.000000e+00 : f32
    %57 = vector.shape_cast %12 : vector<1x256xi1> to vector<1x256xi1>
    %58 = vector.broadcast %57 : vector<1x256xi1> to vector<128x256xi1>
    %59 = vector.broadcast %cst_22 : f32 to vector<128x256xf32>
    %60 = arith.select %58, %56, %59 : vector<128x256xi1>, vector<128x256xf32>
    %c255_i32_23 = arith.constant 255 : i32
    %61 = tpu.dynamic_rotate %55 by %c255_i32_23 dim 1 : vector<128x256xf32>, i32 -> vector<128x256xf32>
    %cst_24 = arith.constant 0.000000e+00 : f32
    %62 = vector.shape_cast %17 : vector<1x256xi1> to vector<1x256xi1>
    %63 = vector.broadcast %62 : vector<1x256xi1> to vector<128x256xi1>
    %64 = vector.broadcast %cst_24 : f32 to vector<128x256xf32>
    %65 = arith.select %63, %61, %64 : vector<128x256xi1>, vector<128x256xf32>
    %66 = tpu.concatenate %60, %55, %65 in 0 : vector<128x256xf32>, vector<128x256xf32>, vector<128x256xf32> -> vector<384x256xf32>
    %67 = arith.truncf %66 : vector<384x256xf32> to vector<384x256xbf16>
    %c0_25 = arith.constant 0 : index
    %c0_26 = arith.constant 0 : index
    %68 = vector.load %arg6[%c0_25, %c0_26] : memref<256x384xbf16, #tpu.memory_space<vmem>>, vector<256x384xbf16>
    %cst_27 = arith.constant dense<0.000000e+00> : vector<256x256xf32>
    %69 = tpu.matmul %68, %67, %cst_27 {dimension_numbers = #tpu.dot_dimension_numbers<[1], [0], [0], [1], [0, 0, 1, 1], [], []>} : vector<256x384xbf16>, vector<384x256xbf16>, vector<256x256xf32> -> vector<256x256xf32>
    %c0_28 = arith.constant 0 : index
    %c0_29 = arith.constant 0 : index
    %70 = vector.load %arg7[%c0_28, %c0_29] : memref<256x1xf32, #tpu.memory_space<vmem>>, vector<256x1xf32>
    %71 = vector.broadcast %70 : vector<256x1xf32> to vector<256x256xf32>
    %72 = arith.addf %69, %71 : vector<256x256xf32>
    %cst_30 = arith.constant 0.000000e+00 : f32
    %73 = vector.broadcast %cst_30 : f32 to vector<256x256xf32>
    %74 = arith.maximumf %72, %73 : vector<256x256xf32>
    %c1_i32_31 = arith.constant 1 : i32
    %75 = tpu.dynamic_rotate %74 by %c1_i32_31 dim 1 : vector<256x256xf32>, i32 -> vector<256x256xf32>
    %cst_32 = arith.constant 0.000000e+00 : f32
    %76 = vector.shape_cast %12 : vector<1x256xi1> to vector<1x256xi1>
    %77 = vector.broadcast %76 : vector<1x256xi1> to vector<256x256xi1>
    %78 = vector.broadcast %cst_32 : f32 to vector<256x256xf32>
    %79 = arith.select %77, %75, %78 : vector<256x256xi1>, vector<256x256xf32>
    %c255_i32_33 = arith.constant 255 : i32
    %80 = tpu.dynamic_rotate %74 by %c255_i32_33 dim 1 : vector<256x256xf32>, i32 -> vector<256x256xf32>
    %cst_34 = arith.constant 0.000000e+00 : f32
    %81 = vector.shape_cast %17 : vector<1x256xi1> to vector<1x256xi1>
    %82 = vector.broadcast %81 : vector<1x256xi1> to vector<256x256xi1>
    %83 = vector.broadcast %cst_34 : f32 to vector<256x256xf32>
    %84 = arith.select %82, %80, %83 : vector<256x256xi1>, vector<256x256xf32>
    %85 = tpu.concatenate %79, %74, %84 in 0 : vector<256x256xf32>, vector<256x256xf32>, vector<256x256xf32> -> vector<768x256xf32>
    %86 = vector.extract_strided_slice %85 {offsets = [0, 0], sizes = [768, 128], strides = [1, 1]} : vector<768x256xf32> to vector<768x128xf32>
    %cst_35 = arith.constant dense<0.000000e+00> : vector<768xf32>
    %87 = vector.multi_reduction <add>, %86, %cst_35 [1] : vector<768x128xf32> to vector<768xf32>
    %88 = vector.shape_cast %87 : vector<768xf32> to vector<768x1xf32>
    %cst_36 = arith.constant 7.812500e-03 : f32
    %89 = vector.broadcast %cst_36 : f32 to vector<768x1xf32>
    %90 = arith.mulf %88, %89 : vector<768x1xf32>
    %91 = vector.extract_strided_slice %85 {offsets = [0, 128], sizes = [768, 128], strides = [1, 1]} : vector<768x256xf32> to vector<768x128xf32>
    %cst_37 = arith.constant dense<0.000000e+00> : vector<768xf32>
    %92 = vector.multi_reduction <add>, %91, %cst_37 [1] : vector<768x128xf32> to vector<768xf32>
    %93 = vector.shape_cast %92 : vector<768xf32> to vector<768x1xf32>
    %cst_38 = arith.constant 7.812500e-03 : f32
    %94 = vector.broadcast %cst_38 : f32 to vector<768x1xf32>
    %95 = arith.mulf %93, %94 : vector<768x1xf32>
    %96 = tpu.concatenate %90, %95 in 1 : vector<768x1xf32>, vector<768x1xf32> -> vector<768x2xf32>
    %97 = arith.truncf %96 : vector<768x2xf32> to vector<768x2xbf16>
    %c0_39 = arith.constant 0 : index
    %c0_40 = arith.constant 0 : index
    %98 = vector.load %arg8[%c0_39, %c0_40] : memref<256x768xbf16, #tpu.memory_space<vmem>>, vector<256x768xbf16>
    %cst_41 = arith.constant dense<0.000000e+00> : vector<256x2xf32>
    %99 = tpu.matmul %98, %97, %cst_41 {dimension_numbers = #tpu.dot_dimension_numbers<[1], [0], [0], [1], [0, 0, 1, 1], [], []>} : vector<256x768xbf16>, vector<768x2xbf16>, vector<256x2xf32> -> vector<256x2xf32>
    %c0_42 = arith.constant 0 : index
    %c0_43 = arith.constant 0 : index
    %100 = vector.load %arg9[%c0_42, %c0_43] : memref<256x1xf32, #tpu.memory_space<vmem>>, vector<256x1xf32>
    %101 = vector.broadcast %100 : vector<256x1xf32> to vector<256x2xf32>
    %102 = arith.addf %99, %101 : vector<256x2xf32>
    %c0_44 = arith.constant 0 : index
    %c0_45 = arith.constant 0 : index
    %103 = vector.load %arg10[%c0_44, %c0_45] : memref<256x2xf32, #tpu.memory_space<vmem>>, vector<256x2xf32>
    %104 = arith.mulf %102, %103 : vector<256x2xf32>
    %cst_46 = arith.constant dense<0.000000e+00> : vector<2xf32>
    %105 = vector.multi_reduction <add>, %104, %cst_46 [0] : vector<256x2xf32> to vector<2xf32>
    %106 = vector.shape_cast %105 : vector<2xf32> to vector<1x2xf32>
    %cst_47 = arith.constant dense<0.000000e+00> : vector<1xf32>
    %107 = vector.multi_reduction <add>, %106, %cst_47 [1] : vector<1x2xf32> to vector<1xf32>
    %108 = vector.shape_cast %107 : vector<1xf32> to vector<1x1xf32>
    %c0_48 = arith.constant 0 : index
    %c0_49 = arith.constant 0 : index
    %109 = vector.load %arg11[%c0_48, %c0_49] : memref<1x1xf32, #tpu.memory_space<vmem>>, vector<1x1xf32>
    %110 = arith.addf %108, %109 : vector<1x1xf32>
    %111 = arith.negf %110 : vector<1x1xf32>
    %112 = math.exp %111 : vector<1x1xf32>
    %cst_50 = arith.constant 1.000000e+00 : f32
    %113 = vector.broadcast %cst_50 : f32 to vector<1x1xf32>
    %114 = arith.addf %113, %112 : vector<1x1xf32>
    %115 = arith.divf %113, %114 : vector<1x1xf32>
    %116 = vector.shape_cast %115 : vector<1x1xf32> to vector<1x1xf32>
    %117 = vector.broadcast %116 : vector<1x1xf32> to vector<1x128xf32>
    %c0_51 = arith.constant 0 : index
    %c0_52 = arith.constant 0 : index
    %c0_53 = arith.constant 0 : index
    %118 = vector.load %arg12[%c0_51, %c0_52, %c0_53] : memref<1x1x128xf32, #tpu.memory_space<vmem>>, vector<1x1x128xf32>
    %119 = vector.shape_cast %118 : vector<1x1x128xf32> to vector<1x128xf32>
    %120 = vector.shape_cast %117 : vector<1x128xf32> to vector<1x1x128xf32>
    tpu.vector_store %arg12[%c0_51, %c0_52, %c0_53], %120 {strides = array<i32>} : memref<1x1x128xf32, #tpu.memory_space<vmem>>, vector<1x1x128xf32>,
    return
  }
  func.func @transform_0(%arg0: i32) -> (i32, i32, i32, i32) {
    %c0_i32 = arith.constant 0 : i32
    %c0_i32_0 = arith.constant 0 : i32
    %c0_i32_1 = arith.constant 0 : i32
    %c0_i32_2 = arith.constant 0 : i32
    return %arg0, %c0_i32, %c0_i32_0, %c0_i32_1 : i32, i32, i32, i32
  }
  func.func @transform_1(%arg0: i32) -> (i32, i32) {
    %c0_i32 = arith.constant 0 : i32
    %c0_i32_0 = arith.constant 0 : i32
    %c0_i32_1 = arith.constant 0 : i32
    return %c0_i32, %c0_i32_0 : i32, i32
  }
  func.func @transform_2(%arg0: i32) -> (i32, i32) {
    %c0_i32 = arith.constant 0 : i32
    %c0_i32_0 = arith.constant 0 : i32
    %c0_i32_1 = arith.constant 0 : i32
    return %c0_i32, %c0_i32_0 : i32, i32
  }
  func.func @transform_3(%arg0: i32) -> (i32, i32) {
    %c0_i32 = arith.constant 0 : i32
    %c0_i32_0 = arith.constant 0 : i32
    %c0_i32_1 = arith.constant 0 : i32
    return %c0_i32, %c0_i32_0 : i32, i32
  }
  func.func @transform_4(%arg0: i32) -> (i32, i32) {
    %c0_i32 = arith.constant 0 : i32
    %c0_i32_0 = arith.constant 0 : i32
    %c0_i32_1 = arith.constant 0 : i32
    return %c0_i32, %c0_i32_0 : i32, i32
  }
  func.func @transform_5(%arg0: i32) -> (i32, i32) {
    %c0_i32 = arith.constant 0 : i32
    %c0_i32_0 = arith.constant 0 : i32
    %c0_i32_1 = arith.constant 0 : i32
    return %c0_i32, %c0_i32_0 : i32, i32
  }
  func.func @transform_6(%arg0: i32) -> (i32, i32) {
    %c0_i32 = arith.constant 0 : i32
    %c0_i32_0 = arith.constant 0 : i32
    %c0_i32_1 = arith.constant 0 : i32
    return %c0_i32, %c0_i32_0 : i32, i32
  }
  func.func @transform_7(%arg0: i32) -> (i32, i32) {
    %c0_i32 = arith.constant 0 : i32
    %c0_i32_0 = arith.constant 0 : i32
    %c0_i32_1 = arith.constant 0 : i32
    return %c0_i32, %c0_i32_0 : i32, i32
  }
  func.func @transform_8(%arg0: i32) -> (i32, i32) {
    %c0_i32 = arith.constant 0 : i32
    %c0_i32_0 = arith.constant 0 : i32
    %c0_i32_1 = arith.constant 0 : i32
    return %c0_i32, %c0_i32_0 : i32, i32
  }
  func.func @transform_9(%arg0: i32) -> (i32, i32) {
    %c0_i32 = arith.constant 0 : i32
    %c0_i32_0 = arith.constant 0 : i32
    %c0_i32_1 = arith.constant 0 : i32
    return %c0_i32, %c0_i32_0 : i32, i32
  }
  func.func @transform_10(%arg0: i32) -> (i32, i32) {
    %c0_i32 = arith.constant 0 : i32
    %c0_i32_0 = arith.constant 0 : i32
    %c0_i32_1 = arith.constant 0 : i32
    return %c0_i32, %c0_i32_0 : i32, i32
  }
  func.func @transform_11(%arg0: i32) -> (i32, i32, i32) {
    %c0_i32 = arith.constant 0 : i32
    %c0_i32_0 = arith.constant 0 : i32
    %c0_i32_1 = arith.constant 0 : i32
    return %arg0, %c0_i32, %c0_i32_0 : i32, i32, i32
  }
}

</mosaic_0001>

<bundles_post_ra>
// kernel: cnn_forward.1
= control target key start
LH: loop header
LB: loop body
LE: loop exit
PB: predicated region body
PF: predicated region fallthrough
CT: control target
= control target key end

     0   :  { %s6387_s19 = smov 0   ;;  %s10201_s0 = inlined_call_operand.vmem [shape: f32[2,2,16,128], index: 0, kind: input, shape index: {}]   ;;  %s10202_s1 = inlined_call_operand.vmem [shape: bf16[64,48], index: 1, kind: input, shape index: {}]   ;;  %s10203_s2 = inlined_call_operand.vmem [shape: f32[64,1], index: 2, kind: input, shape index: {}]   ;;  %s10204_s3 = inlined_call_operand.vmem [shape: bf16[128,192], index: 3, kind: input, shape index: {}]   ;;  %s10205_s4 = inlined_call_operand.vmem [shape: f32[128,1], index: 4, kind: input, shape index: {}]   ;;  %s10206_s5 = inlined_call_operand.vmem [shape: bf16[256,384], index: 5, kind: input, shape index: {}]   ;;  %s10207_s6 = inlined_call_operand.vmem [shape: f32[256,1], index: 6, kind: input, shape index: {}]   ;;  %s10208_s7 = inlined_call_operand.vmem [shape: bf16[256,768], index: 7, kind: input, shape index: {}]   ;;  %s10209_s8 = inlined_call_operand.vmem [shape: f32[256,1], index: 8, kind: input, shape index: {}]   ;;  %s10210_s9 = inlined_call_operand.vmem [shape: f32[256,2], index: 9, kind: input, shape index: {}]   ;;  %s10211_s10 = inlined_call_operand.<no memory space> [shape: f32[1,1], index: 10, kind: input, shape index: {}]   ;;  %s10212_s11 = inlined_call_operand.vmem [shape: f32[2,1,128], index: 11, kind: output, shape index: {}]  }
   0x1   :  { %v16_v0 = vstv %s10211_s10 }
   0x2   :  { %17 = vst [vmem:[#allocation2] sm:$0x1] %v16_v0 }
   0x3 LB: > { %s5089_s20 = sadd.s32 4294967295, %s6319_s19   ;;  %p5093_p0 = scmp.ge.s32.totalorder %s6319_s19, 1  ;;  %s6319_s19 = sphi %s6387_s19, %s23_s19  }
   0x4   : > { %p339_p1 = scmp.lt.s32.totalorder %s6319_s19, 3 }
   0x6   : > { %p340_p2 = pnand %p5093_p0, %p339_p1 }
   0x8   : > { %343 = sbr.rel (%p340_p2) target bundleno = 3213 (0xc8d), region = 64 }
   0xd   : > { %p377_p3 = scmp.lt.s32.totalorder %s5089_s20, 1  ;;  %v10214_v1 = vmov 0   ;;  %s6322_s24 = smov 127   ;;  %v468_v10 = vld [vmem:[%s10203_s2 + $0x38] sm:$0xff]  ;;  %v467_v11 = vld [vmem:[%s10203_s2 + $0x30] sm:$0xff]  ;;  %v465_v12 = vld [vmem:[%s10203_s2 + $0x20] sm:$0xff]  ;;  %v10213_v62 = vlaneseq }
   0xe   : > { %5832 = vset.pattern.permute.xlu1 %v10214_v1  ;;  %5821 = vset.pattern.permute.xlu0 %v10214_v1  ;;  %s6323_s25 = smov 1   ;;  %v466_v13 = vld [vmem:[%s10203_s2 + $0x28] sm:$0xff]  ;;  %v463_v14 = vld [vmem:[%s10203_s2 + $0x10] sm:$0xff]  ;;  %v464_v15 = vld [vmem:[%s10203_s2 + $0x18] sm:$0xff]  ;;  %vm529_vm10 = vcmask 392192   ;;  %vm967_vm11 = vcmask 523264  }
   0xf   : > { %s10660_s20 = smov (!%p377_p3, %s5089_s20), 1  ;;  %574 = vmatprep.mubr.bf16.mxu0 %v10214_v1  ;;  %v461_v16 = vld [vmem:[%s10203_s2] sm:$0xff]  ;;  %v462_v17 = vld [vmem:[%s10203_s2 + $0x8] sm:$0xff]  ;;  %v813_v18 = vld [vmem:[%s10205_s4 + $0x70] sm:$0xff]  ;;  %vm3491_vm12 = vcmask 7168   ;;  %vm4951_vm13 = vcmask 15360  }
  0x10   : > { %s5431_s10 = sshll.u32 %s10660_s20, 5  ;;  %v814_v19 = vld [vmem:[%s10205_s4 + $0x78] sm:$0xff]  ;;  %v811_v20 = vld [vmem:[%s10205_s4 + $0x60] sm:$0xff]  ;;  %v812_v21 = vld [vmem:[%s10205_s4 + $0x68] sm:$0xff]  ;;  %s384_s13 = scalar_lea.vmem %s10212_s11, %s10660_s20 }
  0x11   : > { %s381_s23 = scalar_lea.vmem %s10201_s0, %s5431_s10  ;;  %v809_v22 = vld [vmem:[%s10205_s4 + $0x50] sm:$0xff]  ;;  %v810_v23 = vld [vmem:[%s10205_s4 + $0x58] sm:$0xff]  ;;  %v807_v24 = vld [vmem:[%s10205_s4 + $0x40] sm:$0xff] }
  0x12   : > { %v6404_v2 = vld [vmem:[%s381_s23] sm:$0xff]  ;;  %v6406_v3 = vld [vmem:[%s381_s23 + $0x8] sm:$0xff]  ;;  %v6408_v4 = vld [vmem:[%s381_s23 + $0x10] sm:$0xff] }
  0x13   : > { %v5811_v5 = vpack.i.bf16 %v6406_v3, %v6404_v2  ;;  %v6412_v6 = vld [vmem:[%s381_s23 + $0x18] sm:$0xff]  ;;  %v449_v8 = vpack.c.bf16 %v6406_v3, %v6404_v2  ;;  %v808_v25 = vld [vmem:[%s10205_s4 + $0x48] sm:$0xff]  ;;  %v805_v26 = vld [vmem:[%s10205_s4 + $0x30] sm:$0xff] }
  0x14   : > { %v450_v7 = vpack.c.bf16 %v6412_v6, %v6408_v4  ;;  %v5816_v9 = vpack.i.bf16 %v6412_v6, %v6408_v4  ;;  %v806_v27 = vld [vmem:[%s10205_s4 + $0x38] sm:$0xff]  ;;  %v803_v28 = vld [vmem:[%s10205_s4 + $0x20] sm:$0xff]  ;;  %v804_v29 = vld [vmem:[%s10205_s4 + $0x28] sm:$0xff] }
  0x15   : > { %5812 = vrot.lane.b32.xlu0 %v5811_v5, %s6322_s24  ;;  %5823 = vrot.lane.b32.xlu1 %v5811_v5, %s6323_s25  ;;  %v801_v30 = vld [vmem:[%s10205_s4 + $0x10] sm:$0xff]  ;;  %v802_v31 = vld [vmem:[%s10205_s4 + $0x18] sm:$0xff]  ;;  %v6587_v5 = vand.u32 127, %v10213_v62 }
  0x16   : > { %v799_v32 = vld [vmem:[%s10205_s4] sm:$0xff]  ;;  %v800_v33 = vld [vmem:[%s10205_s4 + $0x8] sm:$0xff]  ;;  %v1507_v36 = vld [vmem:[%s10207_s6 + $0x10] sm:$0xff] }
  0x17   : > { %v1505_v34 = vld [vmem:[%s10207_s6] sm:$0xff]  ;;  %v1506_v35 = vld [vmem:[%s10207_s6 + $0x8] sm:$0xff]  ;;  %v1508_v37 = vld [vmem:[%s10207_s6 + $0x18] sm:$0xff]  ;;  %vm434_vm1 = vcmp.lt.s32.totalorder %v6587_v5, 127  ;;  %vm399_vm2 = vcmp.ne.s32.totalorder %v6587_v5, 127  ;;  %vm413_vm4 = vcmp.lt.s32.totalorder %v6587_v5, 1 }
  0x18   : > { %v1509_v38 = vld [vmem:[%s10207_s6 + $0x20] sm:$0xff]  ;;  %v1510_v39 = vld [vmem:[%s10207_s6 + $0x28] sm:$0xff]  ;;  %v1511_v40 = vld [vmem:[%s10207_s6 + $0x30] sm:$0xff]  ;;  %vm393_vm7 = vcmp.ne.s32.totalorder %v6587_v5, 0 }
  0x19   : > { %5817 = vrot.lane.b32.xlu0 %v5816_v9, %s6322_s24  ;;  %5828 = vrot.lane.b32.xlu1 %v5816_v9, %s6323_s25  ;;  %v1512_v41 = vld [vmem:[%s10207_s6 + $0x38] sm:$0xff]  ;;  %v1513_v42 = vld [vmem:[%s10207_s6 + $0x40] sm:$0xff]  ;;  %vm6620_vm5 = vmpackc.low %vm399_vm2, %vm399_vm2 }
  0x1a   : > { %v1514_v43 = vld [vmem:[%s10207_s6 + $0x48] sm:$0xff]  ;;  %v1515_v44 = vld [vmem:[%s10207_s6 + $0x50] sm:$0xff]  ;;  %v1516_v45 = vld [vmem:[%s10207_s6 + $0x58] sm:$0xff] }
  0x1b   : > { %v1517_v46 = vld [vmem:[%s10207_s6 + $0x60] sm:$0xff]  ;;  %v1518_v47 = vld [vmem:[%s10207_s6 + $0x68] sm:$0xff]  ;;  %v1519_v48 = vld [vmem:[%s10207_s6 + $0x70] sm:$0xff] }
  0x1c   : > { %v1520_v49 = vld [vmem:[%s10207_s6 + $0x78] sm:$0xff]  ;;  %v1521_v50 = vld [vmem:[%s10207_s6 + $0x80] sm:$0xff]  ;;  %v1522_v51 = vld [vmem:[%s10207_s6 + $0x88] sm:$0xff] }
  0x1d   : > { %506 = vperm.xlu1 %5832, %v468_v10   ;;  %501 = vperm.xlu0 %5821, %v467_v11   ;;  %v1523_v52 = vld [vmem:[%s10207_s6 + $0x90] sm:$0xff]  ;;  %v1524_v53 = vld [vmem:[%s10207_s6 + $0x98] sm:$0xff]  ;;  %v1525_v54 = vld [vmem:[%s10207_s6 + $0xa0] sm:$0xff] }
  0x1e   : > { %v1526_v55 = vld [vmem:[%s10207_s6 + $0xa8] sm:$0xff]  ;;  %v1527_v56 = vld [vmem:[%s10207_s6 + $0xb0] sm:$0xff]  ;;  %v1536_v58 = vld [vmem:[%s10207_s6 + $0xf8] sm:$0xff] }
  0x1f   : > { %v1535_v57 = vld [vmem:[%s10207_s6 + $0xf0] sm:$0xff]  ;;  %v1533_v59 = vld [vmem:[%s10207_s6 + $0xe0] sm:$0xff]  ;;  %v1534_v60 = vld [vmem:[%s10207_s6 + $0xe8] sm:$0xff] }
  0x20   : > { %v1531_v61 = vld [vmem:[%s10207_s6 + $0xd0] sm:$0xff]  ;;  %v1532_v63 = vld [vmem:[%s10207_s6 + $0xd8] sm:$0xff]  ;;  %v1529_v0 = vld [vmem:[%s10207_s6 + $0xc0] sm:$0xff] }
  0x21   : > { %491 = vperm.xlu1 %5832, %v465_v12   ;;  %496 = vperm.xlu0 %5821, %v466_v13   ;;  %v1530_v9 = vld [vmem:[%s10207_s6 + $0xc8] sm:$0xff]  ;;  %v1528_v10 = vld [vmem:[%s10207_s6 + $0xb8] sm:$0xff]  ;;  %v6596_v13 = vadd.s32 128, %v6587_v5  ;;  %vm6656_vm9 = vmpackc.low %vm393_vm7, %vm393_vm7 }
  0x22   : > { %v6074_v2 = vld [vmem:[%s10202_s1 + $0x8] sm:$0xff]   ;;  %v6075_v3 = vld [vmem:[%s10202_s1 + $0x10] sm:$0xff]  }
  0x23   : > { %10342 = vst [vmem:[#allocation3_spill] sm:$0xff] %v6596_v13  ;;  %vm402_vm0 = vcmp.ne.s32.totalorder %v6596_v13, 255  ;;  %vm396_vm6 = vcmp.ne.s32.totalorder %v6596_v13, 128  ;;  %v6212_v5 = vld [vmem:[%s10208_s7 + $0xc] ss:$24 sps:$4 sm:$0xff]  }
  0x24   : > { %vm6608_vm3 = vmpackc.low %vm402_vm0, %vm402_vm0 }
  0x25   : > { %481 = vperm.xlu1 %5832, %v463_v14   ;;  %486 = vperm.xlu0 %5821, %v464_v15   ;;  %vm6640_vm8 = vmpackc.low %vm396_vm6, %vm396_vm6 }
  0x29   : > { %471 = vperm.xlu1 %5832, %v461_v16   ;;  %476 = vperm.xlu0 %5821, %v462_v17  }
  0x2d   : > { %887 = vperm.xlu1 %5832, %v813_v18   ;;  %892 = vperm.xlu0 %5821, %v814_v19  }
  0x31   : > { %877 = vperm.xlu1 %5832, %v811_v20   ;;  %882 = vperm.xlu0 %5821, %v812_v21  }
  0x35   : > { %867 = vperm.xlu1 %5832, %v809_v22   ;;  %872 = vperm.xlu0 %5821, %v810_v23  }
  0x39   : > { %857 = vperm.xlu1 %5832, %v807_v24   ;;  %862 = vperm.xlu0 %5821, %v808_v25  }
  0x3d   : > { %847 = vperm.xlu1 %5832, %v805_v26   ;;  %852 = vperm.xlu0 %5821, %v806_v27   ;;  %v10391_v26 = vmov 0  }
  0x41   : > { %837 = vperm.xlu1 %5832, %v803_v28   ;;  %842 = vperm.xlu0 %5821, %v804_v29  }
  0x45   : > { %827 = vperm.xlu1 %5832, %v801_v30   ;;  %832 = vperm.xlu0 %5821, %v802_v31   ;;  %v6137_v30 = vld [vmem:[%s10206_s5 + $0x90] ss:$12 sps:$4 sm:$0xff]  }
  0x49   : > { %817 = vperm.xlu1 %5832, %v799_v32   ;;  %822 = vperm.xlu0 %5821, %v800_v33  }
  0x4d   : > { %1539 = vperm.xlu1 %5832, %v1505_v34   ;;  %1544 = vperm.xlu0 %5821, %v1506_v35  }
  0x51   : > { %1549 = vperm.xlu1 %5832, %v1507_v36   ;;  %1554 = vperm.xlu0 %5821, %v1508_v37  }
  0x55   : > { %1559 = vperm.xlu1 %5832, %v1509_v38   ;;  %1564 = vperm.xlu0 %5821, %v1510_v39  }
  0x59   : > { %1569 = vperm.xlu1 %5832, %v1511_v40   ;;  %1574 = vperm.xlu0 %5821, %v1512_v41  }
  0x5d   : > { %1579 = vperm.xlu1 %5832, %v1513_v42   ;;  %1584 = vperm.xlu0 %5821, %v1514_v43  }
  0x61   : > { %1589 = vperm.xlu1 %5832, %v1515_v44   ;;  %1594 = vperm.xlu0 %5821, %v1516_v45  }
  0x65   : > { %1599 = vperm.xlu1 %5832, %v1517_v46   ;;  %1604 = vperm.xlu0 %5821, %v1518_v47  }
  0x69   : > { %1609 = vperm.xlu1 %5832, %v1519_v48   ;;  %1614 = vperm.xlu0 %5821, %v1520_v49  }
  0x6d   : > { %1619 = vperm.xlu1 %5832, %v1521_v50   ;;  %1624 = vperm.xlu0 %5821, %v1522_v51  }
  0x71   : > { %1629 = vperm.xlu1 %5832, %v1523_v52   ;;  %1634 = vperm.xlu0 %5821, %v1524_v53  }
  0x75   : > { %1639 = vperm.xlu1 %5832, %v1525_v54   ;;  %1644 = vperm.xlu0 %5821, %v1526_v55  }
  0x79   : > { %1649 = vperm.xlu1 %5832, %v1527_v56   ;;  %1689 = vperm.xlu0 %5821, %v1535_v57  }
  0x7d   : > { %1694 = vperm.xlu1 %5832, %v1536_v58   ;;  %1679 = vperm.xlu0 %5821, %v1533_v59  }
  0x81   : > { %1684 = vperm.xlu1 %5832, %v1534_v60   ;;  %1669 = vperm.xlu0 %5821, %v1531_v61  }
  0x85   : > { %1674 = vperm.xlu1 %5832, %v1532_v63   ;;  %1659 = vperm.xlu0 %5821, %v1529_v0  }
  0x87   : > { %v5813_v11 = vpop.permute.xlu0 %5812  ;;  %v5824_v12 = vpop.permute.xlu1 %5823 }
  0x88   : > { %v5815_v18 = vunpack.i.h.bf16 %v5813_v11  ;;  %v5814_v19 = vunpack.i.l.bf16 %v5813_v11  ;;  %v5826_v20 = vunpack.i.h.bf16 %v5824_v12  ;;  %v5825_v21 = vunpack.i.l.bf16 %v5824_v12 }
  0x89   : > { %1664 = vperm.xlu1 %5832, %v1530_v9   ;;  %1654 = vperm.xlu0 %5821, %v1528_v10  }
  0x8b   : > { %v5818_v14 = vpop.permute.xlu0 %5817  ;;  %v5829_v15 = vpop.permute.xlu1 %5828 }
  0x8c   : > { %v5820_v16 = vunpack.i.h.bf16 %v5818_v14  ;;  %v5819_v17 = vunpack.i.l.bf16 %v5818_v14  ;;  %v5831_v22 = vunpack.i.h.bf16 %v5829_v15  ;;  %v5830_v23 = vunpack.i.l.bf16 %v5829_v15 }
  0x8e   : > { %v437_v24 = vsel %vm434_vm1, %v5819_v17, %v5814_v19  ;;  %v438_v25 = vsel %vm434_vm1, %v5820_v16, %v5815_v18  ;;  %v435_v27 = vsel %vm434_vm1, %v5814_v19, %v5819_v17  ;;  %v436_v28 = vsel %vm434_vm1, %v5815_v18, %v5820_v16 }
  0x8f   : > { %v5101_v29 = vpack.c.bf16 %v438_v25, %v437_v24  ;;  %v5104_v31 = vpack.c.bf16 %v436_v28, %v435_v27  ;;  %v414_v32 = vsel %vm413_vm4, %v5825_v21, %v5830_v23  ;;  %v415_v33 = vsel %vm413_vm4, %v5826_v20, %v5831_v22 }
  0x90   : > { %v416_v35 = vsel %vm413_vm4, %v5830_v23, %v5825_v21  ;;  %v417_v36 = vsel %vm413_vm4, %v5831_v22, %v5826_v20  ;;  %v5107_v37 = vpack.c.bf16 %v415_v33, %v414_v32 }
  0x91   : > { %5102 = vmatprep.subr.msk.bf16.mxu0 %vm6608_vm3, %v5101_v29  ;;  %v5110_v6 = vpack.c.bf16 %v417_v36, %v416_v35 }
  0x92   : > { %5105 = vmatpush1.bf16.msk.msra.mxu0 %vm6620_vm5, %v5104_v31 }
  0x93   : > { %554 = vmatprep.subr.bf16.mxu0 %v450_v7  ;;  %v6073_v7 = vld [vmem:[%s10202_s1] sm:$0xff]  }
  0x96   : > { %555 = vmatpush1.bf16.msra.mxu0 %v449_v8  ;;  %v6076_v8 = vld [vmem:[%s10202_s1 + $0x18] sm:$0xff]  }
  0x97   : > { %5108 = vmatprep.subr.msk.bf16.mxu0 %vm6640_vm8, %v5107_v37 }
  0x98   : > { %v6677_v38 = vpop.permute.xlu1 %506  ;;  %v6679_v39 = vpop.permute.xlu0 %501 }
  0x9a   : > { %5111 = vmatpush1.bf16.msk.msra.mxu0 %vm6656_vm9, %v5110_v6 }
  0x9c   : > { %v492_v40 = vpop.permute.xlu1 %491  ;;  %v497_v41 = vpop.permute.xlu0 %496 }
  0x9d   : > { %5112 = vmatmul.mubr.msk.bf16.vlgmr.msra.gmra.mxu0 %vm529_vm10, %v6073_v7 }
  0x9e   : > { %584 = vmatprep.mubr.bf16.mxu0 %v10214_v1 }
  0xa0   : > { %v482_v42 = vpop.permute.xlu1 %481  ;;  %v487_v43 = vpop.permute.xlu0 %486 }
  0xa4   : > { %v472_v44 = vpop.permute.xlu1 %471  ;;  %v477_v45 = vpop.permute.xlu0 %476 }
  0xa5   : > { %5113 = vmatmul.mubr.msk.bf16.gmra.mxu0 %vm529_vm10, %v6074_v2 }
  0xa6   : > { %594 = vmatprep.mubr.bf16.mxu0 %v10214_v1 }
  0xa8   : > { %v6681_v46 = vpop.permute.xlu1 %887  ;;  %v6683_v47 = vpop.permute.xlu0 %892 }
  0xac   : > { %v6685_v48 = vpop.permute.xlu1 %877  ;;  %v6687_v49 = vpop.permute.xlu0 %882 }
  0xad   : > { %5114 = vmatmul.mubr.msk.bf16.gmra.mxu0 %vm529_vm10, %v6075_v3 }
  0xae   : > { %604 = vmatprep.mubr.bf16.mxu0 %v10214_v1 }
  0xb0   : > { %v6689_v50 = vpop.permute.xlu1 %867  ;;  %v6691_v51 = vpop.permute.xlu0 %872 }
  0xb4   : > { %v6693_v53 = vpop.permute.xlu1 %857  ;;  %v6695_v55 = vpop.permute.xlu0 %862 }
  0xb5   : > { %5115 = vmatmul.mubr.msk.bf16.gmra.mxu0 %vm529_vm10, %v6076_v8 }
  0xb8   : > { %v6703_v61 = vpop.permute.xlu1 %847  ;;  %v6709_v11 = vpop.permute.xlu0 %852 }
  0xbc   : > { %v6724_v20 = vpop.permute.xlu1 %837  ;;  %v6731_v24 = vpop.permute.xlu0 %842 }
  0xc0   : > { %v6745_v36 = vpop.permute.xlu1 %827  ;;  %v6748_v2 = vpop.permute.xlu0 %832 }
 0x15d   : > { %v576_v52 = vpop.f32.mrf.mxu0 }
 0x15e   : > { %v6697_v56 = vadd.f32 %v576_v52, %v472_v44 }
 0x15f   : > { %v578_v54 = vpop.f32.mrf.mxu0 }
 0x160   : > { %v6699_v58 = vadd.f32 %v578_v54, %v472_v44  ;;  %v615_v63 = vmax.f32 %v6697_v56, 0.0  ;;  %v6752_v54 = vpop.permute.xlu1 %817 }
 0x161   : > { %v580_v57 = vpop.f32.mrf.mxu0 }
 0x162   : > { %v6701_v59 = vadd.f32 %v580_v57, %v477_v45  ;;  %v616_v12 = vmax.f32 %v6699_v58, 0.0  ;;  %v6079_v58 = vld [vmem:[%s10204_s3 + $0x4] ss:$8 sps:$4 sm:$0xff]  }
 0x163   : > { %v582_v60 = vpop.f32.mrf.mxu0  ;;  %5180 = vmatprep.mubr.msk.bf16.mxu1 %vm967_vm11, %v6079_v58 }
 0x164   : > { %v617_v0 = vmax.f32 %v6701_v59, 0.0  ;;  %v6707_v9 = vadd.f32 %v582_v60, %v477_v45 }
 0x165   : > { %v586_v10 = vpop.f32.mrf.mxu0 }
 0x166   : > { %v618_v14 = vmax.f32 %v6707_v9, 0.0  ;;  %v5833_v15 = vpack.i.bf16 %v617_v0, %v615_v63  ;;  %v6717_v17 = vadd.f32 %v586_v10, %v482_v42 }
 0x167   : > { %v588_v16 = vpop.f32.mrf.mxu0 }
 0x168   : > { %5834 = vrot.lane.b32.xlu1 %v5833_v15, %s6323_s25  ;;  %v5843_v18 = vpack.i.bf16 %v618_v14, %v616_v12  ;;  %v6726_v21 = vadd.f32 %v588_v16, %v482_v42  ;;  %v619_v25 = vmax.f32 %v6717_v17, 0.0  ;;  %v6755_v16 = vpop.permute.xlu0 %822 }
 0x169   : > { %v590_v19 = vpop.f32.mrf.mxu0 }
 0x16a   : > { %v6728_v22 = vadd.f32 %v590_v19, %v487_v43  ;;  %5844 = vrot.lane.b32.xlu0 %v5843_v18, %s6323_s25  ;;  %v620_v31 = vmax.f32 %v6726_v21, 0.0 }
 0x16b   : > { %v592_v23 = vpop.f32.mrf.mxu0 }
 0x16c   : > { %v621_v27 = vmax.f32 %v6728_v22, 0.0  ;;  %v6735_v28 = vadd.f32 %v592_v23, %v487_v43  ;;  %5839 = vrot.lane.b32.xlu1 %v5833_v15, %s6322_s24 }
 0x16d   : > { %v596_v29 = vpop.f32.mrf.mxu0 }
 0x16e   : > { %v622_v32 = vmax.f32 %v6735_v28, 0.0  ;;  %5849 = vrot.lane.b32.xlu0 %v5843_v18, %s6322_s24  ;;  %v5853_v33 = vpack.i.bf16 %v621_v27, %v619_v25  ;;  %v597_v37 = vadd.f32 %v596_v29, %v492_v40  ;;  %v6762_v28 = vpop.permute.xlu1 %1539 }
 0x16f   : > { %v598_v35 = vpop.f32.mrf.mxu0  ;;  %10351 = vst [vmem:[#allocation4_spill] sm:$0xff] %v6762_v28 }
 0x170   : > { %5854 = vrot.lane.b32.xlu1 %v5853_v33, %s6323_s25  ;;  %v5863_v6 = vpack.i.bf16 %v622_v32, %v620_v31  ;;  %v599_v3 = vadd.f32 %v598_v35, %v492_v40  ;;  %v623_v43 = vmax.f32 %v597_v37, 0.0  ;;  %v6766_v37 = vpop.permute.xlu0 %1544 }
 0x171   : > { %v600_v7 = vpop.f32.mrf.mxu0  ;;  %10352 = vst [vmem:[#allocation5_spill] sm:$0xff] %v6766_v37 }
 0x172   : > { %v601_v8 = vadd.f32 %v600_v7, %v497_v41  ;;  %5864 = vrot.lane.b32.xlu0 %v5863_v6, %s6323_s25  ;;  %v624_v57 = vmax.f32 %v599_v3, 0.0 }
 0x173   : > { %v602_v42 = vpop.f32.mrf.mxu0 }
 0x174   : > { %v625_v44 = vmax.f32 %v601_v8, 0.0  ;;  %v603_v45 = vadd.f32 %v602_v42, %v497_v41  ;;  %5859 = vrot.lane.b32.xlu1 %v5853_v33, %s6322_s24 }
 0x175   : > { %v606_v52 = vpop.f32.mrf.mxu0 }
 0x176   : > { %v626_v60 = vmax.f32 %v603_v45, 0.0  ;;  %5869 = vrot.lane.b32.xlu0 %v5863_v6, %s6322_s24  ;;  %v5873_v10 = vpack.i.bf16 %v625_v44, %v623_v43  ;;  %v607_v40 = vadd.f32 %v606_v52, %v6679_v39  ;;  %v6770_v45 = vpop.permute.xlu1 %1549  ;;  %v6773_v52 = vpop.permute.xlu0 %1554 }
 0x177   : > { %v608_v15 = vpop.f32.mrf.mxu0  ;;  %10353 = vst [vmem:[#allocation6_spill] sm:$0xff] %v6770_v45  ;;  %10354 = vst [vmem:[#allocation7_spill] sm:$0xff] %v6773_v52 }
 0x178   : > { %5874 = vrot.lane.b32.xlu1 %v5873_v10, %s6323_s25  ;;  %v5883_v18 = vpack.i.bf16 %v626_v60, %v624_v57  ;;  %v609_v41 = vadd.f32 %v608_v15, %v6679_v39  ;;  %v627_v29 = vmax.f32 %v607_v40, 0.0  ;;  %v770_v15 = vpack.c.bf16 %v622_v32, %v620_v31 }
 0x179   : > { %v610_v19 = vpop.f32.mrf.mxu0  ;;  %v767_v31 = vpack.c.bf16 %v617_v0, %v615_v63 }
 0x17a   : > { %v611_v21 = vadd.f32 %v610_v19, %v6677_v38  ;;  %5884 = vrot.lane.b32.xlu0 %v5883_v18, %s6323_s25  ;;  %v628_v6 = vmax.f32 %v609_v41, 0.0  ;;  %v6777_v40 = vpop.permute.xlu1 %1559 }
 0x17b   : > { %v612_v23 = vpop.f32.mrf.mxu0  ;;  %10355 = vst [vmem:[#allocation8_spill] sm:$0xff] %v6777_v40 }
 0x17c   : > { %v629_v33 = vmax.f32 %v611_v21, 0.0  ;;  %v613_v35 = vadd.f32 %v612_v23, %v6677_v38  ;;  %5879 = vrot.lane.b32.xlu1 %v5873_v10, %s6322_s24  ;;  %v772_v38 = vpack.c.bf16 %v626_v60, %v624_v57  ;;  %v771_v10 = vpack.c.bf16 %v625_v44, %v623_v43  ;;  %v6783_v57 = vpop.permute.xlu0 %1564 }
 0x17d   : > { %10356 = vst [vmem:[#allocation9_spill] sm:$0xff] %v6783_v57  ;;  %v768_v60 = vpack.c.bf16 %v618_v14, %v616_v12 }
 0x17e   : > { %v630_v7 = vmax.f32 %v613_v35, 0.0  ;;  %5889 = vrot.lane.b32.xlu0 %v5883_v18, %s6322_s24  ;;  %v5893_v39 = vpack.i.bf16 %v629_v33, %v627_v29  ;;  %v773_v42 = vpack.c.bf16 %v629_v33, %v627_v29  ;;  %v769_v18 = vpack.c.bf16 %v621_v27, %v619_v25  ;;  %v6793_v32 = vpop.permute.xlu1 %1569 }
 0x17f   : > { %10357 = vst [vmem:[#allocation10_spill] sm:$0xff] %v6793_v32 }
 0x180   : > { %5894 = vrot.lane.b32.xlu1 %v5893_v39, %s6323_s25  ;;  %v774_v3 = vpack.c.bf16 %v630_v7, %v628_v6  ;;  %v5903_v8 = vpack.i.bf16 %v630_v7, %v628_v6  ;;  %v6795_v17 = vpop.permute.xlu0 %1574 }
 0x181   : > { %10358 = vst [vmem:[#allocation11_spill] sm:$0xff] %v6795_v17 }
 0x182   : > { %992 = vmatprep.subr.bf16.mxu1 %v774_v3  ;;  %5904 = vrot.lane.b32.xlu0 %v5903_v8, %s6323_s25  ;;  %v6797_v22 = vpop.permute.xlu1 %1579 }
 0x183   : > { %993 = vmatpush1.bf16.msra.mxu1 %v773_v42  ;;  %10359 = vst [vmem:[#allocation12_spill] sm:$0xff] %v6797_v22 }
 0x184   : > { %994 = vmatprep.subr.bf16.mxu1 %v772_v38  ;;  %5899 = vrot.lane.b32.xlu1 %v5893_v39, %s6322_s24  ;;  %v6799_v25 = vpop.permute.xlu0 %1584 }
 0x185   : > { %10360 = vst [vmem:[#allocation13_spill] sm:$0xff] %v6799_v25 }
 0x186   : > { %5909 = vrot.lane.b32.xlu0 %v5903_v8, %s6322_s24  ;;  %v6805_v56 = vpop.permute.xlu1 %1589 }
 0x187   : > { %995 = vmatpush1.bf16.msra.mxu1 %v771_v10  ;;  %10361 = vst [vmem:[#allocation14_spill] sm:$0xff] %v6805_v56 }
 0x188   : > { %996 = vmatprep.subr.bf16.mxu1 %v770_v15  ;;  %v6807_v59 = vpop.permute.xlu0 %1594 }
 0x189   : > { %10362 = vst [vmem:[#allocation15_spill] sm:$0xff] %v6807_v59 }
 0x18a   : > { %v6809_v63 = vpop.permute.xlu1 %1599 }
 0x18b   : > { %997 = vmatpush1.bf16.msra.mxu1 %v769_v18  ;;  %10363 = vst [vmem:[#allocation16_spill] sm:$0xff] %v6809_v63 }
 0x18c   : > { %998 = vmatprep.subr.bf16.mxu1 %v768_v60  ;;  %v6811_v0 = vpop.permute.xlu0 %1604 }
 0x18d   : > { %10364 = vst [vmem:[#allocation17_spill] sm:$0xff] %v6811_v0 }
 0x18e   : > { %v6813_v9 = vpop.permute.xlu1 %1609 }
 0x18f   : > { %999 = vmatpush1.bf16.msra.mxu1 %v767_v31  ;;  %10365 = vst [vmem:[#allocation18_spill] sm:$0xff] %v6813_v9 }
 0x190   : > { %v6815_v12 = vpop.permute.xlu0 %1614 }
 0x191   : > { %10366 = vst [vmem:[#allocation19_spill] sm:$0xff] %v6815_v12 }
 0x192   : > { %v6817_v14 = vpop.permute.xlu1 %1619 }
 0x193   : > { %10367 = vst [vmem:[#allocation20_spill] sm:$0xff] %v6817_v14 }
 0x194   : > { %v6819_v27 = vpop.permute.xlu0 %1624 }
 0x195   : > { %10368 = vst [vmem:[#allocation21_spill] sm:$0xff] %v6819_v27 }
 0x196   : > { %v6821_v43 = vpop.permute.xlu1 %1629 }
 0x197   : > { %10369 = vst [vmem:[#allocation22_spill] sm:$0xff] %v6821_v43 }
 0x198   : > { %v6823_v44 = vpop.permute.xlu0 %1634 }
 0x199   : > { %10370 = vst [vmem:[#allocation23_spill] sm:$0xff] %v6823_v44 }
 0x19a   : > { %v6825_v19 = vpop.permute.xlu1 %1639 }
 0x19b   : > { %10371 = vst [vmem:[#allocation24_spill] sm:$0xff] %v6825_v19 }
 0x19c   : > { %v6827_v41 = vpop.permute.xlu0 %1644 }
 0x19d   : > { %10372 = vst [vmem:[#allocation25_spill] sm:$0xff] %v6827_v41 }
 0x19e   : > { %v6829_v21 = vpop.permute.xlu1 %1649 }
 0x19f   : > { %10373 = vst [vmem:[#allocation26_spill] sm:$0xff] %v6829_v21 }
 0x1a0   : > { %v6831_v23 = vpop.permute.xlu0 %1689 }
 0x1a1   : > { %10374 = vst [vmem:[#allocation27_spill] sm:$0xff] %v6831_v23 }
 0x1a2   : > { %v6833_v29 = vpop.permute.xlu1 %1694 }
 0x1a3   : > { %10375 = vst [vmem:[#allocation28_spill] sm:$0xff] %v6833_v29 }
 0x1a4   : > { %v6835_v33 = vpop.permute.xlu0 %1679 }
 0x1a5   : > { %10376 = vst [vmem:[#allocation29_spill] sm:$0xff] %v6835_v33 }
 0x1a6   : > { %v6837_v35 = vpop.permute.xlu1 %1684 }
 0x1a7   : > { %10377 = vst [vmem:[#allocation30_spill] sm:$0xff] %v6837_v35 }
 0x1a8   : > { %v6839_v6 = vpop.permute.xlu0 %1669 }
 0x1a9   : > { %10378 = vst [vmem:[#allocation31_spill] sm:$0xff] %v6839_v6 }
 0x1aa   : > { %v6841_v7 = vpop.permute.xlu1 %1674 }
 0x1ab   : > { %10379 = vst [vmem:[#allocation32_spill] sm:$0xff] %v6841_v7 }
 0x1ac   : > { %v6843_v39 = vpop.permute.xlu0 %1659 }
 0x1ad   : > { %10380 = vst [vmem:[#allocation33_spill] sm:$0xff] %v6843_v39 }
 0x1ae   : > { %v6845_v3 = vpop.permute.xlu1 %1664 }
 0x1af   : > { %10381 = vst [vmem:[#allocation34_spill] sm:$0xff] %v6845_v3 }
 0x1b0   : > { %v6847_v8 = vpop.permute.xlu0 %1654 }
 0x1b1   : > { %10382 = vst [vmem:[#allocation35_spill] sm:$0xff] %v6847_v8 }
 0x1da   : > { %v6849_v42 = vpop.permute.xlu1 %5834 }
 0x1dc   : > { %v6851_v38 = vpop.permute.xlu0 %5844 }
 0x1dd   : > { %v5847_v56 = vunpack.i.h.bf16 %v6851_v38 }
 0x1de   : > { %v6853_v10 = vpop.permute.xlu1 %5839 }
 0x1e0   : > { %v6855_v15 = vpop.permute.xlu0 %5849 }
 0x1e2   : > { %v5855_v18 = vpop.permute.xlu1 %5854 }
 0x1e3   : > { %v5857_v12 = vunpack.i.h.bf16 %v5855_v18  ;;  %v5856_v9 = vunpack.i.l.bf16 %v5855_v18 }
 0x1e4   : > { %v5865_v60 = vpop.permute.xlu0 %5864 }
 0x1e5   : > { %v5867_v19 = vunpack.i.h.bf16 %v5865_v60  ;;  %v5866_v44 = vunpack.i.l.bf16 %v5865_v60 }
 0x1e6   : > { %v6857_v31 = vpop.permute.xlu1 %5859 }
 0x1e8   : > { %v6859_v58 = vpop.permute.xlu0 %5869 }
 0x1ea   : > { %v5875_v62 = vpop.permute.xlu1 %5874 }
 0x1eb   : > { %v5877_v7 = vunpack.i.h.bf16 %v5875_v62  ;;  %v5876_v6 = vunpack.i.l.bf16 %v5875_v62 }
 0x1ec   : > { %v5885_v1 = vpop.permute.xlu0 %5884 }
 0x1ed   : > { %v5887_v23 = vunpack.i.h.bf16 %v5885_v1  ;;  %v5886_v35 = vunpack.i.l.bf16 %v5885_v1 }
 0x1ee   : > { %v6861_v29 = vpop.permute.xlu1 %5879 }
 0x1ef   : > { %v667_v43 = vsel %vm413_vm4, %v5876_v6, %v5886_v35  ;;  %v668_v27 = vsel %vm413_vm4, %v5877_v7, %v5887_v23  ;;  %v675_v0 = vsel %vm413_vm4, %v5886_v35, %v5876_v6  ;;  %v676_v63 = vsel %vm413_vm4, %v5887_v23, %v5877_v7 }
 0x1f0   : > { %v6863_v13 = vpop.permute.xlu0 %5889  ;;  %v5139_v59 = vpack.c.bf16 %v668_v27, %v667_v43  ;;  %v5837_v23 = vunpack.i.h.bf16 %v6849_v42  ;;  %v5836_v27 = vunpack.i.l.bf16 %v6849_v42  ;;  %v5142_v43 = vpack.c.bf16 %v676_v63, %v675_v0 }
 0x1f1   : > { %v673_v6 = vsel %vm413_vm4, %v5866_v44, %v5856_v9  ;;  %v674_v7 = vsel %vm413_vm4, %v5867_v19, %v5857_v12  ;;  %v5892_v42 = vunpack.i.h.bf16 %v6863_v13 }
 0x1f2   : > { %v5895_v33 = vpop.permute.xlu1 %5894  ;;  %v664_v18 = vsel %vm413_vm4, %v5837_v23, %v5847_v56 }
 0x1f3   : > { %v5897_v39 = vunpack.i.h.bf16 %v5895_v33  ;;  %v5896_v8 = vunpack.i.l.bf16 %v5895_v33 }
 0x1f4   : > { %v5905_v3 = vpop.permute.xlu0 %5904 }
 0x1f5   : > { %v5907_v21 = vunpack.i.h.bf16 %v5905_v3  ;;  %v5906_v41 = vunpack.i.l.bf16 %v5905_v3 }
 0x1f7   : > { %v669_v14 = vsel %vm413_vm4, %v5896_v8, %v5906_v41  ;;  %v670_v1 = vsel %vm413_vm4, %v5897_v39, %v5907_v21  ;;  %v677_v62 = vsel %vm413_vm4, %v5906_v41, %v5896_v8  ;;  %v678_v33 = vsel %vm413_vm4, %v5907_v21, %v5897_v39  ;;  %v5900_v39 = vpop.permute.xlu1 %5899 }
 0x1f8   : > { %v5133_v3 = vpack.c.bf16 %v670_v1, %v669_v14  ;;  %v5136_v60 = vpack.c.bf16 %v678_v33, %v677_v62  ;;  %v5846_v41 = vunpack.i.l.bf16 %v6851_v38  ;;  %v665_v14 = vsel %vm413_vm4, %v5856_v9, %v5866_v44  ;;  %v5910_v35 = vpop.permute.xlu0 %5909 }
 0x1f9   : > { %v666_v21 = vsel %vm413_vm4, %v5857_v12, %v5867_v19  ;;  %v5911_v1 = vunpack.i.l.bf16 %v5910_v35  ;;  %v5902_v63 = vunpack.i.h.bf16 %v5900_v39  ;;  %v5901_v0 = vunpack.i.l.bf16 %v5900_v39 }
 0x1fa   : > { %5134 = vmatprep.subr.msk.bf16.mxu1 %vm6640_vm8, %v5133_v3  ;;  %v5145_v8 = vpack.c.bf16 %v666_v21, %v665_v14  ;;  %v663_v38 = vsel %vm413_vm4, %v5836_v27, %v5846_v41  ;;  %v5148_v9 = vpack.c.bf16 %v674_v7, %v673_v6  ;;  %v671_v12 = vsel %vm413_vm4, %v5846_v41, %v5836_v27 }
 0x1fb   : > { %5137 = vmatpush1.bf16.msk.msra.mxu1 %vm6656_vm9, %v5136_v60  ;;  %v672_v44 = vsel %vm413_vm4, %v5847_v56, %v5837_v23  ;;  %v5151_v19 = vpack.c.bf16 %v664_v18, %v663_v38  ;;  %v5891_v62 = vunpack.i.l.bf16 %v6863_v13  ;;  %v741_v33 = vsel %vm434_vm1, %v5911_v1, %v5901_v0 }
 0x1fc   : > { %5140 = vmatprep.subr.msk.bf16.mxu1 %vm6640_vm8, %v5139_v59  ;;  %v5912_v59 = vunpack.i.h.bf16 %v5910_v35  ;;  %v5882_v60 = vunpack.i.h.bf16 %v6861_v29  ;;  %v5881_v56 = vunpack.i.l.bf16 %v6861_v29  ;;  %v5154_v41 = vpack.c.bf16 %v672_v44, %v671_v12 }
 0x1fd   : > { %v733_v13 = vsel %vm434_vm1, %v5901_v0, %v5911_v1  ;;  %v5872_v35 = vunpack.i.h.bf16 %v6859_v58  ;;  %v5871_v23 = vunpack.i.l.bf16 %v6859_v58  ;;  %v5862_v29 = vunpack.i.h.bf16 %v6857_v31 }
 0x1fe   : > { %v742_v3 = vsel %vm434_vm1, %v5912_v59, %v5902_v63  ;;  %v734_v14 = vsel %vm434_vm1, %v5902_v63, %v5912_v59  ;;  %v739_v27 = vsel %vm434_vm1, %v5891_v62, %v5881_v56  ;;  %v5861_v6 = vunpack.i.l.bf16 %v6857_v31 }
 0x1ff   : > { %5143 = vmatpush1.bf16.msk.msra.mxu1 %vm6656_vm9, %v5142_v43  ;;  %v5157_v21 = vpack.c.bf16 %v742_v3, %v741_v33  ;;  %v740_v43 = vsel %vm434_vm1, %v5892_v42, %v5882_v60  ;;  %v5160_v7 = vpack.c.bf16 %v734_v14, %v733_v13  ;;  %v731_v58 = vsel %vm434_vm1, %v5881_v56, %v5891_v62  ;;  %v6080_v56 = vld [vmem:[%s10204_s3 + $0x14] ss:$8 sps:$4 sm:$0xff]   ;;  %v6083_v13 = vld [vmem:[%s10204_s3 + $0x24] ss:$8 sps:$4 sm:$0xff]   ;;  %v6085_v14 = vld [vmem:[%s10204_s3 + $0x20] ss:$8 sps:$4 sm:$0xff]  }
 0x200   : > { %5146 = vmatprep.subr.msk.bf16.mxu1 %vm6640_vm8, %v5145_v8  ;;  %v732_v39 = vsel %vm434_vm1, %v5882_v60, %v5892_v42  ;;  %v5163_v8 = vpack.c.bf16 %v740_v43, %v739_v27  ;;  %v5852_v38 = vunpack.i.h.bf16 %v6855_v15  ;;  %v5851_v18 = vunpack.i.l.bf16 %v6855_v15  ;;  %v6077_v60 = vld [vmem:[%s10204_s3] ss:$8 sps:$4 sm:$0xff]   ;;  %v6092_v43 = vld [vmem:[%s10204_s3 + $0x54] ss:$8 sps:$4 sm:$0xff]  }
 0x201   : > { %v737_v59 = vsel %vm434_vm1, %v5871_v23, %v5861_v6  ;;  %v738_v1 = vsel %vm434_vm1, %v5872_v35, %v5862_v29  ;;  %v5842_v31 = vunpack.i.h.bf16 %v6853_v10  ;;  %v5841_v63 = vunpack.i.l.bf16 %v6853_v10  ;;  %v6091_v27 = vld [vmem:[%s10204_s3 + $0x40] ss:$8 sps:$4 sm:$0xff]  }
 0x202   : > { %v5166_v0 = vpack.c.bf16 %v732_v39, %v731_v58  ;;  %v729_v15 = vsel %vm434_vm1, %v5861_v6, %v5871_v23  ;;  %v5169_v12 = vpack.c.bf16 %v738_v1, %v737_v59  ;;  %v6089_v23 = vld [vmem:[%s10204_s3 + $0x44] ss:$8 sps:$4 sm:$0xff]   ;;  %v6098_v58 = vld [vmem:[%s10204_s3 + $0x74] ss:$8 sps:$4 sm:$0xff]   ;;  %v6100_v39 = vld [vmem:[%s10204_s3 + $0x70] ss:$8 sps:$4 sm:$0xff]  }
 0x203   : > { %5149 = vmatpush1.bf16.msk.msra.mxu1 %vm6656_vm9, %v5148_v9  ;;  %v730_v9 = vsel %vm434_vm1, %v5862_v29, %v5872_v35  ;;  %v735_v44 = vsel %vm434_vm1, %v5851_v18, %v5841_v63  ;;  %v727_v42 = vsel %vm434_vm1, %v5841_v63, %v5851_v18  ;;  %v728_v62 = vsel %vm434_vm1, %v5842_v31, %v5852_v38  ;;  %v6088_v35 = vld [vmem:[%s10204_s3 + $0x30] ss:$8 sps:$4 sm:$0xff]   ;;  %v6095_v6 = vld [vmem:[%s10204_s3 + $0x64] ss:$8 sps:$4 sm:$0xff]  }
 0x204   : > { %5152 = vmatprep.subr.msk.bf16.mxu1 %vm6640_vm8, %v5151_v19  ;;  %v736_v19 = vsel %vm434_vm1, %v5852_v38, %v5842_v31  ;;  %v5172_v10 = vpack.c.bf16 %v730_v9, %v729_v15  ;;  %v5178_v3 = vpack.c.bf16 %v728_v62, %v727_v42  ;;  %v6094_v29 = vld [vmem:[%s10204_s3 + $0x50] ss:$8 sps:$4 sm:$0xff]  }
 0x205   : > { %v5175_v33 = vpack.c.bf16 %v736_v19, %v735_v44 }
 0x207   : > { %5155 = vmatpush1.bf16.msk.msra.mxu1 %vm6656_vm9, %v5154_v41  ;;  %v6082_v41 = vld [vmem:[%s10204_s3 + $0x10] ss:$8 sps:$4 sm:$0xff]  }
 0x208   : > { %5158 = vmatprep.subr.msk.bf16.mxu1 %vm6608_vm3, %v5157_v21  ;;  %v6086_v21 = vld [vmem:[%s10204_s3 + $0x34] ss:$8 sps:$4 sm:$0xff]  }
 0x20b   : > { %5161 = vmatpush2.bf16.msk.msra.mxu1 %vm6620_vm5, %v5160_v7  ;;  %v6097_v7 = vld [vmem:[%s10204_s3 + $0x60] ss:$8 sps:$4 sm:$0xff]  }
 0x20c   : > { %5164 = vmatprep.subr.msk.bf16.mxu1 %vm6608_vm3, %v5163_v8 }
 0x20f   : > { %5167 = vmatpush2.bf16.msk.msra.mxu1 %vm6620_vm5, %v5166_v0 }
 0x210   : > { %5170 = vmatprep.subr.msk.bf16.mxu1 %vm6608_vm3, %v5169_v12 }
 0x213   : > { %5173 = vmatpush2.bf16.msk.msra.mxu1 %vm6620_vm5, %v5172_v10 }
 0x214   : > { %5176 = vmatprep.subr.msk.bf16.mxu1 %vm6608_vm3, %v5175_v33 }
 0x217   : > { %5179 = vmatpush2.bf16.msk.msra.mxu1 %vm6620_vm5, %v5178_v3 }
 0x21a   : > { %1025 = vmatmul.mubr.bf16.vlgmr.msra.gmra.mxu1 %v6077_v60 }
 0x21b   : > { %5181 = vmatprep.mubr.msk.bf16.mxu1 %vm967_vm11, %v6080_v56 }
 0x222   : > { %1035 = vmatmul.mubr.bf16.gmra.mxu1 %v6082_v41 }
 0x223   : > { %5182 = vmatprep.mubr.msk.bf16.mxu1 %vm967_vm11, %v6083_v13 }
 0x22a   : > { %1045 = vmatmul.mubr.bf16.gmra.mxu1 %v6085_v14 }
 0x22b   : > { %5183 = vmatprep.mubr.msk.bf16.mxu1 %vm967_vm11, %v6086_v21 }
 0x232   : > { %1055 = vmatmul.mubr.bf16.gmra.mxu1 %v6088_v35 }
 0x233   : > { %5184 = vmatprep.mubr.msk.bf16.mxu1 %vm967_vm11, %v6089_v23 }
 0x23a   : > { %1065 = vmatmul.mubr.bf16.gmra.mxu1 %v6091_v27 }
 0x23b   : > { %5185 = vmatprep.mubr.msk.bf16.mxu1 %vm967_vm11, %v6092_v43 }
 0x242   : > { %1075 = vmatmul.mubr.bf16.gmra.mxu1 %v6094_v29 }
 0x243   : > { %5186 = vmatprep.mubr.msk.bf16.mxu1 %vm967_vm11, %v6095_v6 }
 0x24a   : > { %1085 = vmatmul.mubr.bf16.gmra.mxu1 %v6097_v7 }
 0x24b   : > { %5187 = vmatprep.mubr.msk.bf16.mxu1 %vm967_vm11, %v6098_v58 }
 0x252   : > { %1095 = vmatmul.mubr.bf16.gmra.mxu1 %v6100_v39 }
 0x2da   : > { %v1026_v8 = vpop.f32.mrf.mxu1 }
 0x2db   : > { %v1027_v18 = vadd.f32 %v1026_v8, %v6752_v54 }
 0x2dc   : > { %v1028_v38 = vpop.f32.mrf.mxu1 }
 0x2dd   : > { %v1029_v1 = vadd.f32 %v1028_v38, %v6752_v54  ;;  %v1105_v0 = vmax.f32 %v1027_v18, 0.0 }
 0x2de   : > { %v1030_v59 = vpop.f32.mrf.mxu1 }
 0x2df   : > { %v1031_v31 = vadd.f32 %v1030_v59, %v6755_v16  ;;  %v1106_v44 = vmax.f32 %v1029_v1, 0.0 }
 0x2e0   : > { %v1032_v63 = vpop.f32.mrf.mxu1 }
 0x2e1   : > { %v1107_v15 = vmax.f32 %v1031_v31, 0.0  ;;  %v1033_v9 = vadd.f32 %v1032_v63, %v6755_v16 }
 0x2e2   : > { %v1036_v12 = vpop.f32.mrf.mxu1 }
 0x2e3   : > { %v7033_v19 = vpack.c.bf16 %v1107_v15, %v1105_v0  ;;  %v1108_v10 = vmax.f32 %v1033_v9, 0.0  ;;  %v5913_v42 = vpack.i.bf16 %v1107_v15, %v1105_v0  ;;  %v1037_v33 = vadd.f32 %v1036_v12, %v6745_v36 }
 0x2e4   : > { %v1038_v62 = vpop.f32.mrf.mxu1 }
 0x2e5   : > { %5914 = vrot.lane.b32.xlu1 %v5913_v42, %s6323_s25  ;;  %v5923_v3 = vpack.i.bf16 %v1108_v10, %v1106_v44  ;;  %v7037_v60 = vpack.c.bf16 %v1108_v10, %v1106_v44  ;;  %v1039_v56 = vadd.f32 %v1038_v62, %v6745_v36  ;;  %v1109_v13 = vmax.f32 %v1037_v33, 0.0 }
 0x2e6   : > { %v1040_v54 = vpop.f32.mrf.mxu1 }
 0x2e7   : > { %v1041_v41 = vadd.f32 %v1040_v54, %v6748_v2  ;;  %5924 = vrot.lane.b32.xlu0 %v5923_v3, %s6323_s25  ;;  %v1110_v23 = vmax.f32 %v1039_v56, 0.0 }
 0x2e8   : > { %v1042_v16 = vpop.f32.mrf.mxu1 }
 0x2e9   : > { %v1111_v14 = vmax.f32 %v1041_v41, 0.0  ;;  %v1043_v21 = vadd.f32 %v1042_v16, %v6748_v2  ;;  %5919 = vrot.lane.b32.xlu1 %v5913_v42, %s6322_s24 }
 0x2ea   : > { %v1046_v35 = vpop.f32.mrf.mxu1 }
 0x2eb   : > { %v7044_v27 = vpack.c.bf16 %v1111_v14, %v1109_v13  ;;  %v1112_v43 = vmax.f32 %v1043_v21, 0.0  ;;  %5929 = vrot.lane.b32.xlu0 %v5923_v3, %s6322_s24  ;;  %v5933_v29 = vpack.i.bf16 %v1111_v14, %v1109_v13  ;;  %v1047_v6 = vadd.f32 %v1046_v35, %v6724_v20 }
 0x2ec   : > { %v1048_v36 = vpop.f32.mrf.mxu1 }
 0x2ed   : > { %5934 = vrot.lane.b32.xlu1 %v5933_v29, %s6323_s25  ;;  %v5943_v7 = vpack.i.bf16 %v1112_v43, %v1110_v23  ;;  %v7049_v39 = vpack.c.bf16 %v1112_v43, %v1110_v23  ;;  %v1049_v2 = vadd.f32 %v1048_v36, %v6724_v20  ;;  %v1113_v18 = vmax.f32 %v1047_v6, 0.0 }
 0x2ee   : > { %v1050_v58 = vpop.f32.mrf.mxu1 }
 0x2ef   : > { %v1051_v8 = vadd.f32 %v1050_v58, %v6731_v24  ;;  %5944 = vrot.lane.b32.xlu0 %v5943_v7, %s6323_s25  ;;  %v1114_v63 = vmax.f32 %v1049_v2, 0.0 }
 0x2f0   : > { %v1052_v38 = vpop.f32.mrf.mxu1 }
 0x2f1   : > { %v1115_v59 = vmax.f32 %v1051_v8, 0.0  ;;  %v1053_v1 = vadd.f32 %v1052_v38, %v6731_v24  ;;  %5939 = vrot.lane.b32.xlu1 %v5933_v29, %s6322_s24 }
 0x2f2   : > { %v1056_v31 = vpop.f32.mrf.mxu1 }
 0x2f3   : > { %v7056_v0 = vpack.c.bf16 %v1115_v59, %v1113_v18  ;;  %v1116_v15 = vmax.f32 %v1053_v1, 0.0  ;;  %5949 = vrot.lane.b32.xlu0 %v5943_v7, %s6322_s24  ;;  %v5953_v9 = vpack.i.bf16 %v1115_v59, %v1113_v18  ;;  %v1057_v12 = vadd.f32 %v1056_v31, %v6703_v61 }
 0x2f4   : > { %v1058_v20 = vpop.f32.mrf.mxu1 }
 0x2f5   : > { %5954 = vrot.lane.b32.xlu1 %v5953_v9, %s6323_s25  ;;  %v5963_v44 = vpack.i.bf16 %v1116_v15, %v1114_v63  ;;  %v7061_v42 = vpack.c.bf16 %v1116_v15, %v1114_v63  ;;  %v1059_v24 = vadd.f32 %v1058_v20, %v6703_v61  ;;  %v1117_v3 = vmax.f32 %v1057_v12, 0.0 }
 0x2f6   : > { %v1060_v10 = vpop.f32.mrf.mxu1 }
 0x2f7   : > { %v1061_v62 = vadd.f32 %v1060_v10, %v6709_v11  ;;  %5964 = vrot.lane.b32.xlu0 %v5963_v44, %s6323_s25  ;;  %v1118_v16 = vmax.f32 %v1059_v24, 0.0 }
 0x2f8   : > { %v1062_v33 = vpop.f32.mrf.mxu1 }
 0x2f9   : > { %v1119_v54 = vmax.f32 %v1061_v62, 0.0  ;;  %v1063_v56 = vadd.f32 %v1062_v33, %v6709_v11  ;;  %5959 = vrot.lane.b32.xlu1 %v5953_v9, %s6322_s24 }
 0x2fa   : > { %v1066_v41 = vpop.f32.mrf.mxu1 }
 0x2fb   : > { %v7068_v13 = vpack.c.bf16 %v1119_v54, %v1117_v3  ;;  %v1120_v14 = vmax.f32 %v1063_v56, 0.0  ;;  %5969 = vrot.lane.b32.xlu0 %v5963_v44, %s6322_s24  ;;  %v5973_v21 = vpack.i.bf16 %v1119_v54, %v1117_v3  ;;  %v1067_v35 = vadd.f32 %v1066_v41, %v6693_v53 }
 0x2fc   : > { %v1068_v61 = vpop.f32.mrf.mxu1 }
 0x2fd   : > { %5974 = vrot.lane.b32.xlu1 %v5973_v21, %s6323_s25  ;;  %v5983_v23 = vpack.i.bf16 %v1120_v14, %v1118_v16  ;;  %v7073_v29 = vpack.c.bf16 %v1120_v14, %v1118_v16  ;;  %v1069_v11 = vadd.f32 %v1068_v61, %v6693_v53  ;;  %v1121_v7 = vmax.f32 %v1067_v35, 0.0 }
 0x2fe   : > { %v1070_v43 = vpop.f32.mrf.mxu1 }
 0x2ff   : > { %v1071_v36 = vadd.f32 %v1070_v43, %v6695_v55  ;;  %5984 = vrot.lane.b32.xlu0 %v5983_v23, %s6323_s25  ;;  %v1122_v38 = vmax.f32 %v1069_v11, 0.0 }
 0x300   : > { %v1072_v6 = vpop.f32.mrf.mxu1 }
 0x301   : > { %v1123_v58 = vmax.f32 %v1071_v36, 0.0  ;;  %v1073_v2 = vadd.f32 %v1072_v6, %v6695_v55  ;;  %5979 = vrot.lane.b32.xlu1 %v5973_v21, %s6322_s24 }
 0x302   : > { %v1076_v8 = vpop.f32.mrf.mxu1 }
 0x303   : > { %v7080_v18 = vpack.c.bf16 %v1123_v58, %v1121_v7  ;;  %v1124_v59 = vmax.f32 %v1073_v2, 0.0  ;;  %5989 = vrot.lane.b32.xlu0 %v5983_v23, %s6322_s24  ;;  %v5993_v1 = vpack.i.bf16 %v1123_v58, %v1121_v7  ;;  %v1077_v31 = vadd.f32 %v1076_v8, %v6689_v50 }
 0x304   : > { %v1078_v53 = vpop.f32.mrf.mxu1 }
 0x305   : > { %5994 = vrot.lane.b32.xlu1 %v5993_v1, %s6323_s25  ;;  %v6003_v63 = vpack.i.bf16 %v1124_v59, %v1122_v38  ;;  %v7085_v9 = vpack.c.bf16 %v1124_v59, %v1122_v38  ;;  %v1079_v55 = vadd.f32 %v1078_v53, %v6689_v50  ;;  %v1125_v44 = vmax.f32 %v1077_v31, 0.0 }
 0x306   : > { %v1080_v15 = vpop.f32.mrf.mxu1 }
 0x307   : > { %v1081_v20 = vadd.f32 %v1080_v15, %v6691_v51  ;;  %6004 = vrot.lane.b32.xlu0 %v6003_v63, %s6323_s25  ;;  %v1126_v33 = vmax.f32 %v1079_v55, 0.0 }
 0x308   : > { %v1082_v12 = vpop.f32.mrf.mxu1 }
 0x309   : > { %v1127_v10 = vmax.f32 %v1081_v20, 0.0  ;;  %v1083_v24 = vadd.f32 %v1082_v12, %v6691_v51  ;;  %5999 = vrot.lane.b32.xlu1 %v5993_v1, %s6322_s24 }
 0x30a   : > { %v1086_v62 = vpop.f32.mrf.mxu1 }
 0x30b   : > { %v7092_v3 = vpack.c.bf16 %v1127_v10, %v1125_v44  ;;  %v1128_v54 = vmax.f32 %v1083_v24, 0.0  ;;  %6009 = vrot.lane.b32.xlu0 %v6003_v63, %s6322_s24  ;;  %v6013_v50 = vpack.i.bf16 %v1127_v10, %v1125_v44  ;;  %v1087_v41 = vadd.f32 %v1086_v62, %v6685_v48  ;;  %v6106_v62 = vld [vmem:[%s10206_s5 + $0x10c] ss:$12 sps:$4 sm:$0xff]  }
 0x30c   : > { %v1088_v56 = vpop.f32.mrf.mxu1  ;;  %2095 = vmatprep.mubr.bf16.mxu1 %v6106_v62 }
 0x30d   : > { %v6023_v16 = vpack.i.bf16 %v1128_v54, %v1126_v33  ;;  %6014 = vrot.lane.b32.xlu1 %v6013_v50, %s6323_s25  ;;  %v7097_v21 = vpack.c.bf16 %v1128_v54, %v1126_v33  ;;  %v1089_v51 = vadd.f32 %v1088_v56, %v6685_v48  ;;  %v1129_v23 = vmax.f32 %v1087_v41, 0.0 }
 0x30e   : > { %v1090_v14 = vpop.f32.mrf.mxu1 }
 0x30f   : > { %v1091_v61 = vadd.f32 %v1090_v14, %v6687_v49  ;;  %6024 = vrot.lane.b32.xlu0 %v6023_v16, %s6323_s25  ;;  %v1130_v6 = vmax.f32 %v1089_v51, 0.0 }
 0x310   : > { %v1092_v35 = vpop.f32.mrf.mxu1 }
 0x311   : > { %v1131_v43 = vmax.f32 %v1091_v61, 0.0  ;;  %v1093_v11 = vadd.f32 %v1092_v35, %v6687_v49  ;;  %6019 = vrot.lane.b32.xlu1 %v6013_v50, %s6322_s24 }
 0x312   : > { %v1096_v36 = vpop.f32.mrf.mxu1 }
 0x313   : > { %v6033_v7 = vpack.i.bf16 %v1131_v43, %v1129_v23  ;;  %v7104_v58 = vpack.c.bf16 %v1131_v43, %v1129_v23  ;;  %v1132_v2 = vmax.f32 %v1093_v11, 0.0  ;;  %6029 = vrot.lane.b32.xlu0 %v6023_v16, %s6322_s24  ;;  %v1097_v38 = vadd.f32 %v1096_v36, %v6681_v46 }
 0x314   : > { %v1098_v48 = vpop.f32.mrf.mxu1 }
 0x315   : > { %v6043_v8 = vpack.i.bf16 %v1132_v2, %v1130_v6  ;;  %v7108_v59 = vpack.c.bf16 %v1132_v2, %v1130_v6  ;;  %6034 = vrot.lane.b32.xlu1 %v6033_v7, %s6323_s25  ;;  %v1099_v49 = vadd.f32 %v1098_v48, %v6681_v46  ;;  %v1133_v63 = vmax.f32 %v1097_v38, 0.0 }
 0x316   : > { %v1100_v1 = vpop.f32.mrf.mxu1 }
 0x317   : > { %v1101_v53 = vadd.f32 %v1100_v1, %v6683_v47  ;;  %6044 = vrot.lane.b32.xlu0 %v6043_v8, %s6323_s25  ;;  %v1134_v20 = vmax.f32 %v1099_v49, 0.0 }
 0x318   : > { %v1102_v31 = vpop.f32.mrf.mxu1 }
 0x319   : > { %v1135_v15 = vmax.f32 %v1101_v53, 0.0  ;;  %v1103_v55 = vadd.f32 %v1102_v31, %v6683_v47  ;;  %6039 = vrot.lane.b32.xlu1 %v6033_v7, %s6322_s24  ;;  %v6103_v47 = vld [vmem:[%s10206_s5 + $0x4] ss:$12 sps:$4 sm:$0xff]  }
 0x31a   : > { %1985 = vmatprep.mubr.bf16.mxu0 %v6103_v47 }
 0x31b   : > { %v6053_v12 = vpack.i.bf16 %v1135_v15, %v1133_v63  ;;  %v7116_v44 = vpack.c.bf16 %v1135_v15, %v1133_v63  ;;  %v1136_v10 = vmax.f32 %v1103_v55, 0.0  ;;  %6049 = vrot.lane.b32.xlu0 %v6043_v8, %s6322_s24 }
 0x31d   : > { %v6063_v24 = vpack.i.bf16 %v1136_v10, %v1134_v20  ;;  %v7119_v46 = vpack.c.bf16 %v1136_v10, %v1134_v20  ;;  %6054 = vrot.lane.b32.xlu1 %v6053_v12, %s6323_s25 }
 0x31f   : > { %6064 = vrot.lane.b32.xlu0 %v6063_v24, %s6323_s25 }
 0x321   : > { %6059 = vrot.lane.b32.xlu1 %v6053_v12, %s6322_s24 }
 0x323   : > { %6069 = vrot.lane.b32.xlu0 %v6063_v24, %s6322_s24 }
 0x357   : > { %v7131_v33 = vpop.permute.xlu1 %5914 }
 0x359   : > { %v7133_v54 = vpop.permute.xlu0 %5924 }
 0x35b   : > { %v7135_v56 = vpop.permute.xlu1 %5919 }
 0x35c   : > { %10383 = vst [vmem:[#allocation36_spill] sm:$0xff] %v7135_v56 }
 0x35d   : > { %v7137_v50 = vpop.permute.xlu0 %5929 }
 0x35e   : > { %10384 = vst [vmem:[#allocation37_spill] sm:$0xff] %v7137_v50 }
 0x35f   : > { %v7139_v41 = vpop.permute.xlu1 %5934 }
 0x361   : > { %v7141_v16 = vpop.permute.xlu0 %5944 }
 0x363   : > { %v7143_v14 = vpop.permute.xlu1 %5939 }
 0x364   : > { %10385 = vst [vmem:[#allocation38_spill] sm:$0xff] %v7143_v14 }
 0x365   : > { %v7145_v51 = vpop.permute.xlu0 %5949 }
 0x366   : > { %10386 = vst [vmem:[#allocation39_spill] sm:$0xff] %v7145_v51 }
 0x367   : > { %v7147_v61 = vpop.permute.xlu1 %5954 }
 0x369   : > { %v7149_v35 = vpop.permute.xlu0 %5964 }
 0x36b   : > { %v7151_v23 = vpop.permute.xlu1 %5959 }
 0x36d   : > { %v7153_v43 = vpop.permute.xlu0 %5969 }
 0x36f   : > { %v7155_v11 = vpop.permute.xlu1 %5974 }
 0x371   : > { %v7157_v36 = vpop.permute.xlu0 %5984 }
 0x373   : > { %v7159_v6 = vpop.permute.xlu1 %5979 }
 0x375   : > { %v7161_v7 = vpop.permute.xlu0 %5989 }
 0x377   : > { %v7163_v2 = vpop.permute.xlu1 %5994 }
 0x379   : > { %v7165_v48 = vpop.permute.xlu0 %6004 }
 0x37b   : > { %v7167_v8 = vpop.permute.xlu1 %5999 }
 0x37d   : > { %v7169_v38 = vpop.permute.xlu0 %6009 }
 0x37f   : > { %v6015_v1 = vpop.permute.xlu1 %6014 }
 0x380   : > { %v6017_v56 = vunpack.i.h.bf16 %v6015_v1  ;;  %v6016_v50 = vunpack.i.l.bf16 %v6015_v1 }
 0x381   : > { %v6025_v49 = vpop.permute.xlu0 %6024 }
 0x382   : > { %v6027_v40 = vunpack.i.h.bf16 %v6025_v49  ;;  %v6026_v52 = vunpack.i.l.bf16 %v6025_v49 }
 0x383   : > { %v7171_v53 = vpop.permute.xlu1 %6019 }
 0x384   : > { %v1227_v1 = vsel %vm413_vm4, %v6026_v52, %v6016_v50 }
 0x385   : > { %v7173_v31 = vpop.permute.xlu0 %6029 }
 0x387   : > { %v6035_v63 = vpop.permute.xlu1 %6034 }
 0x388   : > { %v6037_v47 = vunpack.i.h.bf16 %v6035_v63  ;;  %v6036_v62 = vunpack.i.l.bf16 %v6035_v63 }
 0x389   : > { %v6045_v15 = vpop.permute.xlu0 %6044 }
 0x38a   : > { %v6047_v12 = vunpack.i.h.bf16 %v6045_v15  ;;  %v6046_v10 = vunpack.i.l.bf16 %v6045_v15 }
 0x38b   : > { %v7175_v55 = vpop.permute.xlu1 %6039 }
 0x38c   : > { %v1213_v45 = vsel %vm413_vm4, %v6036_v62, %v6046_v10  ;;  %v1214_v37 = vsel %vm413_vm4, %v6037_v47, %v6047_v12  ;;  %v1229_v14 = vsel %vm413_vm4, %v6046_v10, %v6036_v62  ;;  %v1230_v51 = vsel %vm413_vm4, %v6047_v12, %v6037_v47 }
 0x38d   : > { %v7177_v20 = vpop.permute.xlu0 %6049  ;;  %v1228_v12 = vsel %vm413_vm4, %v6027_v40, %v6017_v56  ;;  %v5987_v47 = vunpack.i.h.bf16 %v7157_v36  ;;  %v5986_v62 = vunpack.i.l.bf16 %v7157_v36 }
 0x38f   : > { %v6055_v24 = vpop.permute.xlu1 %6054 }
 0x390   : > { %v6057_v22 = vunpack.i.h.bf16 %v6055_v24  ;;  %v6056_v17 = vunpack.i.l.bf16 %v6055_v24 }
 0x391   : > { %v6065_v25 = vpop.permute.xlu0 %6064 }
 0x392   : > { %v6067_v32 = vunpack.i.h.bf16 %v6065_v25  ;;  %v6066_v57 = vunpack.i.l.bf16 %v6065_v25 }
 0x393   : > { %v6060_v4 = vpop.permute.xlu1 %6059 }
 0x394   : > { %v1215_v28 = vsel %vm413_vm4, %v6056_v17, %v6066_v57  ;;  %v1216_v15 = vsel %vm413_vm4, %v6057_v22, %v6067_v32  ;;  %v1231_v63 = vsel %vm413_vm4, %v6066_v57, %v6056_v17  ;;  %v1232_v25 = vsel %vm413_vm4, %v6067_v32, %v6057_v22 }
 0x395   : > { %v5240_v24 = vpack.c.bf16 %v1232_v25, %v1231_v63  ;;  %v5237_v49 = vpack.c.bf16 %v1216_v15, %v1215_v28  ;;  %v5243_v57 = vpack.c.bf16 %v1214_v37, %v1213_v45  ;;  %v6007_v17 = vunpack.i.h.bf16 %v7165_v48  ;;  %v6070_v34 = vpop.permute.xlu0 %6069 }
 0x396   : > { %v6006_v32 = vunpack.i.l.bf16 %v7165_v48  ;;  %v1211_v28 = vsel %vm413_vm4, %v6016_v50, %v6026_v52  ;;  %v1212_v22 = vsel %vm413_vm4, %v6017_v56, %v6027_v40  ;;  %v5997_v37 = vunpack.i.h.bf16 %v7163_v2 }
 0x397   : > { %5238 = vmatprep.subr.msk.bf16.mxu0 %vm6640_vm8, %v5237_v49  ;;  %5768 = vmatprep.subr.msk.bf16.mxu1 %vm6640_vm8, %v5237_v49  ;;  %v5996_v45 = vunpack.i.l.bf16 %v7163_v2  ;;  %v5246_v48 = vpack.c.bf16 %v1230_v51, %v1229_v14  ;;  %v5249_v10 = vpack.c.bf16 %v1212_v22, %v1211_v28  ;;  %v5977_v52 = vunpack.i.h.bf16 %v7155_v11 }
 0x398   : > { %5241 = vmatpush1.bf16.msk.msra.mxu0 %vm6656_vm9, %v5240_v24  ;;  %5784 = vmatpush1.bf16.msk.msra.mxu1 %vm6656_vm9, %v5240_v24  ;;  %v1210_v14 = vsel %vm413_vm4, %v5997_v37, %v6007_v17  ;;  %v5976_v40 = vunpack.i.l.bf16 %v7155_v11  ;;  %v5252_v56 = vpack.c.bf16 %v1228_v12, %v1227_v1  ;;  %v1226_v51 = vsel %vm413_vm4, %v6007_v17, %v5997_v37 }
 0x399   : > { %5244 = vmatprep.subr.msk.bf16.mxu0 %vm6640_vm8, %v5243_v57  ;;  %5769 = vmatprep.subr.msk.bf16.mxu1 %vm6640_vm8, %v5243_v57  ;;  %v1209_v15 = vsel %vm413_vm4, %v5996_v45, %v6006_v32  ;;  %v1225_v50 = vsel %vm413_vm4, %v6006_v32, %v5996_v45  ;;  %v5967_v2 = vunpack.i.h.bf16 %v7149_v35  ;;  %v5966_v63 = vunpack.i.l.bf16 %v7149_v35 }
 0x39a   : > { %v5255_v36 = vpack.c.bf16 %v1210_v14, %v1209_v15  ;;  %v1207_v25 = vsel %vm413_vm4, %v5976_v40, %v5986_v62  ;;  %v1208_v11 = vsel %vm413_vm4, %v5977_v52, %v5987_v47  ;;  %v5957_v24 = vunpack.i.h.bf16 %v7147_v61 }
 0x39b   : > { %v5956_v49 = vunpack.i.l.bf16 %v7147_v61  ;;  %v5258_v35 = vpack.c.bf16 %v1226_v51, %v1225_v50  ;;  %v1223_v57 = vsel %vm413_vm4, %v5986_v62, %v5976_v40  ;;  %v1224_v17 = vsel %vm413_vm4, %v5987_v47, %v5977_v52 }
 0x39c   : > { %5247 = vmatpush1.bf16.msk.msra.mxu0 %vm6656_vm9, %v5246_v48  ;;  %5785 = vmatpush1.bf16.msk.msra.mxu1 %vm6656_vm9, %v5246_v48  ;;  %v5261_v32 = vpack.c.bf16 %v1208_v11, %v1207_v25  ;;  %v5947_v28 = vunpack.i.h.bf16 %v7141_v16  ;;  %v5946_v22 = vunpack.i.l.bf16 %v7141_v16  ;;  %v1206_v61 = vsel %vm413_vm4, %v5957_v24, %v5967_v2 }
 0x39d   : > { %5250 = vmatprep.subr.msk.bf16.mxu0 %vm6640_vm8, %v5249_v10  ;;  %5770 = vmatprep.subr.msk.bf16.mxu1 %vm6640_vm8, %v5249_v10  ;;  %v1205_v37 = vsel %vm413_vm4, %v5956_v49, %v5966_v63  ;;  %v5937_v45 = vunpack.i.h.bf16 %v7139_v41  ;;  %v5936_v48 = vunpack.i.l.bf16 %v7139_v41  ;;  %v5264_v16 = vpack.c.bf16 %v1224_v17, %v1223_v57  ;;  %v6109_v57 = vld [vmem:[%s10206_s5 + $0x124] ss:$12 sps:$4 sm:$0xff]  }
 0x39e   : > { %v1221_v1 = vsel %vm413_vm4, %v5966_v63, %v5956_v49  ;;  %v1222_v12 = vsel %vm413_vm4, %v5967_v2, %v5957_v24  ;;  %v5267_v10 = vpack.c.bf16 %v1206_v61, %v1205_v37  ;;  %v5927_v47 = vunpack.i.h.bf16 %v7133_v54 }
 0x39f   : > { %v5926_v62 = vunpack.i.l.bf16 %v7133_v54  ;;  %v1203_v15 = vsel %vm413_vm4, %v5936_v48, %v5946_v22  ;;  %v1204_v41 = vsel %vm413_vm4, %v5937_v45, %v5947_v28  ;;  %v5917_v14 = vunpack.i.h.bf16 %v7131_v33 }
 0x3a0   : > { %5253 = vmatpush1.bf16.msk.msra.mxu0 %vm6656_vm9, %v5252_v56  ;;  %5786 = vmatpush1.bf16.msk.msra.mxu1 %vm6656_vm9, %v5252_v56  ;;  %v5916_v52 = vunpack.i.l.bf16 %v7131_v33  ;;  %v5270_v54 = vpack.c.bf16 %v1222_v12, %v1221_v1  ;;  %v1219_v40 = vsel %vm413_vm4, %v5946_v22, %v5936_v48  ;;  %v1220_v56 = vsel %vm413_vm4, %v5947_v28, %v5937_v45 }
 0x3a1   : > { %5256 = vmatprep.subr.msk.bf16.mxu0 %vm6640_vm8, %v5255_v36  ;;  %5771 = vmatprep.subr.msk.bf16.mxu1 %vm6640_vm8, %v5255_v36  ;;  %v5273_v50 = vpack.c.bf16 %v1204_v41, %v1203_v15  ;;  %v1202_v36 = vsel %vm413_vm4, %v5917_v14, %v5927_v47  ;;  %v5276_v33 = vpack.c.bf16 %v1220_v56, %v1219_v40  ;;  %v6031_v24 = vunpack.i.l.bf16 %v7173_v31 }
 0x3a2   : > { %v1201_v51 = vsel %vm413_vm4, %v5916_v52, %v5926_v62  ;;  %v1217_v2 = vsel %vm413_vm4, %v5926_v62, %v5916_v52  ;;  %v1218_v63 = vsel %vm413_vm4, %v5927_v47, %v5917_v14  ;;  %v6022_v17 = vunpack.i.h.bf16 %v7171_v53  ;;  %v6112_v62 = vld [vmem:[%s10206_s5 + $0x120] ss:$12 sps:$4 sm:$0xff]  }
 0x3a3   : > { %v5279_v25 = vpack.c.bf16 %v1202_v36, %v1201_v51  ;;  %v5282_v11 = vpack.c.bf16 %v1218_v63, %v1217_v2  ;;  %v6012_v37 = vunpack.i.h.bf16 %v7169_v38  ;;  %v6011_v61 = vunpack.i.l.bf16 %v7169_v38  ;;  %v6111_v38 = vld [vmem:[%s10206_s5 + $0x18] ss:$12 sps:$4 sm:$0xff]  }
 0x3a4   : > { %5259 = vmatpush1.bf16.msk.msra.mxu0 %vm6656_vm9, %v5258_v35  ;;  %5787 = vmatpush1.bf16.msk.msra.mxu1 %vm6656_vm9, %v5258_v35  ;;  %v6002_v48 = vunpack.i.h.bf16 %v7167_v8  ;;  %v5992_v15 = vunpack.i.h.bf16 %v7161_v7  ;;  %v5991_v41 = vunpack.i.l.bf16 %v7161_v7  ;;  %v5982_v40 = vunpack.i.h.bf16 %v7159_v6 }
 0x3a5   : > { %5262 = vmatprep.subr.msk.bf16.mxu0 %vm6640_vm8, %v5261_v32  ;;  %5772 = vmatprep.subr.msk.bf16.mxu1 %vm6640_vm8, %v5261_v32  ;;  %v6021_v32 = vunpack.i.l.bf16 %v7171_v53  ;;  %v5981_v7 = vunpack.i.l.bf16 %v7159_v6  ;;  %v5971_v2 = vunpack.i.l.bf16 %v7153_v43 }
 0x3a6   : > { %v1354_v52 = vsel %vm434_vm1, %v6012_v37, %v6002_v48  ;;  %v1338_v51 = vsel %vm434_vm1, %v6002_v48, %v6012_v37  ;;  %v1352_v6 = vsel %vm434_vm1, %v5992_v15, %v5982_v40 }
 0x3a7   : > { %v1355_v45 = vsel %vm434_vm1, %v6031_v24, %v6021_v32  ;;  %v1339_v12 = vsel %vm434_vm1, %v6021_v32, %v6031_v24  ;;  %v1351_v63 = vsel %vm434_vm1, %v5991_v41, %v5981_v7 }
 0x3a8   : > { %5265 = vmatpush1.bf16.msk.msra.mxu0 %vm6656_vm9, %v5264_v16  ;;  %5788 = vmatpush1.bf16.msk.msra.mxu1 %vm6656_vm9, %v5264_v16  ;;  %v6001_v16 = vunpack.i.l.bf16 %v7167_v8  ;;  %v6113_v8 = vld [vmem:[%s10206_s5 + $0x34] ss:$12 sps:$4 sm:$0xff]  }
 0x3a9   : > { %5268 = vmatprep.subr.msk.bf16.mxu0 %vm6640_vm8, %v5267_v10  ;;  %5773 = vmatprep.subr.msk.bf16.mxu1 %vm6640_vm8, %v5267_v10 }
 0x3aa   : > { %v1353_v14 = vsel %vm434_vm1, %v6011_v61, %v6001_v16 }
 0x3ab   : > { %v5303_v36 = vpack.c.bf16 %v1354_v52, %v1353_v14  ;;  %v6133_v14 = vld [vmem:[%s10206_s5 + $0x78] ss:$12 sps:$4 sm:$0xff]   ;;  %v6134_v52 = vld [vmem:[%s10206_s5 + $0x8] ss:$12 sps:$4 sm:$0xff]  }
 0x3ac   : > { %5271 = vmatpush1.bf16.msk.msra.mxu0 %vm6656_vm9, %v5270_v54  ;;  %5789 = vmatpush1.bf16.msk.msra.mxu1 %vm6656_vm9, %v5270_v54  ;;  %v6115_v54 = vld [vmem:[%s10206_s5 + $0x13c] ss:$12 sps:$4 sm:$0xff]  }
 0x3ad   : > { %5274 = vmatprep.subr.msk.bf16.mxu0 %vm6640_vm8, %v5273_v50  ;;  %5774 = vmatprep.subr.msk.bf16.mxu1 %vm6640_vm8, %v5273_v50  ;;  %v1337_v50 = vsel %vm434_vm1, %v6001_v16, %v6011_v61 }
 0x3b0   : > { %5277 = vmatpush1.bf16.msk.msra.mxu0 %vm6656_vm9, %v5276_v33  ;;  %5790 = vmatpush1.bf16.msk.msra.mxu1 %vm6656_vm9, %v5276_v33  ;;  %v5972_v33 = vunpack.i.h.bf16 %v7153_v43  ;;  %v6117_v43 = vld [vmem:[%s10206_s5 + $0x30] ss:$12 sps:$4 sm:$0xff]  }
 0x3b1   : > { %5280 = vmatprep.subr.msk.bf16.mxu0 %vm6640_vm8, %v5279_v25  ;;  %5775 = vmatprep.subr.msk.bf16.mxu1 %vm6640_vm8, %v5279_v25  ;;  %v5962_v25 = vunpack.i.h.bf16 %v7151_v23 }
 0x3b4   : > { %5283 = vmatpush1.bf16.msk.msra.mxu0 %vm6656_vm9, %v5282_v11  ;;  %5791 = vmatpush1.bf16.msk.msra.mxu1 %vm6656_vm9, %v5282_v11  ;;  %v5961_v11 = vunpack.i.l.bf16 %v7151_v23  ;;  %v6119_v23 = vld [vmem:[%s10206_s5 + $0x4c] ss:$12 sps:$4 sm:$0xff]  }
 0x3b5   : > { %1969 = vmatprep.subr.bf16.mxu0 %v7119_v46  ;;  %5776 = vmatprep.subr.bf16.mxu1 %v7119_v46 }
 0x3b8   : > { %1970 = vmatpush2.bf16.msra.mxu0 %v7116_v44  ;;  %5792 = vmatpush2.bf16.msra.mxu1 %v7116_v44 }
 0x3b9   : > { %1971 = vmatprep.subr.bf16.mxu0 %v7108_v59  ;;  %5777 = vmatprep.subr.bf16.mxu1 %v7108_v59  ;;  %v6101_v59 = vld [vmem:[%s10206_s5] ss:$12 sps:$4 sm:$0xff]  }
 0x3bc   : > { %1972 = vmatpush2.bf16.msra.mxu0 %v7104_v58  ;;  %5793 = vmatpush2.bf16.msra.mxu1 %v7104_v58 }
 0x3bd   : > { %1973 = vmatprep.subr.bf16.mxu0 %v7097_v21  ;;  %5778 = vmatprep.subr.bf16.mxu1 %v7097_v21  ;;  %v6051_v21 = vunpack.i.l.bf16 %v7177_v20 }
 0x3c0   : > { %1974 = vmatpush2.bf16.msra.mxu0 %v7092_v3  ;;  %5794 = vmatpush2.bf16.msra.mxu1 %v7092_v3  ;;  %v6071_v3 = vunpack.i.l.bf16 %v6070_v34 }
 0x3c1   : > { %1975 = vmatprep.subr.bf16.mxu0 %v7085_v9  ;;  %5779 = vmatprep.subr.bf16.mxu1 %v7085_v9  ;;  %v6072_v9 = vunpack.i.h.bf16 %v6070_v34  ;;  %v5306_v34 = vpack.c.bf16 %v1338_v51, %v1337_v50  ;;  %v6142_v50 = vld [vmem:[%s10206_s5 + $0x38] ss:$12 sps:$4 sm:$0xff]  }
 0x3c2   : > { %v6143_v51 = vld [vmem:[%s10206_s5 + $0xc4] ss:$12 sps:$4 sm:$0xff]  }
 0x3c4   : > { %1976 = vmatpush2.bf16.msra.mxu0 %v7080_v18  ;;  %5795 = vmatpush2.bf16.msra.mxu1 %v7080_v18  ;;  %v6061_v18 = vunpack.i.l.bf16 %v6060_v4 }
 0x3c5   : > { %1977 = vmatprep.subr.bf16.mxu0 %v7073_v29  ;;  %5780 = vmatprep.subr.bf16.mxu1 %v7073_v29  ;;  %v6062_v29 = vunpack.i.h.bf16 %v6060_v4  ;;  %v1335_v4 = vsel %vm434_vm1, %v5981_v7, %v5991_v41  ;;  %v6131_v41 = vld [vmem:[%s10206_s5 + $0x7c] ss:$12 sps:$4 sm:$0xff]   ;;  %v6139_v7 = vld [vmem:[%s10206_s5 + $0xac] ss:$12 sps:$4 sm:$0xff]  }
 0x3c6   : > { %v1343_v44 = vsel %vm434_vm1, %v6061_v18, %v6071_v3 }
 0x3c7   : > { %v1360_v58 = vsel %vm434_vm1, %v6072_v9, %v6062_v29  ;;  %v1344_v46 = vsel %vm434_vm1, %v6062_v29, %v6072_v9  ;;  %v1336_v9 = vsel %vm434_vm1, %v5982_v40, %v5992_v15  ;;  %v6118_v29 = vld [vmem:[%s10206_s5 + $0x138] ss:$12 sps:$4 sm:$0xff]   ;;  %v6130_v15 = vld [vmem:[%s10206_s5 + $0x168] ss:$12 sps:$4 sm:$0xff]   ;;  %v6138_v40 = vld [vmem:[%s10206_s5 + $0x20] ss:$12 sps:$4 sm:$0xff]  }
 0x3c8   : > { %1978 = vmatpush2.bf16.msra.mxu0 %v7068_v13  ;;  %5796 = vmatpush2.bf16.msra.mxu1 %v7068_v13  ;;  %v6052_v13 = vunpack.i.h.bf16 %v7177_v20  ;;  %v6032_v20 = vunpack.i.h.bf16 %v7173_v31  ;;  %v5288_v31 = vpack.c.bf16 %v1344_v46, %v1343_v44  ;;  %v5312_v46 = vpack.c.bf16 %v1336_v9, %v1335_v4  ;;  %v6156_v4 = vld [vmem:[%s10206_s5 + $0xb0] ss:$12 sps:$4 sm:$0xff]   ;;  %v6157_v9 = vld [vmem:[%s10206_s5 + $0xc8] ss:$12 sps:$4 sm:$0xff]  }
 0x3c9   : > { %1979 = vmatprep.subr.bf16.mxu0 %v7061_v42  ;;  %5781 = vmatprep.subr.bf16.mxu1 %v7061_v42  ;;  %v1359_v42 = vsel %vm434_vm1, %v6071_v3, %v6061_v18  ;;  %v5309_v3 = vpack.c.bf16 %v1352_v6, %v1351_v63  ;;  %v10387_v18 = vld [vmem:[#allocation39_spill] sm:$0xff] }
 0x3ca   : > { %v1356_v53 = vsel %vm434_vm1, %v6032_v20, %v6022_v17  ;;  %v1340_v10 = vsel %vm434_vm1, %v6022_v17, %v6032_v20  ;;  %v10389_v20 = vld [vmem:[#allocation37_spill] sm:$0xff]  ;;  %v10390_v17 = vld [vmem:[#allocation36_spill] sm:$0xff] }
 0x3cb   : > { %v5297_v47 = vpack.c.bf16 %v1356_v53, %v1355_v45  ;;  %v5300_v56 = vpack.c.bf16 %v1340_v10, %v1339_v12  ;;  %v5932_v24 = vunpack.i.h.bf16 %v10389_v20  ;;  %v5922_v32 = vunpack.i.h.bf16 %v10390_v17  ;;  %v6124_v45 = vld [vmem:[%s10206_s5 + $0x150] ss:$12 sps:$4 sm:$0xff]   ;;  %v6149_v63 = vld [vmem:[%s10206_s5 + $0xd8] ss:$12 sps:$4 sm:$0xff]   ;;  %v6150_v6 = vld [vmem:[%s10206_s5 + $0x68] ss:$12 sps:$4 sm:$0xff]  }
 0x3cc   : > { %1980 = vmatpush2.bf16.msra.mxu0 %v7056_v0  ;;  %5797 = vmatpush2.bf16.msra.mxu1 %v7056_v0  ;;  %v6041_v0 = vunpack.i.l.bf16 %v7175_v55  ;;  %v6125_v53 = vld [vmem:[%s10206_s5 + $0x64] ss:$12 sps:$4 sm:$0xff]  }
 0x3cd   : > { %1981 = vmatprep.subr.bf16.mxu0 %v7049_v39  ;;  %5782 = vmatprep.subr.bf16.mxu1 %v7049_v39  ;;  %v6042_v39 = vunpack.i.h.bf16 %v7175_v55  ;;  %v6107_v55 = vld [vmem:[%s10206_s5 + $0x1c] ss:$12 sps:$4 sm:$0xff]   ;;  %v1346_v16 = vsel %vm434_vm1, %v5932_v24, %v5922_v32  ;;  %v1330_v10 = vsel %vm434_vm1, %v5922_v32, %v5932_v24 }
 0x3ce   : > { %v1357_v49 = vsel %vm434_vm1, %v6051_v21, %v6041_v0  ;;  %v1341_v28 = vsel %vm434_vm1, %v6041_v0, %v6051_v21  ;;  %v5951_v21 = vunpack.i.l.bf16 %v10387_v18  ;;  %v10388_v0 = vld [vmem:[#allocation38_spill] sm:$0xff] }
 0x3cf   : > { %v1358_v35 = vsel %vm434_vm1, %v6052_v13, %v6042_v39  ;;  %v1342_v22 = vsel %vm434_vm1, %v6042_v39, %v6052_v13  ;;  %v5952_v13 = vunpack.i.h.bf16 %v10387_v18  ;;  %v6121_v39 = vld [vmem:[%s10206_s5 + $0x154] ss:$12 sps:$4 sm:$0xff]   ;;  %v5941_v44 = vunpack.i.l.bf16 %v10388_v0 }
 0x3d0   : > { %1982 = vmatpush2.bf16.msra.mxu0 %v7044_v27  ;;  %5798 = vmatpush2.bf16.msra.mxu1 %v7044_v27  ;;  %v5285_v27 = vpack.c.bf16 %v1360_v58, %v1359_v42  ;;  %v5294_v1 = vpack.c.bf16 %v1342_v22, %v1341_v28  ;;  %v1349_v42 = vsel %vm434_vm1, %v5971_v2, %v5961_v11  ;;  %v6123_v22 = vld [vmem:[%s10206_s5 + $0x48] ss:$12 sps:$4 sm:$0xff]  }
 0x3d1   : > { %1983 = vmatprep.subr.bf16.mxu0 %v7037_v60  ;;  %5783 = vmatprep.subr.bf16.mxu1 %v7037_v60  ;;  %v6104_v60 = vld [vmem:[%s10206_s5 + $0x108] ss:$12 sps:$4 sm:$0xff]   ;;  %v1350_v58 = vsel %vm434_vm1, %v5972_v33, %v5962_v25 }
 0x3d2   : > { %v6161_v18 = vld [vmem:[%s10206_s5 + $0x128] ss:$12 sps:$4 sm:$0xff]  }
 0x3d4   : > { %1984 = vmatpush2.bf16.msra.mxu0 %v7033_v19  ;;  %5799 = vmatpush2.bf16.msra.mxu1 %v7033_v19  ;;  %v5291_v19 = vpack.c.bf16 %v1358_v35, %v1357_v49  ;;  %v5931_v49 = vunpack.i.l.bf16 %v10389_v20  ;;  %v1347_v35 = vsel %vm434_vm1, %v5951_v21, %v5941_v44 }
 0x3d5   : > { %5286 = vmatprep.subr.msk.bf16.mxu1 %vm6608_vm3, %v5285_v27  ;;  %v1333_v27 = vsel %vm434_vm1, %v5961_v11, %v5971_v2  ;;  %v6147_v2 = vld [vmem:[%s10206_s5 + $0xdc] ss:$12 sps:$4 sm:$0xff]  }
 0x3d6   : > { %v6153_v11 = vld [vmem:[%s10206_s5 + $0xf0] ss:$12 sps:$4 sm:$0xff]  }
 0x3d7   : > { %1986 = vmatmul.mubr.bf16.vlgmr.msra.gmra.mxu0 %v6101_v59  ;;  %2096 = vmatmul.mubr.bf16.vlgmr.msra.gmra.mxu1 %v6104_v60  ;;  %v5942_v59 = vunpack.i.h.bf16 %v10388_v0  ;;  %v1334_v60 = vsel %vm434_vm1, %v5962_v25, %v5972_v33  ;;  %v6146_v33 = vld [vmem:[%s10206_s5 + $0x50] ss:$12 sps:$4 sm:$0xff]   ;;  %v6151_v25 = vld [vmem:[%s10206_s5 + $0xf4] ss:$12 sps:$4 sm:$0xff]  }
 0x3d8   : > { %1995 = vmatprep.mubr.bf16.mxu0 %v6107_v55  ;;  %5289 = vmatpush1.bf16.msk.msra.mxu1 %vm6620_vm5, %v5288_v31  ;;  %v5315_v55 = vpack.c.bf16 %v1350_v58, %v1349_v42  ;;  %v5921_v31 = vunpack.i.l.bf16 %v10390_v17  ;;  %v5318_v28 = vpack.c.bf16 %v1334_v60, %v1333_v27  ;;  %v6164_v42 = vld [vmem:[%s10206_s5 + $0x170] ss:$12 sps:$4 sm:$0xff]  }
 0x3d9   : > { %2105 = vmatprep.mubr.bf16.mxu1 %v6109_v57  ;;  %5292 = vmatprep.subr.msk.bf16.mxu1 %vm6608_vm3, %v5291_v19  ;;  %v1348_v57 = vsel %vm434_vm1, %v5952_v13, %v5942_v59  ;;  %v1331_v19 = vsel %vm434_vm1, %v5941_v44, %v5951_v21  ;;  %v1332_v37 = vsel %vm434_vm1, %v5942_v59, %v5952_v13  ;;  %v6162_v13 = vld [vmem:[%s10206_s5 + $0x140] ss:$12 sps:$4 sm:$0xff]   ;;  %v6163_v21 = vld [vmem:[%s10206_s5 + $0x158] ss:$12 sps:$4 sm:$0xff]  }
 0x3da   : > { %v5321_v61 = vpack.c.bf16 %v1348_v57, %v1347_v35  ;;  %v1345_v48 = vsel %vm434_vm1, %v5931_v49, %v5921_v31  ;;  %v1329_v12 = vsel %vm434_vm1, %v5921_v31, %v5931_v49 }
 0x3dc   : > { %5295 = vmatpush1.bf16.msk.msra.mxu1 %vm6620_vm5, %v5294_v1  ;;  %v6127_v1 = vld [vmem:[%s10206_s5 + $0x16c] ss:$12 sps:$4 sm:$0xff]  }
 0x3dd   : > { %5298 = vmatprep.subr.msk.bf16.mxu1 %vm6608_vm3, %v5297_v47  ;;  %v5327_v47 = vpack.c.bf16 %v1346_v16, %v1345_v48 }
 0x3df   : > { %1996 = vmatmul.mubr.bf16.gmra.mxu0 %v6111_v38  ;;  %2106 = vmatmul.mubr.bf16.gmra.mxu1 %v6112_v62  ;;  %v5324_v38 = vpack.c.bf16 %v1332_v37, %v1331_v19  ;;  %v5330_v62 = vpack.c.bf16 %v1330_v10, %v1329_v12  ;;  %v10393_v12 = vld [vmem:[#allocation5_spill] sm:$0xff] }
 0x3e0   : > { %2005 = vmatprep.mubr.bf16.mxu0 %v6113_v8  ;;  %5301 = vmatpush1.bf16.msk.msra.mxu1 %vm6620_vm5, %v5300_v56  ;;  %v6129_v8 = vld [vmem:[%s10206_s5 + $0x60] ss:$12 sps:$4 sm:$0xff]   ;;  %v6141_v56 = vld [vmem:[%s10206_s5 + $0xa8] ss:$12 sps:$4 sm:$0xff]  }
 0x3e1   : > { %2115 = vmatprep.mubr.bf16.mxu1 %v6115_v54  ;;  %5304 = vmatprep.subr.msk.bf16.mxu1 %vm6608_vm3, %v5303_v36  ;;  %v6135_v54 = vld [vmem:[%s10206_s5 + $0x94] ss:$12 sps:$4 sm:$0xff]  }
 0x3e2   : > { %v6145_v36 = vld [vmem:[%s10206_s5 + $0xc0] ss:$12 sps:$4 sm:$0xff]  }
 0x3e4   : > { %5307 = vmatpush1.bf16.msk.msra.mxu1 %vm6620_vm5, %v5306_v34  ;;  %v6154_v34 = vld [vmem:[%s10206_s5 + $0x80] ss:$12 sps:$4 sm:$0xff]  }
 0x3e5   : > { %5310 = vmatprep.subr.msk.bf16.mxu1 %vm6608_vm3, %v5309_v3  ;;  %v6158_v3 = vld [vmem:[%s10206_s5 + $0xe0] ss:$12 sps:$4 sm:$0xff]  }
 0x3e7   : > { %2006 = vmatmul.mubr.bf16.gmra.mxu0 %v6117_v43  ;;  %2116 = vmatmul.mubr.bf16.gmra.mxu1 %v6118_v29  ;;  %v6155_v43 = vld [vmem:[%s10206_s5 + $0x98] ss:$12 sps:$4 sm:$0xff]  }
 0x3e8   : > { %2015 = vmatprep.mubr.bf16.mxu0 %v6119_v23  ;;  %5313 = vmatpush1.bf16.msk.msra.mxu1 %vm6620_vm5, %v5312_v46  ;;  %v6159_v29 = vld [vmem:[%s10206_s5 + $0xf8] ss:$12 sps:$4 sm:$0xff]   ;;  %v6160_v23 = vld [vmem:[%s10206_s5 + $0x110] ss:$12 sps:$4 sm:$0xff]  }
 0x3e9   : > { %2125 = vmatprep.mubr.bf16.mxu1 %v6121_v39  ;;  %5316 = vmatprep.subr.msk.bf16.mxu1 %vm6608_vm3, %v5315_v55 }
 0x3ec   : > { %5319 = vmatpush1.bf16.msk.msra.mxu1 %vm6620_vm5, %v5318_v28 }
 0x3ed   : > { %5322 = vmatprep.subr.msk.bf16.mxu1 %vm6608_vm3, %v5321_v61 }
 0x3ef   : > { %2016 = vmatmul.mubr.bf16.gmra.mxu0 %v6123_v22  ;;  %2126 = vmatmul.mubr.bf16.gmra.mxu1 %v6124_v45  ;;  %v10392_v45 = vld [vmem:[#allocation4_spill] sm:$0xff] }
 0x3f0   : > { %2025 = vmatprep.mubr.bf16.mxu0 %v6125_v53  ;;  %5325 = vmatpush1.bf16.msk.msra.mxu1 %vm6620_vm5, %v5324_v38 }
 0x3f1   : > { %2135 = vmatprep.mubr.bf16.mxu1 %v6127_v1  ;;  %5328 = vmatprep.subr.msk.bf16.mxu1 %vm6608_vm3, %v5327_v47 }
 0x3f4   : > { %5331 = vmatpush1.bf16.msk.msra.mxu1 %vm6620_vm5, %v5330_v62 }
 0x3f7   : > { %2026 = vmatmul.mubr.bf16.gmra.mxu0 %v6129_v8  ;;  %2136 = vmatmul.mubr.bf16.gmra.mxu1 %v6130_v15 }
 0x3f8   : > { %2035 = vmatprep.mubr.bf16.mxu0 %v6131_v41  ;;  %2178 = vmatprep.mubr.bf16.mxu1 %v10391_v26 }
 0x3ff   : > { %2036 = vmatmul.mubr.bf16.gmra.mxu0 %v6133_v14  ;;  %2179 = vmatmul.mubr.bf16.vlgmr.msra.gmra.mxu1 %v6134_v52 }
 0x400   : > { %2045 = vmatprep.mubr.bf16.mxu0 %v6135_v54  ;;  %2188 = vmatprep.mubr.bf16.mxu1 %v10391_v26 }
 0x407   : > { %2046 = vmatmul.mubr.bf16.gmra.mxu0 %v6137_v30  ;;  %2189 = vmatmul.mubr.bf16.gmra.mxu1 %v6138_v40 }
 0x408   : > { %2055 = vmatprep.mubr.bf16.mxu0 %v6139_v7  ;;  %2198 = vmatprep.mubr.bf16.mxu1 %v10391_v26 }
 0x40f   : > { %2056 = vmatmul.mubr.bf16.gmra.mxu0 %v6141_v56  ;;  %2199 = vmatmul.mubr.bf16.gmra.mxu1 %v6142_v50  ;;  %v10397_v50 = vld [vmem:[#allocation6_spill] sm:$0xff] }
 0x410   : > { %2065 = vmatprep.mubr.bf16.mxu0 %v6143_v51  ;;  %2208 = vmatprep.mubr.bf16.mxu1 %v10391_v26 }
 0x417   : > { %2066 = vmatmul.mubr.bf16.gmra.mxu0 %v6145_v36  ;;  %2209 = vmatmul.mubr.bf16.gmra.mxu1 %v6146_v33 }
 0x418   : > { %2075 = vmatprep.mubr.bf16.mxu0 %v6147_v2  ;;  %2218 = vmatprep.mubr.bf16.mxu1 %v10391_v26 }
 0x41f   : > { %2076 = vmatmul.mubr.bf16.gmra.mxu0 %v6149_v63  ;;  %2219 = vmatmul.mubr.bf16.gmra.mxu1 %v6150_v6 }
 0x420   : > { %2085 = vmatprep.mubr.bf16.mxu0 %v6151_v25  ;;  %2228 = vmatprep.mubr.bf16.mxu1 %v10391_v26 }
 0x427   : > { %2086 = vmatmul.mubr.bf16.gmra.mxu0 %v6153_v11  ;;  %2229 = vmatmul.mubr.bf16.gmra.mxu1 %v6154_v34 }
 0x428   : > { %2238 = vmatprep.mubr.bf16.mxu1 %v10391_v26 }
 0x42f   : > { %2239 = vmatmul.mubr.bf16.gmra.mxu1 %v6155_v43 }
 0x430   : > { %2248 = vmatprep.mubr.bf16.mxu1 %v10391_v26 }
 0x437   : > { %2249 = vmatmul.mubr.bf16.gmra.mxu1 %v6156_v4  ;;  %v10400_v4 = vld [vmem:[#allocation7_spill] sm:$0xff] }
 0x438   : > { %2258 = vmatprep.mubr.bf16.mxu1 %v10391_v26 }
 0x43f   : > { %2259 = vmatmul.mubr.bf16.gmra.mxu1 %v6157_v9 }
 0x440   : > { %2268 = vmatprep.mubr.bf16.mxu1 %v10391_v26 }
 0x447   : > { %2269 = vmatmul.mubr.bf16.gmra.mxu1 %v6158_v3 }
 0x448   : > { %2278 = vmatprep.mubr.bf16.mxu1 %v10391_v26 }
 0x44f   : > { %2279 = vmatmul.mubr.bf16.gmra.mxu1 %v6159_v29 }
 0x450   : > { %2288 = vmatprep.mubr.bf16.mxu1 %v10391_v26 }
 0x457   : > { %2289 = vmatmul.mubr.bf16.gmra.mxu1 %v6160_v23 }
 0x458   : > { %2298 = vmatprep.mubr.bf16.mxu1 %v10391_v26 }
 0x45f   : > { %2299 = vmatmul.mubr.bf16.gmra.mxu1 %v6161_v18 }
 0x460   : > { %2308 = vmatprep.mubr.bf16.mxu1 %v10391_v26 }
 0x467   : > { %2309 = vmatmul.mubr.bf16.gmra.mxu1 %v6162_v13 }
 0x468   : > { %2318 = vmatprep.mubr.bf16.mxu1 %v10391_v26 }
 0x46f   : > { %2319 = vmatmul.mubr.bf16.gmra.mxu1 %v6163_v21 }
 0x470   : > { %2328 = vmatprep.mubr.bf16.mxu1 %v10391_v26 }
 0x477   : > { %2329 = vmatmul.mubr.bf16.gmra.mxu1 %v6164_v42 }
 0x478   : > { %4597 = vmatprep.mubr.bf16.mxu1 %v6212_v5 }
 0x497   : > { %v7637_v58 = vpop.f32.mrf.mxu1  ;;  %v1987_v31 = vpop.f32.mrf.mxu0 }
 0x498   : > { %v1988_v53 = vadd.f32 %v1987_v31, %v10392_v45 }
 0x499   : > { %v7639_v39 = vpop.f32.mrf.mxu1  ;;  %v1989_v19 = vpop.f32.mrf.mxu0 }
 0x49a   : > { %v1990_v8 = vadd.f32 %v1989_v19, %v10392_v45  ;;  %v10403_v45 = vld [vmem:[#allocation8_spill] sm:$0xff] }
 0x49b   : > { %v7641_v0 = vpop.f32.mrf.mxu1  ;;  %v1991_v48 = vpop.f32.mrf.mxu0 }
 0x49c   : > { %v1992_v10 = vadd.f32 %v1991_v48, %v10393_v12 }
 0x49d   : > { %v7643_v59 = vpop.f32.mrf.mxu1  ;;  %v1993_v41 = vpop.f32.mrf.mxu0 }
 0x49e   : > { %v1994_v54 = vadd.f32 %v1993_v41, %v10393_v12  ;;  %v10406_v41 = vld [vmem:[#allocation9_spill] sm:$0xff] }
 0x49f   : > { %v7645_v44 = vpop.f32.mrf.mxu1  ;;  %v1997_v30 = vpop.f32.mrf.mxu0 }
 0x4a0   : > { %v1998_v51 = vadd.f32 %v1997_v30, %v10397_v50 }
 0x4a1   : > { %v7647_v46 = vpop.f32.mrf.mxu1  ;;  %v1999_v36 = vpop.f32.mrf.mxu0 }
 0x4a2   : > { %v2000_v6 = vadd.f32 %v1999_v36, %v10397_v50 }
 0x4a3   : > { %v7649_v27 = vpop.f32.mrf.mxu1  ;;  %v2001_v25 = vpop.f32.mrf.mxu0 }
 0x4a4   : > { %v2002_v9 = vadd.f32 %v2001_v25, %v10400_v4 }
 0x4a5   : > { %v7651_v60 = vpop.f32.mrf.mxu1  ;;  %v2003_v3 = vpop.f32.mrf.mxu0 }
 0x4a6   : > { %v2004_v13 = vadd.f32 %v2003_v3, %v10400_v4 }
 0x4a7   : > { %v7653_v55 = vpop.f32.mrf.mxu1  ;;  %v2007_v21 = vpop.f32.mrf.mxu0 }
 0x4a9   : > { %v7655_v20 = vpop.f32.mrf.mxu1  ;;  %v2009_v48 = vpop.f32.mrf.mxu0 }
 0x4aa   : > { %v2010_v12 = vadd.f32 %v2009_v48, %v10403_v45 }
 0x4ab   : > { %v7657_v24 = vpop.f32.mrf.mxu1 }
 0x4ad   : > { %v7659_v49 = vpop.f32.mrf.mxu1 }
 0x4af   : > { %v7661_v35 = vpop.f32.mrf.mxu1 }
 0x4b1   : > { %v7663_v57 = vpop.f32.mrf.mxu1 }
 0x4b3   : > { %v7665_v17 = vpop.f32.mrf.mxu1 }
 0x4b5   : > { %v7667_v32 = vpop.f32.mrf.mxu1 }
 0x4b7   : > { %v7669_v28 = vpop.f32.mrf.mxu1 }
 0x4b9   : > { %v7671_v22 = vpop.f32.mrf.mxu1 }
 0x4bb   : > { %v7673_v37 = vpop.f32.mrf.mxu1 }
 0x4bd   : > { %v7675_v61 = vpop.f32.mrf.mxu1 }
 0x4bf   : > { %v2180_v16 = vpop.f32.mrf.mxu1 }
 0x4c0   : > { %v2181_v1 = vadd.f32 %v2180_v16, %v1988_v53  ;;  %v2008_v53 = vadd.f32 %v2007_v21, %v10403_v45  ;;  %v10412_v21 = vld [vmem:[#allocation11_spill] sm:$0xff] }
 0x4c1   : > { %v2182_v38 = vpop.f32.mrf.mxu1 }
 0x4c2   : > { %v7679_v47 = vmax.f32 %v2181_v1, 0.0  ;;  %v2183_v26 = vadd.f32 %v2182_v38, %v1990_v8 }
 0x4c3   : > { %v2184_v62 = vpop.f32.mrf.mxu1 }
 0x4c4   : > { %10394 = vst [vmem:[#allocation39_spill] sm:$0xff] %v7679_v47  ;;  %v2185_v15 = vadd.f32 %v2184_v62, %v1992_v10  ;;  %2403 = vrot.lane.b32.xlu1 %v7679_v47, %s6323_s25  ;;  %v7691_v40 = vmax.f32 %v2183_v26, 0.0  ;;  %v2011_v10 = vpop.f32.mrf.mxu0 }
 0x4c5   : > { %v2186_v52 = vpop.f32.mrf.mxu1  ;;  %v2012_v26 = vadd.f32 %v2011_v10, %v10406_v41 }
 0x4c6   : > { %v7684_v14 = vmax.f32 %v2185_v15, 0.0  ;;  %10396 = vst [vmem:[#allocation37_spill] sm:$0xff] %v7691_v40  ;;  %v2187_v7 = vadd.f32 %v2186_v52, %v1994_v54  ;;  %v2013_v52 = vpop.f32.mrf.mxu0 }
 0x4c7   : > { %v2190_v56 = vpop.f32.mrf.mxu1 }
 0x4c8   : > { %10395 = vst [vmem:[#allocation38_spill] sm:$0xff] %v7684_v14  ;;  %2405 = vrot.lane.b32.xlu0 %v7684_v14, %s6323_s25  ;;  %2659 = vrot.lane.b32.xlu1 %v7679_v47, %s6322_s24  ;;  %v7698_v33 = vmax.f32 %v2187_v7, 0.0  ;;  %v2191_v2 = vadd.f32 %v2190_v56, %v1998_v51  ;;  %v2014_v56 = vadd.f32 %v2013_v52, %v10406_v41  ;;  %v2017_v50 = vpop.f32.mrf.mxu0 }
 0x4c9   : > { %v2192_v63 = vpop.f32.mrf.mxu1 }
 0x4ca   : > { %10398 = vst [vmem:[#allocation36_spill] sm:$0xff] %v7698_v33  ;;  %v7705_v11 = vmax.f32 %v2191_v2, 0.0  ;;  %v2193_v34 = vadd.f32 %v2192_v63, %v2000_v6  ;;  %v10409_v63 = vld [vmem:[#allocation10_spill] sm:$0xff]  ;;  %v2019_v25 = vpop.f32.mrf.mxu0 }
 0x4cb   : > { %v2194_v43 = vpop.f32.mrf.mxu1  ;;  %v2018_v6 = vadd.f32 %v2017_v50, %v10409_v63 }
 0x4cc   : > { %2661 = vrot.lane.b32.xlu0 %v7684_v14, %s6322_s24  ;;  %2467 = vrot.lane.b32.xlu1 %v7691_v40, %s6323_s25  ;;  %10399 = vst [vmem:[#allocation4_spill] sm:$0xff] %v7705_v11  ;;  %v7712_v29 = vmax.f32 %v2193_v34, 0.0  ;;  %v2195_v23 = vadd.f32 %v2194_v43, %v2002_v9  ;;  %v2020_v9 = vadd.f32 %v2019_v25, %v10409_v63  ;;  %v2021_v3 = vpop.f32.mrf.mxu0 }
 0x4cd   : > { %v2196_v18 = vpop.f32.mrf.mxu1 }
 0x4ce   : > { %10401 = vst [vmem:[#allocation5_spill] sm:$0xff] %v7712_v29  ;;  %v7719_v42 = vmax.f32 %v2195_v23, 0.0  ;;  %v2197_v31 = vadd.f32 %v2196_v18, %v2004_v13 }
 0x4cf   : > { %v2200_v19 = vpop.f32.mrf.mxu1 }
 0x4d0   : > { %2469 = vrot.lane.b32.xlu0 %v7698_v33, %s6323_s25  ;;  %2723 = vrot.lane.b32.xlu1 %v7691_v40, %s6322_s24  ;;  %10402 = vst [vmem:[#allocation6_spill] sm:$0xff] %v7719_v42  ;;  %v7726_v16 = vmax.f32 %v2197_v31, 0.0  ;;  %v2201_v1 = vadd.f32 %v2200_v19, %v2008_v53  ;;  %v2022_v31 = vadd.f32 %v2021_v3, %v10412_v21  ;;  %v2023_v19 = vpop.f32.mrf.mxu0 }
 0x4d1   : > { %v2202_v38 = vpop.f32.mrf.mxu1 }
 0x4d2   : > { %10404 = vst [vmem:[#allocation7_spill] sm:$0xff] %v7726_v16  ;;  %v7733_v62 = vmax.f32 %v2201_v1, 0.0  ;;  %v2203_v8 = vadd.f32 %v2202_v38, %v2010_v12  ;;  %v2024_v1 = vadd.f32 %v2023_v19, %v10412_v21  ;;  %v2027_v38 = vpop.f32.mrf.mxu0 }
 0x4d3   : > { %v2204_v15 = vpop.f32.mrf.mxu1 }
 0x4d4   : > { %2725 = vrot.lane.b32.xlu0 %v7698_v33, %s6322_s24  ;;  %2407 = vrot.lane.b32.xlu1 %v7705_v11, %s6323_s25  ;;  %10405 = vst [vmem:[#allocation8_spill] sm:$0xff] %v7733_v62  ;;  %v7740_v54 = vmax.f32 %v2203_v8, 0.0  ;;  %v2205_v30 = vadd.f32 %v2204_v15, %v2012_v26  ;;  %v10415_v15 = vld [vmem:[#allocation12_spill] sm:$0xff]  ;;  %v2029_v26 = vpop.f32.mrf.mxu0  ;;  %v10464_v33 = vld [vmem:[#allocation31_spill] sm:$0xff] }
 0x4d5   : > { %v2206_v7 = vpop.f32.mrf.mxu1  ;;  %v2028_v41 = vadd.f32 %v2027_v38, %v10415_v15 }
 0x4d6   : > { %10407 = vst [vmem:[#allocation9_spill] sm:$0xff] %v7740_v54  ;;  %v7747_v51 = vmax.f32 %v2205_v30, 0.0  ;;  %v2207_v36 = vadd.f32 %v2206_v7, %v2014_v56  ;;  %v2030_v56 = vadd.f32 %v2029_v26, %v10415_v15  ;;  %v2031_v50 = vpop.f32.mrf.mxu0 }
 0x4d7   : > { %v2210_v2 = vpop.f32.mrf.mxu1 }
 0x4d8   : > { %2471 = vrot.lane.b32.xlu0 %v7712_v29, %s6323_s25  ;;  %2663 = vrot.lane.b32.xlu1 %v7705_v11, %s6322_s24  ;;  %10408 = vst [vmem:[#allocation40_spill] sm:$0xff] %v7747_v51  ;;  %v7754_v34 = vmax.f32 %v2207_v36, 0.0  ;;  %v2211_v43 = vadd.f32 %v2210_v2, %v2018_v6  ;;  %v10418_v6 = vld [vmem:[#allocation13_spill] sm:$0xff]  ;;  %v10460_v11 = vld [vmem:[#allocation34_spill] sm:$0xff] }
 0x4d9   : > { %v2212_v4 = vpop.f32.mrf.mxu1  ;;  %v2032_v25 = vadd.f32 %v2031_v50, %v10418_v6  ;;  %v10423_v50 = vld [vmem:[#allocation15_spill] sm:$0xff] }
 0x4da   : > { %10410 = vst [vmem:[#allocation10_spill] sm:$0xff] %v7754_v34  ;;  %v7761_v23 = vmax.f32 %v2211_v43, 0.0  ;;  %v2213_v18 = vadd.f32 %v2212_v4, %v2020_v9  ;;  %v2033_v43 = vpop.f32.mrf.mxu0 }
 0x4db   : > { %v2214_v13 = vpop.f32.mrf.mxu1 }
 0x4dc   : > { %2409 = vrot.lane.b32.xlu0 %v7719_v42, %s6323_s25  ;;  %2727 = vrot.lane.b32.xlu1 %v7712_v29, %s6322_s24  ;;  %10411 = vst [vmem:[#allocation41_spill] sm:$0xff] %v7761_v23  ;;  %v7768_v45 = vmax.f32 %v2213_v18, 0.0  ;;  %v2215_v53 = vadd.f32 %v2214_v13, %v2022_v31  ;;  %v2034_v18 = vadd.f32 %v2033_v43, %v10418_v6  ;;  %v2037_v13 = vpop.f32.mrf.mxu0 }
 0x4dd   : > { %v2216_v48 = vpop.f32.mrf.mxu1 }
 0x4de   : > { %10413 = vst [vmem:[#allocation11_spill] sm:$0xff] %v7768_v45  ;;  %v7775_v12 = vmax.f32 %v2215_v53, 0.0  ;;  %v2217_v10 = vadd.f32 %v2216_v48, %v2024_v1  ;;  %v10421_v53 = vld [vmem:[#allocation14_spill] sm:$0xff] }
 0x4df   : > { %v2220_v8 = vpop.f32.mrf.mxu1  ;;  %v2038_v48 = vadd.f32 %v2037_v13, %v10421_v53 }
 0x4e0   : > { %2665 = vrot.lane.b32.xlu0 %v7719_v42, %s6322_s24  ;;  %2473 = vrot.lane.b32.xlu1 %v7726_v16, %s6323_s25  ;;  %10414 = vst [vmem:[#allocation42_spill] sm:$0xff] %v7775_v12  ;;  %v7782_v52 = vmax.f32 %v2217_v10, 0.0  ;;  %v2221_v30 = vadd.f32 %v2220_v8, %v2028_v41  ;;  %v2039_v10 = vpop.f32.mrf.mxu0 }
 0x4e1   : > { %v2222_v7 = vpop.f32.mrf.mxu1  ;;  %v2040_v41 = vadd.f32 %v2039_v10, %v10421_v53 }
 0x4e2   : > { %10416 = vst [vmem:[#allocation12_spill] sm:$0xff] %v7782_v52  ;;  %v7789_v36 = vmax.f32 %v2221_v30, 0.0  ;;  %v2223_v2 = vadd.f32 %v2222_v7, %v2030_v56  ;;  %v2041_v7 = vpop.f32.mrf.mxu0 }
 0x4e3   : > { %v2224_v63 = vpop.f32.mrf.mxu1 }
 0x4e4   : > { %2729 = vrot.lane.b32.xlu0 %v7726_v16, %s6322_s24  ;;  %2411 = vrot.lane.b32.xlu1 %v7733_v62, %s6323_s25  ;;  %10417 = vst [vmem:[#allocation43_spill] sm:$0xff] %v7789_v36  ;;  %v7796_v4 = vmax.f32 %v2223_v2, 0.0  ;;  %v2225_v9 = vadd.f32 %v2224_v63, %v2032_v25  ;;  %v2042_v2 = vadd.f32 %v2041_v7, %v10423_v50  ;;  %v2043_v25 = vpop.f32.mrf.mxu0 }
 0x4e5   : > { %v2226_v3 = vpop.f32.mrf.mxu1 }
 0x4e6   : > { %10419 = vst [vmem:[#allocation13_spill] sm:$0xff] %v7796_v4  ;;  %v7803_v21 = vmax.f32 %v2225_v9, 0.0  ;;  %v2227_v31 = vadd.f32 %v2226_v3, %v2034_v18  ;;  %v2044_v9 = vadd.f32 %v2043_v25, %v10423_v50  ;;  %v2047_v13 = vpop.f32.mrf.mxu0 }
 0x4e7   : > { %v2230_v19 = vpop.f32.mrf.mxu1 }
 0x4e8   : > { %2475 = vrot.lane.b32.xlu0 %v7740_v54, %s6323_s25  ;;  %2667 = vrot.lane.b32.xlu1 %v7733_v62, %s6322_s24  ;;  %10420 = vst [vmem:[#allocation44_spill] sm:$0xff] %v7803_v21  ;;  %v7810_v1 = vmax.f32 %v2227_v31, 0.0  ;;  %v2231_v38 = vadd.f32 %v2230_v19, %v2038_v48  ;;  %v10424_v19 = vld [vmem:[#allocation16_spill] sm:$0xff] }
 0x4e9   : > { %v2232_v15 = vpop.f32.mrf.mxu1  ;;  %v2048_v53 = vadd.f32 %v2047_v13, %v10424_v19 }
 0x4ea   : > { %10422 = vst [vmem:[#allocation14_spill] sm:$0xff] %v7810_v1  ;;  %v2359_v8 = vmax.f32 %v2231_v38, 0.0  ;;  %v2233_v26 = vadd.f32 %v2232_v15, %v2040_v41  ;;  %v2049_v38 = vpop.f32.mrf.mxu0 }
 0x4eb   : > { %v2234_v56 = vpop.f32.mrf.mxu1  ;;  %v2050_v15 = vadd.f32 %v2049_v38, %v10424_v19 }
 0x4ec   : > { %2413 = vrot.lane.b32.xlu0 %v7747_v51, %s6323_s25  ;;  %2731 = vrot.lane.b32.xlu1 %v7740_v54, %s6322_s24  ;;  %v2360_v30 = vmax.f32 %v2233_v26, 0.0  ;;  %v2235_v63 = vadd.f32 %v2234_v56, %v2042_v2  ;;  %v10425_v56 = vld [vmem:[#allocation17_spill] sm:$0xff] }
 0x4ed   : > { %v2236_v43 = vpop.f32.mrf.mxu1 }
 0x4ee   : > { %v2361_v6 = vmax.f32 %v2235_v63, 0.0  ;;  %v2237_v3 = vadd.f32 %v2236_v43, %v2044_v9 }
 0x4ef   : > { %v2240_v31 = vpop.f32.mrf.mxu1 }
 0x4f0   : > { %2669 = vrot.lane.b32.xlu0 %v7747_v51, %s6322_s24  ;;  %2477 = vrot.lane.b32.xlu1 %v7754_v34, %s6323_s25  ;;  %v2362_v18 = vmax.f32 %v2237_v3, 0.0  ;;  %v2241_v48 = vadd.f32 %v2240_v31, %v2048_v53  ;;  %v10426_v31 = vld [vmem:[#allocation18_spill] sm:$0xff] }
 0x4f2   : > { %v2363_v10 = vmax.f32 %v2241_v48, 0.0 }
 0x4f4   : > { %2733 = vrot.lane.b32.xlu0 %v7754_v34, %s6322_s24  ;;  %2415 = vrot.lane.b32.xlu1 %v7761_v23, %s6323_s25 }
 0x4f8   : > { %2479 = vrot.lane.b32.xlu0 %v7768_v45, %s6323_s25  ;;  %2671 = vrot.lane.b32.xlu1 %v7761_v23, %s6322_s24 }
 0x4fc   : > { %2417 = vrot.lane.b32.xlu0 %v7775_v12, %s6323_s25  ;;  %2735 = vrot.lane.b32.xlu1 %v7768_v45, %s6322_s24 }
 0x500   : > { %2673 = vrot.lane.b32.xlu0 %v7775_v12, %s6322_s24  ;;  %2481 = vrot.lane.b32.xlu1 %v7782_v52, %s6323_s25 }
 0x504   : > { %2737 = vrot.lane.b32.xlu0 %v7782_v52, %s6322_s24  ;;  %2419 = vrot.lane.b32.xlu1 %v7789_v36, %s6323_s25 }
 0x508   : > { %2483 = vrot.lane.b32.xlu0 %v7796_v4, %s6323_s25  ;;  %2675 = vrot.lane.b32.xlu1 %v7789_v36, %s6322_s24 }
 0x50c   : > { %2421 = vrot.lane.b32.xlu0 %v7803_v21, %s6323_s25  ;;  %2739 = vrot.lane.b32.xlu1 %v7796_v4, %s6322_s24 }
 0x510   : > { %2677 = vrot.lane.b32.xlu0 %v7803_v21, %s6322_s24  ;;  %2485 = vrot.lane.b32.xlu1 %v7810_v1, %s6323_s25 }
 0x514   : > { %2741 = vrot.lane.b32.xlu0 %v7810_v1, %s6322_s24  ;;  %2423 = vrot.lane.b32.xlu1 %v2359_v8, %s6323_s25 }
 0x518   : > { %2679 = vrot.lane.b32.xlu1 %v2359_v8, %s6322_s24 }
 0x51c   : > { %2743 = vrot.lane.b32.xlu1 %v2360_v30, %s6322_s24 }
 0x533   : > { %2999 = vadd.xlane.f32.xlu0 %v2359_v8  ;;  %v2242_v8 = vpop.f32.mrf.mxu1 }
 0x534   : > { %v2243_v41 = vadd.f32 %v2242_v8, %v2050_v15 }
 0x535   : > { %v2244_v7 = vpop.f32.mrf.mxu1 }
 0x536   : > { %v2364_v26 = vmax.f32 %v2243_v41, 0.0 }
 0x537   : > { %v2246_v25 = vpop.f32.mrf.mxu1 }
 0x539   : > { %v2250_v13 = vpop.f32.mrf.mxu1 }
 0x540   : > { %3001 = vadd.xlane.f32.xlu1 %v2361_v6 }
 0x549   : > { %2487 = vrot.lane.b32.xlu0 %v2360_v30, %s6323_s25 }
 0x551   : > { %2489 = vrot.lane.b32.xlu1 %v2362_v18, %s6323_s25 }
 0x568   : > { %3287 = vadd.xlane.f32.xlu0 %v2360_v30  ;;  %v2051_v30 = vpop.f32.mrf.mxu0 }
 0x569   : > { %v2052_v50 = vadd.f32 %v2051_v30, %v10425_v56 }
 0x56b   : > { %v2245_v2 = vadd.f32 %v2244_v7, %v2052_v50  ;;  %v10427_v7 = vld [vmem:[#allocation19_spill] sm:$0xff] }
 0x56d   : > { %v2365_v63 = vmax.f32 %v2245_v2, 0.0 }
 0x575   : > { %3289 = vadd.xlane.f32.xlu1 %v2362_v18 }
 0x57e   : > { %2425 = vrot.lane.b32.xlu0 %v2361_v6, %s6323_s25 }
 0x582   : > { %2681 = vrot.lane.b32.xlu0 %v2361_v6, %s6322_s24  ;;  %v2053_v6 = vpop.f32.mrf.mxu0 }
 0x583   : > { %v2054_v43 = vadd.f32 %v2053_v6, %v10425_v56 }
 0x585   : > { %v2247_v9 = vadd.f32 %v2246_v25, %v2054_v43 }
 0x586   : > { %2745 = vrot.lane.b32.xlu0 %v2362_v18, %s6322_s24  ;;  %2427 = vrot.lane.b32.xlu1 %v2363_v10, %s6323_s25  ;;  %v2057_v18 = vpop.f32.mrf.mxu0 }
 0x587   : > { %v2366_v3 = vmax.f32 %v2247_v9, 0.0  ;;  %v2058_v19 = vadd.f32 %v2057_v18, %v10426_v31 }
 0x588   : > { %v2059_v48 = vpop.f32.mrf.mxu0 }
 0x589   : > { %v2251_v53 = vadd.f32 %v2250_v13, %v2058_v19  ;;  %v2060_v8 = vadd.f32 %v2059_v48, %v10426_v31  ;;  %v10428_v19 = vld [vmem:[#allocation20_spill] sm:$0xff] }
 0x58a   : > { %2683 = vrot.lane.b32.xlu1 %v2363_v10, %s6322_s24 }
 0x58b   : > { %v2367_v38 = vmax.f32 %v2251_v53, 0.0 }
 0x58e   : > { %2747 = vrot.lane.b32.xlu1 %v2364_v26, %s6322_s24 }
 0x5a5   : > { %3003 = vadd.xlane.f32.xlu0 %v2363_v10  ;;  %v2252_v10 = vpop.f32.mrf.mxu1 }
 0x5a6   : > { %v2253_v15 = vadd.f32 %v2252_v10, %v2060_v8  ;;  %v10429_v8 = vld [vmem:[#allocation21_spill] sm:$0xff] }
 0x5a7   : > { %v2254_v30 = vpop.f32.mrf.mxu1 }
 0x5a8   : > { %v2368_v41 = vmax.f32 %v2253_v15, 0.0 }
 0x5a9   : > { %v2256_v6 = vpop.f32.mrf.mxu1 }
 0x5ab   : > { %v2260_v18 = vpop.f32.mrf.mxu1 }
 0x5ad   : > { %v2262_v31 = vpop.f32.mrf.mxu1 }
 0x5af   : > { %v2264_v10 = vpop.f32.mrf.mxu1 }
 0x5b2   : > { %3005 = vadd.xlane.f32.xlu1 %v2365_v63 }
 0x5bb   : > { %2491 = vrot.lane.b32.xlu0 %v2364_v26, %s6323_s25 }
 0x5c3   : > { %2493 = vrot.lane.b32.xlu1 %v2366_v3, %s6323_s25 }
 0x5da   : > { %3291 = vadd.xlane.f32.xlu0 %v2364_v26  ;;  %v2061_v26 = vpop.f32.mrf.mxu0 }
 0x5db   : > { %v2062_v56 = vadd.f32 %v2061_v26, %v10427_v7 }
 0x5dd   : > { %v2255_v50 = vadd.f32 %v2254_v30, %v2062_v56 }
 0x5df   : > { %v2369_v2 = vmax.f32 %v2255_v50, 0.0 }
 0x5e7   : > { %3293 = vadd.xlane.f32.xlu1 %v2366_v3 }
 0x5f0   : > { %2429 = vrot.lane.b32.xlu0 %v2365_v63, %s6323_s25 }
 0x5f4   : > { %2685 = vrot.lane.b32.xlu0 %v2365_v63, %s6322_s24  ;;  %v2063_v63 = vpop.f32.mrf.mxu0 }
 0x5f5   : > { %v2064_v25 = vadd.f32 %v2063_v63, %v10427_v7  ;;  %v2266_v63 = vpop.f32.mrf.mxu1 }
 0x5f7   : > { %v2257_v43 = vadd.f32 %v2256_v6, %v2064_v25 }
 0x5f8   : > { %2749 = vrot.lane.b32.xlu0 %v2366_v3, %s6322_s24  ;;  %2431 = vrot.lane.b32.xlu1 %v2367_v38, %s6323_s25  ;;  %v2067_v3 = vpop.f32.mrf.mxu0 }
 0x5f9   : > { %v2370_v9 = vmax.f32 %v2257_v43, 0.0  ;;  %v2068_v53 = vadd.f32 %v2067_v3, %v10428_v19  ;;  %v10433_v3 = vld [vmem:[#allocation22_spill] sm:$0xff] }
 0x5fa   : > { %v2069_v13 = vpop.f32.mrf.mxu0 }
 0x5fc   : > { %2687 = vrot.lane.b32.xlu1 %v2367_v38, %s6322_s24  ;;  %v2071_v48 = vpop.f32.mrf.mxu0 }
 0x5fd   : > { %v2072_v15 = vadd.f32 %v2071_v48, %v10429_v8 }
 0x5fe   : > { %v2073_v7 = vpop.f32.mrf.mxu0 }
 0x5ff   : > { %v2265_v30 = vadd.f32 %v2264_v10, %v2072_v15  ;;  %v2074_v6 = vadd.f32 %v2073_v7, %v10429_v8 }
 0x600   : > { %2751 = vrot.lane.b32.xlu1 %v2368_v41, %s6322_s24 }
 0x601   : > { %v7860_v50 = vmax.f32 %v2265_v30, 0.0  ;;  %v2267_v43 = vadd.f32 %v2266_v63, %v2074_v6  ;;  %v10436_v30 = vld [vmem:[#allocation23_spill] sm:$0xff] }
 0x603   : > { %10431 = vst [vmem:[#allocation16_spill] sm:$0xff] %v7860_v50 }
 0x617   : > { %3007 = vadd.xlane.f32.xlu0 %v2367_v38  ;;  %v2261_v38 = vadd.f32 %v2260_v18, %v2068_v53 }
 0x619   : > { %v7854_v26 = vmax.f32 %v2261_v38, 0.0 }
 0x61b   : > { %10430 = vst [vmem:[#allocation15_spill] sm:$0xff] %v7854_v26 }
 0x624   : > { %3009 = vadd.xlane.f32.xlu1 %v2369_v2 }
 0x62d   : > { %2495 = vrot.lane.b32.xlu0 %v2368_v41, %s6323_s25 }
 0x635   : > { %2497 = vrot.lane.b32.xlu1 %v2370_v9, %s6323_s25 }
 0x64c   : > { %3295 = vadd.xlane.f32.xlu0 %v2368_v41  ;;  %v2070_v41 = vadd.f32 %v2069_v13, %v10428_v19 }
 0x64e   : > { %v2263_v56 = vadd.f32 %v2262_v31, %v2070_v41  ;;  %v7874_v31 = vmax.f32 %v2267_v43, 0.0 }
 0x650   : > { %v7867_v25 = vmax.f32 %v2263_v56, 0.0  ;;  %10434 = vst [vmem:[#allocation18_spill] sm:$0xff] %v7874_v31 }
 0x652   : > { %10432 = vst [vmem:[#allocation17_spill] sm:$0xff] %v7867_v25 }
 0x659   : > { %3297 = vadd.xlane.f32.xlu1 %v2370_v9 }
 0x662   : > { %2433 = vrot.lane.b32.xlu0 %v2369_v2, %s6323_s25 }
 0x666   : > { %2689 = vrot.lane.b32.xlu0 %v2369_v2, %s6322_s24  ;;  %v2077_v2 = vpop.f32.mrf.mxu0 }
 0x667   : > { %v2078_v18 = vadd.f32 %v2077_v2, %v10433_v3 }
 0x668   : > { %v2079_v13 = vpop.f32.mrf.mxu0 }
 0x669   : > { %v2080_v48 = vadd.f32 %v2079_v13, %v10433_v3 }
 0x66a   : > { %2753 = vrot.lane.b32.xlu0 %v2370_v9, %s6322_s24  ;;  %2435 = vrot.lane.b32.xlu1 %v7854_v26, %s6323_s25  ;;  %v2270_v9 = vpop.f32.mrf.mxu1  ;;  %v2081_v38 = vpop.f32.mrf.mxu0 }
 0x66b   : > { %v2271_v19 = vadd.f32 %v2270_v9, %v2078_v18  ;;  %v2082_v41 = vadd.f32 %v2081_v38, %v10436_v30  ;;  %v7897_v18 = vpop.permute.xlu1 %2403 }
 0x66c   : > { %v2272_v53 = vpop.f32.mrf.mxu1  ;;  %v2083_v7 = vpop.f32.mrf.mxu0 }
 0x66d   : > { %v7881_v10 = vmax.f32 %v2271_v19, 0.0  ;;  %v2273_v8 = vadd.f32 %v2272_v53, %v2080_v48  ;;  %v2084_v2 = vadd.f32 %v2083_v7, %v10436_v30  ;;  %v10439_v19 = vld [vmem:[#allocation24_spill] sm:$0xff] }
 0x66e   : > { %2437 = vrot.lane.b32.xlu0 %v7860_v50, %s6323_s25  ;;  %2691 = vrot.lane.b32.xlu1 %v7854_v26, %s6322_s24  ;;  %v2274_v15 = vpop.f32.mrf.mxu1  ;;  %v2087_v43 = vpop.f32.mrf.mxu0  ;;  %v10451_v26 = vld [vmem:[#allocation35_spill] sm:$0xff] }
 0x66f   : > { %10435 = vst [vmem:[#allocation19_spill] sm:$0xff] %v7881_v10  ;;  %v7888_v56 = vmax.f32 %v2273_v8, 0.0  ;;  %v2275_v63 = vadd.f32 %v2274_v15, %v2082_v41  ;;  %v2088_v53 = vadd.f32 %v2087_v43, %v10439_v19  ;;  %v7907_v41 = vpop.permute.xlu1 %2659 }
 0x670   : > { %v2276_v6 = vpop.f32.mrf.mxu1  ;;  %v2089_v48 = vpop.f32.mrf.mxu0  ;;  %10441 = vst [vmem:[#allocation23_spill] sm:$0xff] %v7907_v41 }
 0x671   : > { %10437 = vst [vmem:[#allocation20_spill] sm:$0xff] %v7888_v56  ;;  %v7895_v9 = vmax.f32 %v2275_v63, 0.0  ;;  %v2277_v3 = vadd.f32 %v2276_v6, %v2084_v2  ;;  %v2090_v30 = vadd.f32 %v2089_v48, %v10439_v19  ;;  %v7915_v2 = vpop.permute.xlu0 %2405 }
 0x672   : > { %2693 = vrot.lane.b32.xlu0 %v7860_v50, %s6322_s24  ;;  %2499 = vrot.lane.b32.xlu1 %v7867_v25, %s6323_s25  ;;  %v2280_v13 = vpop.f32.mrf.mxu1  ;;  %v2091_v7 = vpop.f32.mrf.mxu0 }
 0x673   : > { %10438 = vst [vmem:[#allocation21_spill] sm:$0xff] %v7895_v9  ;;  %v7904_v38 = vmax.f32 %v2277_v3, 0.0  ;;  %v2281_v8 = vadd.f32 %v2280_v13, %v2088_v53  ;;  %v10443_v3 = vld [vmem:[#allocation25_spill] sm:$0xff]  ;;  %v7924_v41 = vpop.permute.xlu1 %2467 }
 0x674   : > { %v2282_v15 = vpop.f32.mrf.mxu1  ;;  %v2092_v13 = vadd.f32 %v2091_v7, %v10443_v3  ;;  %v2093_v19 = vpop.f32.mrf.mxu0 }
 0x675   : > { %10440 = vst [vmem:[#allocation22_spill] sm:$0xff] %v7904_v38  ;;  %v7913_v63 = vmax.f32 %v2281_v8, 0.0  ;;  %v2283_v6 = vadd.f32 %v2282_v15, %v2090_v30  ;;  %v2094_v15 = vadd.f32 %v2093_v19, %v10443_v3  ;;  %v7927_v30 = vpop.permute.xlu0 %2661 }
 0x676   : > { %2501 = vrot.lane.b32.xlu0 %v7874_v31, %s6323_s25  ;;  %2755 = vrot.lane.b32.xlu1 %v7867_v25, %s6322_s24  ;;  %v2284_v43 = vpop.f32.mrf.mxu1  ;;  %10445 = vst [vmem:[#allocation45_spill] sm:$0xff] %v7927_v30 }
 0x677   : > { %10442 = vst [vmem:[#allocation24_spill] sm:$0xff] %v7913_v63  ;;  %v7922_v53 = vmax.f32 %v2283_v6, 0.0  ;;  %v2285_v48 = vadd.f32 %v2284_v43, %v2092_v13  ;;  %v10447_v6 = vld [vmem:[#allocation26_spill] sm:$0xff]  ;;  %v7937_v13 = vpop.permute.xlu1 %2723 }
 0x678   : > { %v2286_v8 = vpop.f32.mrf.mxu1  ;;  %v2098_v43 = vadd.f32 %v7637_v58, %v10447_v6  ;;  %10448 = vst [vmem:[#allocation26_spill] sm:$0xff] %v7937_v13 }
 0x679   : > { %10444 = vst [vmem:[#allocation25_spill] sm:$0xff] %v7922_v53  ;;  %v7933_v7 = vmax.f32 %v2285_v48, 0.0  ;;  %v2287_v40 = vadd.f32 %v2286_v8, %v2094_v15  ;;  %v7945_v25 = vpop.permute.xlu0 %2469  ;;  %v2100_v8 = vadd.f32 %v7639_v39, %v10447_v6 }
 0x67a   : > { %2757 = vrot.lane.b32.xlu0 %v7874_v31, %s6322_s24  ;;  %2695 = vrot.lane.b32.xlu1 %v7881_v10, %s6322_s24  ;;  %v2290_v47 = vpop.f32.mrf.mxu1 }
 0x67b   : > { %10446 = vst [vmem:[#allocation46_spill] sm:$0xff] %v7933_v7  ;;  %v7943_v3 = vmax.f32 %v2287_v40, 0.0  ;;  %v2291_v19 = vadd.f32 %v2290_v47, %v2098_v43  ;;  %v7955_v13 = vpop.permute.xlu1 %2407  ;;  %v2102_v47 = vadd.f32 %v7641_v0, %v10451_v26 }
 0x67c   : > { %v2292_v48 = vpop.f32.mrf.mxu1 }
 0x67d   : > { %10449 = vst [vmem:[#allocation47_spill] sm:$0xff] %v7943_v3  ;;  %v7953_v58 = vmax.f32 %v2291_v19, 0.0  ;;  %v2293_v15 = vadd.f32 %v2292_v48, %v2100_v8  ;;  %v7959_v43 = vpop.permute.xlu0 %2725  ;;  %v2104_v48 = vadd.f32 %v7643_v59, %v10451_v26 }
 0x67e   : > { %2439 = vrot.lane.b32.xlu0 %v7881_v10, %s6323_s25  ;;  %2759 = vrot.lane.b32.xlu1 %v7888_v56, %s6322_s24  ;;  %v2294_v40 = vpop.f32.mrf.mxu1  ;;  %10452 = vst [vmem:[#allocation35_spill] sm:$0xff] %v7959_v43  ;;  %v10456_v43 = vld [vmem:[#allocation33_spill] sm:$0xff] }
 0x67f   : > { %10450 = vst [vmem:[#allocation48_spill] sm:$0xff] %v7953_v58  ;;  %v7965_v39 = vmax.f32 %v2293_v15, 0.0  ;;  %v2295_v6 = vadd.f32 %v2294_v40, %v2102_v47  ;;  %v7969_v8 = vpop.permute.xlu1 %2663  ;;  %v2108_v40 = vadd.f32 %v7645_v44, %v10456_v43 }
 0x680   : > { %v2296_v19 = vpop.f32.mrf.mxu1  ;;  %10454 = vst [vmem:[#allocation50_spill] sm:$0xff] %v7969_v8 }
 0x681   : > { %10453 = vst [vmem:[#allocation49_spill] sm:$0xff] %v7965_v39  ;;  %v7975_v0 = vmax.f32 %v2295_v6, 0.0  ;;  %v2297_v29 = vadd.f32 %v2296_v19, %v2104_v48  ;;  %v7977_v30 = vpop.permute.xlu0 %2471  ;;  %v2110_v19 = vadd.f32 %v7647_v46, %v10456_v43 }
 0x682   : > { %2503 = vrot.lane.b32.xlu0 %v7888_v56, %s6323_s25  ;;  %2441 = vrot.lane.b32.xlu1 %v7895_v9, %s6323_s25  ;;  %v2300_v15 = vpop.f32.mrf.mxu1 }
 0x683   : > { %10455 = vst [vmem:[#allocation51_spill] sm:$0xff] %v7975_v0  ;;  %v7985_v59 = vmax.f32 %v2297_v29, 0.0  ;;  %v2301_v26 = vadd.f32 %v2300_v15, %v2108_v40  ;;  %v7987_v47 = vpop.permute.xlu1 %2727  ;;  %v2112_v15 = vadd.f32 %v7649_v27, %v10460_v11 }
 0x684   : > { %10458 = vst [vmem:[#allocation52_spill] sm:$0xff] %v7987_v47  ;;  %v2302_v6 = vpop.f32.mrf.mxu1 }
 0x685   : > { %10457 = vst [vmem:[#allocation33_spill] sm:$0xff] %v7985_v59  ;;  %v7991_v48 = vpop.permute.xlu0 %2409  ;;  %v7997_v44 = vmax.f32 %v2301_v26, 0.0  ;;  %v2303_v8 = vadd.f32 %v2302_v6, %v2110_v19  ;;  %v2114_v6 = vadd.f32 %v7651_v60, %v10460_v11 }
 0x686   : > { %2697 = vrot.lane.b32.xlu0 %v7895_v9, %s6322_s24  ;;  %2505 = vrot.lane.b32.xlu1 %v7904_v38, %s6323_s25  ;;  %v2304_v29 = vpop.f32.mrf.mxu1 }
 0x687   : > { %10459 = vst [vmem:[#allocation53_spill] sm:$0xff] %v7997_v44  ;;  %v8001_v40 = vpop.permute.xlu1 %2473  ;;  %v8007_v46 = vmax.f32 %v2303_v8, 0.0  ;;  %v2305_v43 = vadd.f32 %v2304_v29, %v2112_v15  ;;  %v2118_v29 = vadd.f32 %v7653_v55, %v10464_v33 }
 0x688   : > { %v2306_v26 = vpop.f32.mrf.mxu1 }
 0x689   : > { %10461 = vst [vmem:[#allocation34_spill] sm:$0xff] %v8007_v46  ;;  %v8009_v47 = vpop.permute.xlu0 %2665  ;;  %v8017_v27 = vmax.f32 %v2305_v43, 0.0  ;;  %v2307_v19 = vadd.f32 %v2306_v26, %v2114_v6  ;;  %v2120_v26 = vadd.f32 %v7655_v20, %v10464_v33 }
 0x68a   : > { %2761 = vrot.lane.b32.xlu0 %v7904_v38, %s6322_s24  ;;  %2699 = vrot.lane.b32.xlu1 %v7913_v63, %s6322_s24  ;;  %10462 = vst [vmem:[#allocation54_spill] sm:$0xff] %v8009_v47  ;;  %v2310_v8 = vpop.f32.mrf.mxu1 }
 0x68b   : > { %10463 = vst [vmem:[#allocation55_spill] sm:$0xff] %v8017_v27  ;;  %v8019_v56 = vpop.permute.xlu1 %2411  ;;  %v8029_v60 = vmax.f32 %v2307_v19, 0.0  ;;  %v2311_v11 = vadd.f32 %v2310_v8, %v2118_v29  ;;  %v10468_v19 = vld [vmem:[#allocation32_spill] sm:$0xff] }
 0x68c   : > { %v2312_v43 = vpop.f32.mrf.mxu1  ;;  %v2122_v8 = vadd.f32 %v7657_v24, %v10468_v19 }
 0x68d   : > { %v8023_v15 = vpop.permute.xlu0 %2729  ;;  %10466 = vst [vmem:[#allocation56_spill] sm:$0xff] %v8029_v60  ;;  %v2391_v55 = vmax.f32 %v2311_v11, 0.0  ;;  %v2313_v10 = vadd.f32 %v2312_v43, %v2120_v26 }
 0x68e   : > { %2443 = vrot.lane.b32.xlu0 %v7913_v63, %s6323_s25  ;;  %2763 = vrot.lane.b32.xlu1 %v7922_v53, %s6322_s24  ;;  %10465 = vst [vmem:[#allocation31_spill] sm:$0xff] %v8023_v15  ;;  %v2314_v31 = vpop.f32.mrf.mxu1 }
 0x68f   : > { %v8033_v6 = vpop.permute.xlu1 %2667  ;;  %v2392_v20 = vmax.f32 %v2313_v10, 0.0  ;;  %v2315_v33 = vadd.f32 %v2314_v31, %v2122_v8  ;;  %v2124_v10 = vadd.f32 %v7659_v49, %v10468_v19 }
 0x690   : > { %10467 = vst [vmem:[#allocation57_spill] sm:$0xff] %v8033_v6  ;;  %v2316_v31 = vpop.f32.mrf.mxu1 }
 0x691   : > { %v8039_v14 = vpop.permute.xlu0 %2475  ;;  %v2393_v11 = vmax.f32 %v2315_v33, 0.0  ;;  %v2317_v8 = vadd.f32 %v2316_v31, %v2124_v10 }
 0x692   : > { %2507 = vrot.lane.b32.xlu0 %v7922_v53, %s6323_s25  ;;  %2445 = vrot.lane.b32.xlu1 %v7933_v7, %s6323_s25  ;;  %v2320_v62 = vpop.f32.mrf.mxu1  ;;  %v10474_v53 = vld [vmem:[#allocation29_spill] sm:$0xff] }
 0x693   : > { %v8046_v29 = vpop.permute.xlu1 %2731  ;;  %v2394_v33 = vmax.f32 %v2317_v8, 0.0  ;;  %v2128_v49 = vadd.f32 %v7661_v35, %v10474_v53  ;;  %v2130_v8 = vadd.f32 %v7663_v57, %v10474_v53 }
 0x694   : > { %10469 = vst [vmem:[#allocation32_spill] sm:$0xff] %v8046_v29  ;;  %v2322_v10 = vpop.f32.mrf.mxu1 }
 0x695   : > { %v8048_v6 = vpop.permute.xlu0 %2413  ;;  %v2321_v31 = vadd.f32 %v2320_v62, %v2128_v49 }
 0x696   : > { %2701 = vrot.lane.b32.xlu0 %v7933_v7, %s6322_s24  ;;  %2509 = vrot.lane.b32.xlu1 %v7943_v3, %s6323_s25  ;;  %v2324_v16 = vpop.f32.mrf.mxu1 }
 0x697   : > { %v8052_v43 = vpop.permute.xlu1 %2477  ;;  %v2395_v15 = vmax.f32 %v2321_v31, 0.0 }
 0x698   : > { %v2326_v45 = vpop.f32.mrf.mxu1 }
 0x699   : > { %v8055_v24 = vpop.permute.xlu0 %2669 }
 0x69a   : > { %2765 = vrot.lane.b32.xlu0 %v7943_v3, %s6322_s24  ;;  %2703 = vrot.lane.b32.xlu1 %v7953_v58, %s6322_s24  ;;  %10470 = vst [vmem:[#allocation58_spill] sm:$0xff] %v8055_v24  ;;  %v2330_v4 = vpop.f32.mrf.mxu1 }
 0x69b   : > { %v8057_v26 = vpop.permute.xlu1 %2415 }
 0x69d   : > { %v8061_v29 = vpop.permute.xlu0 %2733 }
 0x69e   : > { %2447 = vrot.lane.b32.xlu0 %v7953_v58, %s6323_s25  ;;  %2767 = vrot.lane.b32.xlu1 %v7965_v39, %s6322_s24  ;;  %10471 = vst [vmem:[#allocation59_spill] sm:$0xff] %v8061_v29 }
 0x69f   : > { %v8064_v50 = vpop.permute.xlu1 %2671 }
 0x6a0   : > { %10472 = vst [vmem:[#allocation60_spill] sm:$0xff] %v8064_v50  ;;  %v10476_v50 = vld [vmem:[#allocation30_spill] sm:$0xff] }
 0x6a1   : > { %v8067_v54 = vpop.permute.xlu0 %2479  ;;  %v2134_v23 = vadd.f32 %v7667_v32, %v10476_v50 }
 0x6a2   : > { %2511 = vrot.lane.b32.xlu0 %v7965_v39, %s6323_s25  ;;  %2449 = vrot.lane.b32.xlu1 %v7975_v0, %s6323_s25 }
 0x6a3   : > { %v2327_v39 = vadd.f32 %v2326_v45, %v2134_v23 }
 0x6a5   : > { %v8073_v19 = vpop.permute.xlu0 %2417  ;;  %v2398_v29 = vmax.f32 %v2327_v39, 0.0 }
 0x6a6   : > { %2705 = vrot.lane.b32.xlu0 %v7975_v0, %s6322_s24  ;;  %2513 = vrot.lane.b32.xlu1 %v7985_v59, %s6323_s25 }
 0x6a9   : > { %v8080_v63 = vpop.permute.xlu0 %2673 }
 0x6aa   : > { %2769 = vrot.lane.b32.xlu0 %v7985_v59, %s6322_s24  ;;  %2707 = vrot.lane.b32.xlu1 %v7997_v44, %s6322_s24  ;;  %10475 = vst [vmem:[#allocation29_spill] sm:$0xff] %v8080_v63 }
 0x6ad   : > { %v8088_v57 = vpop.permute.xlu0 %2737 }
 0x6ae   : > { %2451 = vrot.lane.b32.xlu0 %v7997_v44, %s6323_s25  ;;  %2771 = vrot.lane.b32.xlu1 %v8007_v46, %s6322_s24  ;;  %10477 = vst [vmem:[#allocation30_spill] sm:$0xff] %v8088_v57 }
 0x6b2   : > { %2515 = vrot.lane.b32.xlu0 %v8007_v46, %s6323_s25  ;;  %2453 = vrot.lane.b32.xlu1 %v8017_v27, %s6323_s25  ;;  %v10489_v46 = vld [vmem:[#allocation27_spill] sm:$0xff] }
 0x6b3   : > { %v2138_v63 = vadd.f32 %v7669_v28, %v10489_v46  ;;  %v2140_v28 = vadd.f32 %v7671_v22, %v10489_v46 }
 0x6b5   : > { %v2331_v44 = vadd.f32 %v2330_v4, %v2138_v63 }
 0x6b6   : > { %2709 = vrot.lane.b32.xlu0 %v8017_v27, %s6322_s24  ;;  %2517 = vrot.lane.b32.xlu1 %v8029_v60, %s6323_s25 }
 0x6b7   : > { %v2399_v12 = vmax.f32 %v2331_v44, 0.0 }
 0x6ba   : > { %2773 = vrot.lane.b32.xlu0 %v8029_v60, %s6322_s24  ;;  %2711 = vrot.lane.b32.xlu1 %v2391_v55, %s6322_s24 }
 0x6be   : > { %2455 = vrot.lane.b32.xlu0 %v2391_v55, %s6323_s25  ;;  %2775 = vrot.lane.b32.xlu1 %v2392_v20, %s6322_s24 }
 0x6c2   : > { %2457 = vrot.lane.b32.xlu1 %v2393_v11, %s6323_s25 }
 0x6dd   : > { %3031 = vadd.xlane.f32.xlu0 %v2391_v55  ;;  %v8069_v55 = vpop.permute.xlu1 %2735 }
 0x6de   : > { %10473 = vst [vmem:[#allocation61_spill] sm:$0xff] %v8069_v55  ;;  %v2132_v55 = vadd.f32 %v7665_v17, %v10476_v50  ;;  %v8095_v17 = vpop.permute.xlu0 %2483 }
 0x6e0   : > { %v2325_v62 = vadd.f32 %v2324_v16, %v2132_v55 }
 0x6e1   : > { %v8077_v47 = vpop.permute.xlu1 %2481 }
 0x6e2   : > { %v2397_v53 = vmax.f32 %v2325_v62, 0.0 }
 0x6e5   : > { %v8086_v49 = vpop.permute.xlu1 %2419 }
 0x6e6   : > { %3033 = vadd.xlane.f32.xlu1 %v2393_v11 }
 0x6f3   : > { %2519 = vrot.lane.b32.xlu0 %v2392_v20, %s6323_s25 }
 0x6f7   : > { %2521 = vrot.lane.b32.xlu1 %v2394_v33, %s6323_s25 }
 0x712   : > { %3319 = vadd.xlane.f32.xlu0 %v2392_v20  ;;  %v2323_v20 = vadd.f32 %v2322_v10, %v2130_v8 }
 0x714   : > { %v2396_v35 = vmax.f32 %v2323_v20, 0.0 }
 0x71b   : > { %3321 = vadd.xlane.f32.xlu1 %v2394_v33 }
 0x728   : > { %2713 = vrot.lane.b32.xlu0 %v2393_v11, %s6322_s24  ;;  %v8092_v11 = vpop.permute.xlu1 %2675 }
 0x729   : > { %10478 = vst [vmem:[#allocation62_spill] sm:$0xff] %v8092_v11 }
 0x72c   : > { %2777 = vrot.lane.b32.xlu0 %v2394_v33, %s6322_s24  ;;  %2715 = vrot.lane.b32.xlu1 %v2395_v15, %s6322_s24  ;;  %v8097_v33 = vpop.permute.xlu0 %2421  ;;  %v8099_v31 = vpop.permute.xlu1 %2739 }
 0x72d   : > { %10479 = vst [vmem:[#allocation63_spill] sm:$0xff] %v8099_v31 }
 0x730   : > { %2459 = vrot.lane.b32.xlu0 %v2395_v15, %s6323_s25  ;;  %2779 = vrot.lane.b32.xlu1 %v2396_v35, %s6322_s24  ;;  %v8101_v16 = vpop.permute.xlu0 %2677  ;;  %v8103_v55 = vpop.permute.xlu1 %2485 }
 0x731   : > { %10480 = vst [vmem:[#allocation64_spill] sm:$0xff] %v8101_v16 }
 0x734   : > { %2461 = vrot.lane.b32.xlu1 %v2397_v53, %s6323_s25  ;;  %v8105_v10 = vpop.permute.xlu0 %2741  ;;  %v8107_v8 = vpop.permute.xlu1 %2423 }
 0x735   : > { %10481 = vst [vmem:[#allocation65_spill] sm:$0xff] %v8105_v10  ;;  %v2332_v10 = vpop.f32.mrf.mxu1 }
 0x736   : > { %v2333_v4 = vadd.f32 %v2332_v10, %v2140_v28 }
 0x738   : > { %v8109_v20 = vpop.xlane.xlu0 %2999  ;;  %v8111_v62 = vpop.permute.xlu1 %2679  ;;  %v2400_v21 = vmax.f32 %v2333_v4, 0.0  ;;  %v2563_v4 = vsel %vm413_vm4, %v7924_v41, %v7897_v18 }
 0x739   : > { %10482 = vst [vmem:[#allocation66_spill] sm:$0xff] %v8109_v20 }
 0x73c   : > { %v8113_v42 = vpop.permute.xlu0 %2487  ;;  %v8115_v38 = vpop.permute.xlu1 %2743 }
 0x740   : > { %v8117_v9 = vpop.xlane.xlu0 %3287 }
 0x741   : > { %10483 = vst [vmem:[#allocation67_spill] sm:$0xff] %v8117_v9 }
 0x744   : > { %v8123_v24 = vpop.permute.xlu0 %2425 }
 0x748   : > { %v8129_v34 = vpop.permute.xlu0 %2681 }
 0x74c   : > { %v8133_v31 = vpop.permute.xlu0 %2745 }
 0x74f   : > { %3035 = vadd.xlane.f32.xlu0 %v2395_v15  ;;  %v8121_v15 = vpop.xlane.xlu1 %3001 }
 0x750   : > { %10484 = vst [vmem:[#allocation68_spill] sm:$0xff] %v8121_v15  ;;  %v8137_v32 = vpop.xlane.xlu0 %3003  ;;  %v2595_v15 = vsel %vm393_vm7, %v2563_v4, 0.0 }
 0x751   : > { %10486 = vst [vmem:[#allocation70_spill] sm:$0xff] %v8137_v32  ;;  %v2531_v32 = vsel %vm413_vm4, %v7897_v18, %v7924_v41  ;;  %v2532_v18 = vsel %vm413_vm4, %v7915_v2, %v7945_v25 }
 0x753   : > { %v8126_v58 = vpop.permute.xlu1 %2489 }
 0x754   : > { %v8141_v45 = vpop.permute.xlu0 %2491 }
 0x757   : > { %v8131_v11 = vpop.xlane.xlu1 %3289 }
 0x758   : > { %3037 = vadd.xlane.f32.xlu1 %v2397_v53  ;;  %10485 = vst [vmem:[#allocation69_spill] sm:$0xff] %v8131_v11  ;;  %v8145_v39 = vpop.xlane.xlu0 %3291 }
 0x759   : > { %10487 = vst [vmem:[#allocation71_spill] sm:$0xff] %v8145_v39 }
 0x75b   : > { %v8135_v51 = vpop.permute.xlu1 %2427 }
 0x75c   : > { %v8149_v7 = vpop.permute.xlu0 %2429 }
 0x75f   : > { %v8139_v23 = vpop.permute.xlu1 %2683 }
 0x760   : > { %v8155_v57 = vpop.permute.xlu0 %2685 }
 0x763   : > { %v8143_v50 = vpop.permute.xlu1 %2747 }
 0x764   : > { %v8159_v59 = vpop.permute.xlu0 %2749 }
 0x765   : > { %2523 = vrot.lane.b32.xlu0 %v2396_v35, %s6323_s25 }
 0x767   : > { %v8147_v3 = vpop.xlane.xlu1 %3005 }
 0x768   : > { %10488 = vst [vmem:[#allocation72_spill] sm:$0xff] %v8147_v3  ;;  %v8163_v16 = vpop.xlane.xlu0 %3007 }
 0x769   : > { %2525 = vrot.lane.b32.xlu1 %v2398_v29, %s6323_s25  ;;  %10491 = vst [vmem:[#allocation73_spill] sm:$0xff] %v8163_v16 }
 0x76b   : > { %v8151_v36 = vpop.permute.xlu1 %2493 }
 0x76c   : > { %v8169_v1 = vpop.permute.xlu0 %2495 }
 0x76f   : > { %v8157_v52 = vpop.xlane.xlu1 %3293 }
 0x770   : > { %10490 = vst [vmem:[#allocation27_spill] sm:$0xff] %v8157_v52  ;;  %v8174_v44 = vpop.xlane.xlu0 %3295  ;;  %v3748_v52 = vld [vmem:[%s10209_s8 + $0x80] sm:$0xff] }
 0x773   : > { %v8161_v0 = vpop.permute.xlu1 %2431 }
 0x774   : > { %v8180_v27 = vpop.permute.xlu0 %2433 }
 0x778   : > { %v8184_v22 = vpop.permute.xlu0 %2689 }
 0x784   : > { %3323 = vadd.xlane.f32.xlu0 %v2396_v35  ;;  %v8165_v35 = vpop.permute.xlu1 %2687 }
 0x788   : > { %v8172_v63 = vpop.permute.xlu1 %2751 }
 0x78c   : > { %v8177_v60 = vpop.xlane.xlu1 %3009 }
 0x78d   : > { %3325 = vadd.xlane.f32.xlu1 %v2398_v29  ;;  %10492 = vst [vmem:[#allocation74_spill] sm:$0xff] %v8177_v60  ;;  %v2334_v60 = vpop.f32.mrf.mxu1 }
 0x790   : > { %v8182_v20 = vpop.permute.xlu1 %2497 }
 0x791   : > { %3039 = vadd.xlane.f32.xlu1 %v2399_v12 }
 0x794   : > { %v8186_v46 = vpop.xlane.xlu1 %3297 }
 0x795   : > { %10493 = vst [vmem:[#allocation75_spill] sm:$0xff] %v8186_v46 }
 0x798   : > { %v8190_v10 = vpop.permute.xlu1 %2435 }
 0x79a   : > { %2717 = vrot.lane.b32.xlu0 %v2397_v53, %s6322_s24  ;;  %v8188_v53 = vpop.permute.xlu0 %2753 }
 0x79e   : > { %2781 = vrot.lane.b32.xlu0 %v2398_v29, %s6322_s24  ;;  %v8192_v28 = vpop.permute.xlu0 %2437  ;;  %v8194_v29 = vpop.permute.xlu1 %2691 }
 0x79f   : > { %10494 = vst [vmem:[#allocation76_spill] sm:$0xff] %v8194_v29  ;;  %v2596_v29 = vsel %vm396_vm6, %v2531_v32, 0.0  ;;  %v2598_v32 = vsel %vm396_vm6, %v2532_v18, 0.0  ;;  %v2336_v18 = vpop.f32.mrf.mxu1 }
 0x7a2   : > { %2783 = vrot.lane.b32.xlu1 %v2400_v21, %s6322_s24  ;;  %v8200_v9 = vpop.permute.xlu0 %2693  ;;  %v8208_v39 = vpop.permute.xlu1 %2499 }
 0x7a3   : > { %10495 = vst [vmem:[#allocation77_spill] sm:$0xff] %v8200_v9  ;;  %v2564_v9 = vsel %vm413_vm4, %v7945_v25, %v7915_v2 }
 0x7a6   : > { %v8212_v3 = vpop.permute.xlu0 %2501  ;;  %v8218_v4 = vpop.permute.xlu1 %2755 }
 0x7a7   : > { %10497 = vst [vmem:[#allocation3_spill] sm:$0xff] %v8218_v4 }
 0x7aa   : > { %v8226_v41 = vpop.permute.xlu0 %2757 }
 0x7ab   : > { %10498 = vst [vmem:[#allocation78_spill] sm:$0xff] %v8226_v41 }
 0x7ae   : > { %v8232_v11 = vpop.permute.xlu0 %2439 }
 0x7b2   : > { %v8238_v16 = vpop.permute.xlu0 %2503 }
 0x7b6   : > { %v8243_v41 = vpop.permute.xlu0 %2697 }
 0x7bd   : > { %2915 = vadd.xlane.f32.xlu0 %v2595_v15  ;;  %v2597_v15 = vsel %vm393_vm7, %v2564_v9, 0.0  ;;  %v10501_v9 = vld [vmem:[#allocation28_spill] sm:$0xff] }
 0x7be   : > { %10502 = vst [vmem:[#allocation28_spill] sm:$0xff] %v8243_v41 }
 0x7c1   : > { %3203 = vadd.xlane.f32.xlu0 %v2596_v29  ;;  %v8230_v29 = vpop.permute.xlu1 %2695 }
 0x7c2   : > { %10499 = vst [vmem:[#allocation79_spill] sm:$0xff] %v8230_v29 }
 0x7c5   : > { %v8234_v4 = vpop.permute.xlu1 %2759 }
 0x7c6   : > { %2917 = vadd.xlane.f32.xlu1 %v2597_v15  ;;  %10500 = vst [vmem:[#allocation80_spill] sm:$0xff] %v8234_v4  ;;  %v2142_v15 = vadd.f32 %v7673_v37, %v10501_v9 }
 0x7c8   : > { %v2335_v46 = vadd.f32 %v2334_v60, %v2142_v15  ;;  %v8253_v60 = vpop.permute.xlu0 %2761 }
 0x7c9   : > { %v8240_v25 = vpop.permute.xlu1 %2441  ;;  %10503 = vst [vmem:[#allocation81_spill] sm:$0xff] %v8253_v60 }
 0x7ca   : > { %3205 = vadd.xlane.f32.xlu1 %v2598_v32  ;;  %v2401_v2 = vmax.f32 %v2335_v46, 0.0  ;;  %v2144_v32 = vadd.f32 %v7675_v61, %v10501_v9 }
 0x7cc   : > { %v2337_v37 = vadd.f32 %v2336_v18, %v2144_v32  ;;  %v8258_v4 = vpop.permute.xlu0 %2443 }
 0x7cd   : > { %v8249_v29 = vpop.permute.xlu1 %2505  ;;  %10505 = vst [vmem:[#allocation83_spill] sm:$0xff] %v8258_v4 }
 0x7ce   : > { %v2402_v46 = vmax.f32 %v2337_v37, 0.0 }
 0x7d1   : > { %v8255_v15 = vpop.permute.xlu1 %2699 }
 0x7d2   : > { %10504 = vst [vmem:[#allocation82_spill] sm:$0xff] %v8255_v15 }
 0x7d5   : > { %v8260_v61 = vpop.permute.xlu1 %2763 }
 0x7d6   : > { %10506 = vst [vmem:[#allocation84_spill] sm:$0xff] %v8260_v61 }
 0x7d7   : > { %2463 = vrot.lane.b32.xlu0 %v2399_v12, %s6323_s25 }
 0x7d9   : > { %v8264_v9 = vpop.permute.xlu1 %2445 }
 0x7db   : > { %2719 = vrot.lane.b32.xlu0 %v2399_v12, %s6322_s24  ;;  %2465 = vrot.lane.b32.xlu1 %v2401_v2, %s6323_s25  ;;  %v8262_v12 = vpop.permute.xlu0 %2507 }
 0x7dc   : > { %10507 = vst [vmem:[#allocation85_spill] sm:$0xff] %v8262_v12 }
 0x7dd   : > { %v8268_v32 = vpop.permute.xlu1 %2509 }
 0x7df   : > { %2527 = vrot.lane.b32.xlu0 %v2400_v21, %s6323_s25  ;;  %2721 = vrot.lane.b32.xlu1 %v2401_v2, %s6322_s24  ;;  %v8266_v18 = vpop.permute.xlu0 %2701 }
 0x7e0   : > { %10508 = vst [vmem:[#allocation86_spill] sm:$0xff] %v8266_v18  ;;  %v2566_v18 = vsel %vm413_vm4, %v8001_v40, %v7991_v48 }
 0x7e1   : > { %v8272_v60 = vpop.permute.xlu1 %2703 }
 0x7e2   : > { %10510 = vst [vmem:[#allocation88_spill] sm:$0xff] %v8272_v60  ;;  %v2601_v60 = vsel %vm393_vm7, %v2566_v18, 0.0 }
 0x7e3   : > { %2529 = vrot.lane.b32.xlu1 %v2402_v46, %s6323_s25  ;;  %v8270_v41 = vpop.permute.xlu0 %2765 }
 0x7e4   : > { %10509 = vst [vmem:[#allocation87_spill] sm:$0xff] %v8270_v41  ;;  %v2568_v41 = vsel %vm413_vm4, %v8052_v43, %v8048_v6 }
 0x7e5   : > { %v8276_v15 = vpop.permute.xlu1 %2767 }
 0x7e6   : > { %10511 = vst [vmem:[#allocation89_spill] sm:$0xff] %v8276_v15 }
 0x7e7   : > { %v8274_v37 = vpop.permute.xlu0 %2447 }
 0x7e9   : > { %v8280_v61 = vpop.permute.xlu1 %2449 }
 0x7eb   : > { %v8278_v4 = vpop.permute.xlu0 %2511 }
 0x7ef   : > { %v8286_v12 = vpop.permute.xlu0 %2705 }
 0x7f0   : > { %10512 = vst [vmem:[#allocation90_spill] sm:$0xff] %v8286_v12 }
 0x7f3   : > { %v8302_v12 = vpop.permute.xlu0 %2769 }
 0x7f4   : > { %10513 = vst [vmem:[#allocation91_spill] sm:$0xff] %v8302_v12 }
 0x7fe   : > { %3327 = vadd.xlane.f32.xlu0 %v2400_v21  ;;  %v2534_v21 = vsel %vm413_vm4, %v7991_v48, %v8001_v40  ;;  %v2536_v48 = vsel %vm413_vm4, %v8048_v6, %v8052_v43  ;;  %v8312_v40 = vpop.permute.xlu0 %2451  ;;  %v2538_v6 = vsel %vm413_vm4, %v8073_v19, %v8077_v47 }
 0x7ff   : > { %v2602_v15 = vsel %vm396_vm6, %v2534_v21, 0.0  ;;  %v2570_v21 = vsel %vm413_vm4, %v8077_v47, %v8073_v19  ;;  %v2540_v47 = vsel %vm413_vm4, %v8097_v33, %v8103_v55 }
 0x802   : > { %3041 = vadd.xlane.f32.xlu0 %v2401_v2  ;;  %v8294_v2 = vpop.permute.xlu1 %2513  ;;  %v8329_v43 = vpop.permute.xlu0 %2515 }
 0x806   : > { %v8304_v18 = vpop.permute.xlu1 %2707 }
 0x807   : > { %3329 = vadd.xlane.f32.xlu1 %v2402_v46  ;;  %10514 = vst [vmem:[#allocation92_spill] sm:$0xff] %v8304_v18 }
 0x80a   : > { %v8320_v18 = vpop.permute.xlu1 %2771 }
 0x80b   : > { %2921 = vadd.xlane.f32.xlu1 %v2601_v60  ;;  %v2605_v60 = vsel %vm393_vm7, %v2568_v41, 0.0  ;;  %10515 = vst [vmem:[#allocation93_spill] sm:$0xff] %v8320_v18  ;;  %v2609_v41 = vsel %vm393_vm7, %v2570_v21, 0.0 }
 0x80f   : > { %3209 = vadd.xlane.f32.xlu1 %v2602_v15  ;;  %v2606_v15 = vsel %vm396_vm6, %v2536_v48, 0.0  ;;  %v2610_v48 = vsel %vm396_vm6, %v2538_v6, 0.0  ;;  %v2574_v6 = vsel %vm413_vm4, %v8126_v58, %v8123_v24 }
 0x813   : > { %2925 = vadd.xlane.f32.xlu1 %v2605_v60  ;;  %v8331_v60 = vpop.permute.xlu1 %2453 }
 0x817   : > { %3213 = vadd.xlane.f32.xlu1 %v2606_v15  ;;  %v8339_v15 = vpop.permute.xlu0 %2709  ;;  %v8347_v19 = vpop.permute.xlu1 %2517 }
 0x818   : > { %2785 = vrot.lane.b32.xlu0 %v2402_v46, %s6322_s24  ;;  %v2572_v46 = vsel %vm413_vm4, %v8103_v55, %v8097_v33  ;;  %v2542_v33 = vsel %vm413_vm4, %v8123_v24, %v8126_v58  ;;  %v2565_v58 = vsel %vm413_vm4, %v7977_v30, %v7955_v13  ;;  %v2830_v24 = vsel %vm434_vm1, %v8133_v31, %v8129_v34 }
 0x819   : > { %v2613_v21 = vsel %vm393_vm7, %v2572_v46, 0.0  ;;  %v2874_v12 = vsel %vm402_vm0, %v2830_v24, 0.0 }
 0x81b   : > { %2929 = vadd.xlane.f32.xlu1 %v2609_v41  ;;  %v2614_v41 = vsel %vm396_vm6, %v2540_v47, 0.0  ;;  %v8357_v46 = vpop.permute.xlu1 %2711  ;;  %v2618_v47 = vsel %vm396_vm6, %v2542_v33, 0.0 }
 0x81f   : > { %3217 = vadd.xlane.f32.xlu1 %v2610_v48  ;;  %v8355_v48 = vpop.permute.xlu0 %2773  ;;  %v8373_v18 = vpop.permute.xlu1 %2775 }
 0x823   : > { %2933 = vadd.xlane.f32.xlu1 %v2613_v21  ;;  %v2617_v21 = vsel %vm393_vm7, %v2574_v6, 0.0  ;;  %v8365_v55 = vpop.permute.xlu0 %2455  ;;  %v8387_v33 = vpop.permute.xlu1 %2457 }
 0x827   : > { %3221 = vadd.xlane.f32.xlu1 %v2614_v41  ;;  %v2798_v41 = vsel %vm434_vm1, %v8129_v34, %v8133_v31  ;;  %v8375_v6 = vpop.xlane.xlu0 %3031  ;;  %v2576_v34 = vsel %vm413_vm4, %v8151_v36, %v8149_v7 }
 0x82b   : > { %2937 = vadd.xlane.f32.xlu1 %v2617_v21  ;;  %v2873_v21 = vsel %vm399_vm2, %v2798_v41, 0.0  ;;  %v2533_v41 = vsel %vm413_vm4, %v7955_v13, %v7977_v30  ;;  %v8401_v31 = vpop.permute.xlu0 %2519  ;;  %v2567_v30 = vsel %vm413_vm4, %v8039_v14, %v8019_v56  ;;  %v2544_v13 = vsel %vm413_vm4, %v8149_v7, %v8151_v36 }
 0x82c   : > { %v2800_v36 = vsel %vm434_vm1, %v8155_v57, %v8159_v59 }
 0x82f   : > { %3225 = vadd.xlane.f32.xlu1 %v2618_v47  ;;  %v2599_v47 = vsel %vm393_vm7, %v2565_v58, 0.0  ;;  %v2600_v58 = vsel %vm396_vm6, %v2533_v41, 0.0  ;;  %v8417_v24 = vpop.xlane.xlu0 %3319  ;;  %v2622_v41 = vsel %vm396_vm6, %v2544_v13, 0.0 }
 0x833   : > { %3065 = vadd.xlane.f32.xlu1 %v2873_v21  ;;  %v8403_v21 = vpop.xlane.xlu1 %3033 }
 0x837   : > { %2919 = vadd.xlane.f32.xlu0 %v2599_v47  ;;  %3353 = vadd.xlane.f32.xlu1 %v2874_v12  ;;  %v2621_v12 = vsel %vm393_vm7, %v2576_v34, 0.0  ;;  %v2603_v47 = vsel %vm393_vm7, %v2567_v30, 0.0  ;;  %v2535_v34 = vsel %vm413_vm4, %v8019_v56, %v8039_v14  ;;  %v8431_v7 = vpop.permute.xlu1 %2521  ;;  %v2877_v30 = vsel %vm399_vm2, %v2800_v36, 0.0 }
 0x838   : > { %v2569_v14 = vsel %vm413_vm4, %v8067_v54, %v8057_v26  ;;  %v2832_v56 = vsel %vm434_vm1, %v8159_v59, %v8155_v57  ;;  %v2578_v59 = vsel %vm413_vm4, %v8182_v20, %v8180_v27 }
 0x83b   : > { %3207 = vadd.xlane.f32.xlu0 %v2600_v58  ;;  %2941 = vadd.xlane.f32.xlu1 %v2621_v12  ;;  %v8433_v58 = vpop.permute.xlu0 %2713  ;;  %v2604_v12 = vsel %vm396_vm6, %v2535_v34, 0.0  ;;  %v8447_v13 = vpop.xlane.xlu1 %3321  ;;  %v2537_v34 = vsel %vm413_vm4, %v8057_v26, %v8067_v54  ;;  %v2571_v54 = vsel %vm413_vm4, %v8095_v17, %v8086_v49  ;;  %v2546_v26 = vsel %vm413_vm4, %v8180_v27, %v8182_v20 }
 0x83c   : > { %v2802_v27 = vsel %vm434_vm1, %v8184_v22, %v8188_v53 }
 0x83f   : > { %2923 = vadd.xlane.f32.xlu0 %v2603_v47  ;;  %3229 = vadd.xlane.f32.xlu1 %v2622_v41  ;;  %v2607_v47 = vsel %vm393_vm7, %v2569_v14, 0.0  ;;  %v2878_v41 = vsel %vm402_vm0, %v2832_v56, 0.0  ;;  %v8461_v57 = vpop.permute.xlu0 %2777  ;;  %v8463_v36 = vpop.permute.xlu1 %2715  ;;  %v2611_v56 = vsel %vm393_vm7, %v2571_v54, 0.0 }
 0x843   : > { %3211 = vadd.xlane.f32.xlu0 %v2604_v12  ;;  %3069 = vadd.xlane.f32.xlu1 %v2877_v30  ;;  %v2608_v12 = vsel %vm396_vm6, %v2537_v34, 0.0  ;;  %v2625_v30 = vsel %vm393_vm7, %v2578_v59, 0.0  ;;  %v8477_v14 = vpop.permute.xlu0 %2459  ;;  %v8491_v20 = vpop.permute.xlu1 %2779 }
 0x847   : > { %2927 = vadd.xlane.f32.xlu0 %v2607_v47  ;;  %3357 = vadd.xlane.f32.xlu1 %v2878_v41  ;;  %v2626_v47 = vsel %vm396_vm6, %v2546_v26, 0.0  ;;  %v2539_v41 = vsel %vm413_vm4, %v8086_v49, %v8095_v17  ;;  %v8493_v34 = vpop.xlane.xlu0 %3035  ;;  %v2573_v49 = vsel %vm413_vm4, %v8113_v42, %v8107_v8  ;;  %v2834_v17 = vsel %vm434_vm1, %v8188_v53, %v8184_v22 }
 0x848   : > { %v2612_v59 = vsel %vm396_vm6, %v2539_v41, 0.0  ;;  %v2615_v54 = vsel %vm393_vm7, %v2573_v49, 0.0  ;;  %v2882_v26 = vsel %vm402_vm0, %v2834_v17, 0.0  ;;  %v2580_v22 = vsel %vm413_vm4, %v8212_v3, %v8192_v28 }
 0x849   : > { %v2829_v17 = vsel %vm434_vm1, %v8115_v38, %v8111_v62 }
 0x84b   : > { %3215 = vadd.xlane.f32.xlu0 %v2608_v12  ;;  %2945 = vadd.xlane.f32.xlu1 %v2625_v30  ;;  %v2881_v12 = vsel %vm399_vm2, %v2802_v27, 0.0  ;;  %v8507_v30 = vpop.permute.xlu1 %2461  ;;  %v8521_v53 = vpop.permute.xlu0 %2523  ;;  %v2629_v27 = vsel %vm393_vm7, %v2580_v22, 0.0 }
 0x84f   : > { %2931 = vadd.xlane.f32.xlu0 %v2611_v56  ;;  %3233 = vadd.xlane.f32.xlu1 %v2626_v47  ;;  %v2541_v56 = vsel %vm413_vm4, %v8107_v8, %v8113_v42  ;;  %v8523_v47 = vpop.xlane.xlu1 %3037  ;;  %v2797_v42 = vsel %vm434_vm1, %v8111_v62, %v8115_v38  ;;  %v2548_v8 = vsel %vm413_vm4, %v8192_v28, %v8212_v3 }
 0x850   : > { %v2616_v41 = vsel %vm396_vm6, %v2541_v56, 0.0  ;;  %v2630_v49 = vsel %vm396_vm6, %v2548_v8, 0.0  ;;  %v2582_v3 = vsel %vm413_vm4, %v8249_v29, %v8240_v25  ;;  %v2575_v38 = vsel %vm413_vm4, %v8141_v45, %v8135_v51 }
 0x851   : > { %v2633_v56 = vsel %vm393_vm7, %v2582_v3, 0.0  ;;  %v2550_v62 = vsel %vm413_vm4, %v8240_v25, %v8249_v29  ;;  %v2584_v29 = vsel %vm413_vm4, %v8268_v32, %v8264_v9 }
 0x853   : > { %3219 = vadd.xlane.f32.xlu0 %v2612_v59  ;;  %3073 = vadd.xlane.f32.xlu1 %v2881_v12  ;;  %v8537_v59 = vpop.xlane.xlu0 %3323  ;;  %v2871_v12 = vsel %vm399_vm2, %v2797_v42, 0.0  ;;  %v8551_v28 = vpop.permute.xlu1 %2525  ;;  %v2543_v42 = vsel %vm413_vm4, %v8135_v51, %v8141_v45  ;;  %v2799_v51 = vsel %vm434_vm1, %v8139_v23, %v8143_v50  ;;  %v2552_v45 = vsel %vm413_vm4, %v8264_v9, %v8268_v32 }
 0x854   : > { %v2875_v3 = vsel %vm399_vm2, %v2799_v51, 0.0  ;;  %v2586_v9 = vsel %vm413_vm4, %v8294_v2, %v8280_v61 }
 0x857   : > { %2935 = vadd.xlane.f32.xlu0 %v2615_v54  ;;  %3361 = vadd.xlane.f32.xlu1 %v2882_v26  ;;  %v8553_v54 = vpop.permute.xlu0 %2717  ;;  %v2872_v26 = vsel %vm402_vm0, %v2829_v17, 0.0  ;;  %v8567_v22 = vpop.xlane.xlu1 %3325 }
 0x85b   : > { %3223 = vadd.xlane.f32.xlu0 %v2616_v41  ;;  %2949 = vadd.xlane.f32.xlu1 %v2629_v27  ;;  %v2619_v41 = vsel %vm393_vm7, %v2575_v38, 0.0  ;;  %v2634_v27 = vsel %vm396_vm6, %v2550_v62, 0.0  ;;  %v8581_v25 = vpop.permute.xlu0 %2781  ;;  %v8583_v8 = vpop.xlane.xlu1 %3039 }
 0x85f   : > { %3063 = vadd.xlane.f32.xlu0 %v2871_v12  ;;  %3237 = vadd.xlane.f32.xlu1 %v2630_v49  ;;  %v2620_v12 = vsel %vm396_vm6, %v2543_v42, 0.0  ;;  %v2637_v49 = vsel %vm393_vm7, %v2584_v29, 0.0  ;;  %v8597_v17 = vpop.xlane.xlu0 %2915  ;;  %v8611_v32 = vpop.permute.xlu1 %2783 }
 0x863   : > { %3351 = vadd.xlane.f32.xlu0 %v2872_v26  ;;  %2953 = vadd.xlane.f32.xlu1 %v2633_v56  ;;  %v2638_v26 = vsel %vm396_vm6, %v2552_v45, 0.0  ;;  %v2831_v56 = vsel %vm434_vm1, %v8143_v50, %v8139_v23  ;;  %v8613_v38 = vpop.xlane.xlu0 %3203  ;;  %v2577_v23 = vsel %vm413_vm4, %v8169_v1, %v8161_v0  ;;  %v2554_v50 = vsel %vm413_vm4, %v8280_v61, %v8294_v2 }
 0x864   : > { %v2876_v62 = vsel %vm402_vm0, %v2831_v56, 0.0  ;;  %v2623_v42 = vsel %vm393_vm7, %v2577_v23, 0.0  ;;  %v2642_v29 = vsel %vm396_vm6, %v2554_v50, 0.0  ;;  %v2588_v61 = vsel %vm413_vm4, %v8347_v19, %v8331_v60 }
 0x865   : > { %v2645_v45 = vsel %vm393_vm7, %v2588_v61, 0.0 }
 0x867   : > { %2939 = vadd.xlane.f32.xlu0 %v2619_v41  ;;  %3241 = vadd.xlane.f32.xlu1 %v2634_v27  ;;  %v2641_v41 = vsel %vm393_vm7, %v2586_v9, 0.0  ;;  %v8627_v27 = vpop.xlane.xlu1 %2917  ;;  %v8641_v2 = vpop.permute.xlu0 %2463  ;;  %v2833_v9 = vsel %vm434_vm1, %v8172_v63, %v8165_v35 }
 0x86b   : > { %3227 = vadd.xlane.f32.xlu0 %v2620_v12  ;;  %2957 = vadd.xlane.f32.xlu1 %v2637_v49  ;;  %v2545_v12 = vsel %vm413_vm4, %v8161_v0, %v8169_v1  ;;  %v8643_v49 = vpop.xlane.xlu1 %3205  ;;  %v2801_v1 = vsel %vm434_vm1, %v8165_v35, %v8172_v63  ;;  %v2556_v0 = vsel %vm413_vm4, %v8331_v60, %v8347_v19 }
 0x86c   : > { %v2624_v51 = vsel %vm396_vm6, %v2545_v12, 0.0  ;;  %v2646_v56 = vsel %vm396_vm6, %v2556_v0, 0.0  ;;  %v2590_v60 = vsel %vm413_vm4, %v8431_v7, %v8387_v33  ;;  %v2579_v35 = vsel %vm413_vm4, %v8208_v39, %v8190_v10 }
 0x86d   : > { %v2558_v63 = vsel %vm413_vm4, %v8387_v33, %v8431_v7  ;;  %v2547_v12 = vsel %vm413_vm4, %v8190_v10, %v8208_v39  ;;  %v2814_v33 = vsel %vm434_vm1, %v8433_v58, %v8461_v57  ;;  %v2846_v39 = vsel %vm434_vm1, %v8461_v57, %v8433_v58  ;;  %v10519_v58 = vld [vmem:[#allocation69_spill] sm:$0xff] }
 0x86e   : > { %v2628_v61 = vsel %vm396_vm6, %v2547_v12, 0.0  ;;  %v3441_v10 = vmul.f32 0.0078125, %v8174_v44  ;;  %v2549_v44 = vsel %vm413_vm4, %v8232_v11, %v8238_v16  ;;  %v3438_v57 = vmul.f32 0.0078125, %v10519_v58 }
 0x86f   : > { %3067 = vadd.xlane.f32.xlu0 %v2875_v3  ;;  %3245 = vadd.xlane.f32.xlu1 %v2638_v26  ;;  %v8657_v3 = vpop.permute.xlu0 %2719  ;;  %v2879_v26 = vsel %vm399_vm2, %v2801_v1, 0.0  ;;  %v8671_v19 = vpop.permute.xlu1 %2465  ;;  %v10516_v1 = vld [vmem:[#allocation75_spill] sm:$0xff] }
 0x870   : > { %v3442_v0 = vmul.f32 0.0078125, %v10516_v1  ;;  %v3169_v1 = vmul.f32 0.0078125, %v8583_v8 }
 0x873   : > { %3355 = vadd.xlane.f32.xlu0 %v2876_v62  ;;  %2961 = vadd.xlane.f32.xlu1 %v2641_v41  ;;  %v2880_v62 = vsel %vm402_vm0, %v2833_v9, 0.0  ;;  %v2649_v41 = vsel %vm393_vm7, %v2590_v60, 0.0  ;;  %v8685_v23 = vpop.permute.xlu0 %2527  ;;  %v8687_v50 = vpop.permute.xlu1 %2721  ;;  %v10518_v60 = vld [vmem:[#allocation74_spill] sm:$0xff] }
 0x877   : > { %2943 = vadd.xlane.f32.xlu0 %v2623_v42  ;;  %3249 = vadd.xlane.f32.xlu1 %v2642_v29  ;;  %v2627_v42 = vsel %vm393_vm7, %v2579_v35, 0.0  ;;  %v2650_v29 = vsel %vm396_vm6, %v2558_v63, 0.0  ;;  %v2906_v63 = vsel %vm402_vm0, %v2846_v39, 0.0 }
 0x87b   : > { %3231 = vadd.xlane.f32.xlu0 %v2624_v51  ;;  %2965 = vadd.xlane.f32.xlu1 %v2645_v45  ;;  %v2905_v51 = vsel %vm399_vm2, %v2814_v33, 0.0  ;;  %v2581_v45 = vsel %vm413_vm4, %v8238_v16, %v8232_v11  ;;  %v2592_v33 = vsel %vm413_vm4, %v8551_v28, %v8507_v30  ;;  %v3456_v11 = vmul.f32 0.0078125, %v8567_v22 }
 0x87c   : > { %v2631_v35 = vsel %vm393_vm7, %v2581_v45, 0.0  ;;  %v2653_v58 = vsel %vm393_vm7, %v2592_v33, 0.0 }
 0x87f   : > { %3071 = vadd.xlane.f32.xlu0 %v2879_v26  ;;  %3253 = vadd.xlane.f32.xlu1 %v2646_v56  ;;  %v8715_v26 = vpop.permute.xlu1 %2529  ;;  %v10517_v56 = vld [vmem:[#allocation73_spill] sm:$0xff] }
 0x880   : > { %v3153_v9 = vmul.f32 0.0078125, %v10517_v56 }
 0x882   : > { %v3538_v45 = vsel %vm3491_vm12, %v3153_v9, %v3441_v10  ;;  %v10522_v10 = vld [vmem:[#allocation83_spill] sm:$0xff]  ;;  %v10523_v9 = vld [vmem:[#allocation85_spill] sm:$0xff] }
 0x883   : > { %3359 = vadd.xlane.f32.xlu0 %v2880_v62  ;;  %2969 = vadd.xlane.f32.xlu1 %v2649_v41  ;;  %v3154_v62 = vmul.f32 0.0078125, %v10518_v60  ;;  %v2632_v60 = vsel %vm396_vm6, %v2549_v44, 0.0  ;;  %v2583_v22 = vsel %vm413_vm4, %v10523_v9, %v10522_v10  ;;  %v3167_v44 = vmul.f32 0.0078125, %v8493_v34 }
 0x885   : > { %v3539_v39 = vsel %vm3491_vm12, %v3154_v62, %v3442_v0  ;;  %v10524_v0 = vld [vmem:[#allocation71_spill] sm:$0xff] }
 0x886   : > { %v3439_v62 = vmul.f32 0.0078125, %v10524_v0 }
 0x887   : > { %2947 = vadd.xlane.f32.xlu0 %v2627_v42  ;;  %3257 = vadd.xlane.f32.xlu1 %v2650_v29  ;;  %v3328_v7 = vpop.xlane.xlu0 %3327  ;;  %v10520_v42 = vld [vmem:[#allocation72_spill] sm:$0xff] }
 0x888   : > { %v3152_v29 = vmul.f32 0.0078125, %v10520_v42  ;;  %v3457_v12 = vmul.f32 0.0078125, %v3328_v7 }
 0x88a   : > { %v3554_v8 = vsel %vm3491_vm12, %v3169_v1, %v3457_v12  ;;  %v3611_v12 = vpack.c.bf16 %v3539_v39, %v3538_v45  ;;  %v2635_v1 = vsel %vm393_vm7, %v2583_v22, 0.0  ;;  %v3165_v39 = vmul.f32 0.0078125, %v8375_v6 }
 0x88b   : > { %3235 = vadd.xlane.f32.xlu0 %v2628_v61  ;;  %3097 = vadd.xlane.f32.xlu1 %v2905_v51  ;;  %v3042_v41 = vpop.xlane.xlu0 %3041  ;;  %v10521_v61 = vld [vmem:[#allocation27_spill] sm:$0xff]  ;;  %v2585_v6 = vsel %vm413_vm4, %v8278_v4, %v8274_v37 }
 0x88c   : > { %v3440_v51 = vmul.f32 0.0078125, %v10521_v61  ;;  %v3170_v56 = vmul.f32 0.0078125, %v3042_v41 }
 0x88f   : > { %2951 = vadd.xlane.f32.xlu0 %v2631_v35  ;;  %3385 = vadd.xlane.f32.xlu1 %v2906_v63  ;;  %v3168_v35 = vmul.f32 0.0078125, %v8523_v47  ;;  %v3455_v63 = vmul.f32 0.0078125, %v8537_v59  ;;  %v2560_v47 = vsel %vm413_vm4, %v8507_v30, %v8551_v28  ;;  %v3454_v59 = vmul.f32 0.0078125, %v8447_v13  ;;  %v10526_v28 = vld [vmem:[#allocation68_spill] sm:$0xff] }
 0x890   : > { %v3330_v16 = vpop.xlane.xlu1 %3329  ;;  %v3453_v30 = vmul.f32 0.0078125, %v8417_v24  ;;  %v2654_v13 = vsel %vm396_vm6, %v2560_v47, 0.0  ;;  %v10527_v24 = vld [vmem:[#allocation67_spill] sm:$0xff]  ;;  %v10528_v47 = vld [vmem:[#allocation66_spill] sm:$0xff] }
 0x891   : > { %v3458_v7 = vmul.f32 0.0078125, %v3330_v16  ;;  %v3553_v61 = vsel %vm3491_vm12, %v3168_v35, %v3456_v11  ;;  %v10525_v16 = vld [vmem:[#allocation70_spill] sm:$0xff]  ;;  %v3552_v34 = vsel %vm3491_vm12, %v3167_v44, %v3455_v63  ;;  %v3150_v11 = vmul.f32 0.0078125, %v10526_v28 }
 0x893   : > { %3239 = vadd.xlane.f32.xlu0 %v2632_v60  ;;  %2973 = vadd.xlane.f32.xlu1 %v2653_v58  ;;  %v3555_v41 = vsel %vm3491_vm12, %v3170_v56, %v3458_v7  ;;  %v3151_v60 = vmul.f32 0.0078125, %v10525_v16  ;;  %v3537_v58 = vsel %vm3491_vm12, %v3152_v29, %v3440_v51  ;;  %v3166_v56 = vmul.f32 0.0078125, %v8403_v21 }
 0x894   : > { %v2922_v42 = vpop.xlane.xlu1 %2921  ;;  %v3619_v33 = vpack.c.bf16 %v3555_v41, %v3554_v8  ;;  %v3618_v7 = vpack.c.bf16 %v3553_v61, %v3552_v34  ;;  %v2551_v29 = vsel %vm413_vm4, %v10522_v10, %v10523_v9  ;;  %v2816_v21 = vsel %vm434_vm1, %v8553_v54, %v8581_v25 }
 0x895   : > { %v3437_v51 = vmul.f32 0.0078125, %v10527_v24  ;;  %v3536_v45 = vsel %vm3491_vm12, %v3151_v60, %v3439_v62  ;;  %v3551_v63 = vsel %vm3491_vm12, %v3166_v56, %v3454_v59  ;;  %v3535_v22 = vsel %vm3491_vm12, %v3150_v11, %v3438_v57  ;;  %v10529_v11 = vld [vmem:[#allocation55_spill] sm:$0xff] }
 0x896   : > { %5544 = vmatprep.subr.bf16.mxu1 %v3619_v33  ;;  %v3610_v0 = vpack.c.bf16 %v3537_v58, %v3536_v45  ;;  %v3110_v8 = vmul.f32 0.0078125, %v2922_v42  ;;  %v2636_v9 = vsel %vm396_vm6, %v2551_v29, 0.0  ;;  %v2909_v41 = vsel %vm399_vm2, %v2816_v21, 0.0 }
 0x897   : > { %2955 = vadd.xlane.f32.xlu0 %v2635_v1  ;;  %3261 = vadd.xlane.f32.xlu1 %v2654_v13  ;;  %v3550_v62 = vsel %vm3491_vm12, %v3165_v39, %v3453_v30  ;;  %v3149_v59 = vmul.f32 0.0078125, %v10528_v47  ;;  %v2848_v42 = vsel %vm434_vm1, %v8581_v25, %v8553_v54  ;;  %v2639_v60 = vsel %vm393_vm7, %v2585_v6, 0.0  ;;  %v10530_v39 = vld [vmem:[#allocation56_spill] sm:$0xff] }
 0x898   : > { %5545 = vmatpush3.bf16.msra.mxu1 %v3611_v12  ;;  %v3210_v35 = vpop.xlane.xlu1 %3209  ;;  %v3617_v44 = vpack.c.bf16 %v3551_v63, %v3550_v62  ;;  %v2910_v58 = vsel %vm402_vm0, %v2848_v42, 0.0  ;;  %v2553_v12 = vsel %vm413_vm4, %v8274_v37, %v8278_v4  ;;  %v2593_v54 = vsel %vm413_vm4, %v8685_v23, %v8641_v2  ;;  %v10531_v6 = vld [vmem:[#allocation44_spill] sm:$0xff] }
 0x899   : > { %5546 = vmatprep.subr.bf16.mxu1 %v3618_v7  ;;  %v3398_v10 = vmul.f32 0.0078125, %v3210_v35  ;;  %v3534_v61 = vsel %vm3491_vm12, %v3149_v59, %v3437_v51  ;;  %v2640_v30 = vsel %vm396_vm6, %v2553_v12, 0.0  ;;  %v2655_v13 = vsel %vm393_vm7, %v2593_v54, 0.0  ;;  %v8887_v54 = vpop.permute.xlu0 %2785 }
 0x89a   : > { %v3609_v16 = vpack.c.bf16 %v3535_v22, %v3534_v61  ;;  %v2587_v4 = vsel %vm413_vm4, %v8329_v43, %v8312_v40  ;;  %v2555_v7 = vsel %vm413_vm4, %v8312_v40, %v8329_v43  ;;  %v2589_v35 = vsel %vm413_vm4, %v8401_v31, %v8365_v55 }
 0x89b   : > { %v8792_v57 = vsel %vm3491_vm12, %v3110_v8, %v3398_v10  ;;  %3243 = vadd.xlane.f32.xlu0 %v2636_v9  ;;  %3101 = vadd.xlane.f32.xlu1 %v2909_v41  ;;  %v2643_v28 = vsel %vm393_vm7, %v2587_v4, 0.0  ;;  %v2644_v51 = vsel %vm396_vm6, %v2555_v7, 0.0  ;;  %v2562_v40 = vsel %vm413_vm4, %v8671_v19, %v8715_v26  ;;  %v10534_v4 = vld [vmem:[#allocation64_spill] sm:$0xff] }
 0x89c   : > { %5547 = vmatpush3.bf16.msra.mxu1 %v3610_v0  ;;  %v2926_v33 = vpop.xlane.xlu1 %2925  ;;  %v2647_v63 = vsel %vm393_vm7, %v2589_v35, 0.0  ;;  %v2658_v22 = vsel %vm396_vm6, %v2562_v40, 0.0  ;;  %v2557_v0 = vsel %vm413_vm4, %v8365_v55, %v8401_v31  ;;  %v2813_v47 = vsel %vm434_vm1, %v8357_v46, %v8373_v18  ;;  %v10532_v31 = vld [vmem:[#allocation14_spill] sm:$0xff] }
 0x89d   : > { %5548 = vmatprep.subr.bf16.mxu1 %v3617_v44  ;;  %v3112_v1 = vmul.f32 0.0078125, %v2926_v33  ;;  %v2648_v41 = vsel %vm396_vm6, %v2557_v0, 0.0  ;;  %v2903_v55 = vsel %vm399_vm2, %v2813_v47, 0.0  ;;  %v2845_v44 = vsel %vm434_vm1, %v8373_v18, %v8357_v46  ;;  %v10592_v0 = vld [vmem:[#allocation18_spill] sm:$0xff] }
 0x89e   : > { %v2812_v42 = vsel %vm434_vm1, %v8339_v15, %v8355_v48  ;;  %v2591_v18 = vsel %vm413_vm4, %v8521_v53, %v8477_v14  ;;  %v2844_v46 = vsel %vm434_vm1, %v8355_v48, %v8339_v15 }
 0x89f   : > { %2959 = vadd.xlane.f32.xlu0 %v2639_v60  ;;  %3389 = vadd.xlane.f32.xlu1 %v2910_v58  ;;  %v2904_v60 = vsel %vm402_vm0, %v2845_v44, 0.0  ;;  %v2901_v58 = vsel %vm399_vm2, %v2812_v42, 0.0 }
 0x8a0   : > { %5549 = vmatpush3.bf16.msra.mxu1 %v3609_v16  ;;  %v3214_v25 = vpop.xlane.xlu1 %3213 }
 0x8a1   : > { %v3400_v56 = vmul.f32 0.0078125, %v3214_v25 }
 0x8a3   : > { %v8816_v34 = vsel %vm3491_vm12, %v3112_v1, %v3400_v56  ;;  %3247 = vadd.xlane.f32.xlu0 %v2640_v30  ;;  %2975 = vadd.xlane.f32.xlu1 %v2655_v13  ;;  %v2651_v1 = vsel %vm393_vm7, %v2591_v18, 0.0  ;;  %v2902_v56 = vsel %vm402_vm0, %v2844_v46, 0.0  ;;  %v2559_v30 = vsel %vm413_vm4, %v8477_v14, %v8521_v53  ;;  %v10533_v13 = vld [vmem:[#allocation65_spill] sm:$0xff] }
 0x8a4   : > { %v2930_v37 = vpop.xlane.xlu1 %2929  ;;  %v2796_v15 = vsel %vm434_vm1, %v10534_v4, %v10533_v13  ;;  %v2652_v7 = vsel %vm396_vm6, %v2559_v30, 0.0  ;;  %v2815_v14 = vsel %vm434_vm1, %v8463_v36, %v8491_v20  ;;  %v2828_v53 = vsel %vm434_vm1, %v10533_v13, %v10534_v4 }
 0x8a5   : > { %v3114_v21 = vmul.f32 0.0078125, %v2930_v37  ;;  %v2907_v40 = vsel %vm399_vm2, %v2815_v14, 0.0 }
 0x8a7   : > { %2963 = vadd.xlane.f32.xlu0 %v2643_v28  ;;  %3029 = vadd.xlane.f32.xlu1 %v10529_v11 }
 0x8a8   : > { %v3218_v29 = vpop.xlane.xlu1 %3217 }
 0x8a9   : > { %v3402_v24 = vmul.f32 0.0078125, %v3218_v29  ;;  %v2869_v29 = vsel %vm399_vm2, %v2796_v15, 0.0 }
 0x8ab   : > { %v8832_v45 = vsel %vm3491_vm12, %v3114_v21, %v3402_v24  ;;  %3251 = vadd.xlane.f32.xlu0 %v2644_v51  ;;  %3317 = vadd.xlane.f32.xlu1 %v10530_v39 }
 0x8ac   : > { %v2934_v43 = vpop.xlane.xlu1 %2933 }
 0x8ad   : > { %v3116_v10 = vmul.f32 0.0078125, %v2934_v43  ;;  %v2870_v43 = vsel %vm402_vm0, %v2828_v53, 0.0 }
 0x8af   : > { %2967 = vadd.xlane.f32.xlu0 %v2647_v63  ;;  %3265 = vadd.xlane.f32.xlu1 %v2658_v22  ;;  %v2847_v22 = vsel %vm434_vm1, %v8491_v20, %v8463_v36  ;;  %v2561_v36 = vsel %vm413_vm4, %v8641_v2, %v8685_v23  ;;  %v10593_v2 = vld [vmem:[#allocation38_spill] sm:$0xff] }
 0x8b0   : > { %v3222_v8 = vpop.xlane.xlu1 %3221  ;;  %v2656_v42 = vsel %vm396_vm6, %v2561_v36, 0.0 }
 0x8b1   : > { %v3404_v9 = vmul.f32 0.0078125, %v3222_v8 }
 0x8b3   : > { %v8854_v62 = vsel %vm3491_vm12, %v3116_v10, %v3404_v9  ;;  %3255 = vadd.xlane.f32.xlu0 %v2648_v41  ;;  %2997 = vadd.xlane.f32.xlu1 %v10531_v6  ;;  %v2908_v6 = vsel %vm402_vm0, %v2847_v22, 0.0 }
 0x8b4   : > { %v2938_v59 = vpop.xlane.xlu1 %2937 }
 0x8b5   : > { %v3118_v61 = vmul.f32 0.0078125, %v2938_v59  ;;  %v10536_v59 = vld [vmem:[#allocation51_spill] sm:$0xff] }
 0x8b7   : > { %3095 = vadd.xlane.f32.xlu0 %v2903_v55  ;;  %3285 = vadd.xlane.f32.xlu1 %v10532_v31 }
 0x8b8   : > { %v3226_v33 = vpop.xlane.xlu1 %3225 }
 0x8b9   : > { %v3406_v16 = vmul.f32 0.0078125, %v3226_v33 }
 0x8bb   : > { %v8877_v12 = vsel %vm3491_vm12, %v3118_v61, %v3406_v16  ;;  %3383 = vadd.xlane.f32.xlu0 %v2904_v60  ;;  %3093 = vadd.xlane.f32.xlu1 %v2901_v58  ;;  %v10537_v61 = vld [vmem:[#allocation33_spill] sm:$0xff]  ;;  %v2817_v16 = vsel %vm434_vm1, %v8657_v3, %v8611_v32 }
 0x8bc   : > { %v3066_v25 = vpop.xlane.xlu1 %3065  ;;  %v2911_v46 = vsel %vm399_vm2, %v2817_v16, 0.0 }
 0x8bd   : > { %v3182_v28 = vmul.f32 0.0078125, %v3066_v25 }
 0x8bf   : > { %2971 = vadd.xlane.f32.xlu0 %v2651_v1  ;;  %3381 = vadd.xlane.f32.xlu1 %v2902_v56  ;;  %v10539_v1 = vld [vmem:[#allocation42_spill] sm:$0xff]  ;;  %v2849_v56 = vsel %vm434_vm1, %v8611_v32, %v8657_v3 }
 0x8c0   : > { %v2920_v48 = vpop.xlane.xlu0 %2919  ;;  %v3354_v37 = vpop.xlane.xlu1 %3353  ;;  %v10542_v32 = vld [vmem:[#allocation90_spill] sm:$0xff] }
 0x8c1   : > { %v3470_v11 = vmul.f32 0.0078125, %v3354_v37  ;;  %v3109_v39 = vmul.f32 0.0078125, %v2920_v48  ;;  %v2912_v48 = vsel %vm402_vm0, %v2849_v56, 0.0 }
 0x8c3   : > { %v8906_v21 = vsel %vm3491_vm12, %v3182_v28, %v3470_v11  ;;  %3259 = vadd.xlane.f32.xlu0 %v2652_v7  ;;  %3061 = vadd.xlane.f32.xlu1 %v2869_v29  ;;  %v10540_v28 = vld [vmem:[#allocation12_spill] sm:$0xff]  ;;  %v2594_v11 = vsel %vm413_vm4, %v8715_v26, %v8671_v19  ;;  %v10541_v7 = vld [vmem:[#allocation91_spill] sm:$0xff]  ;;  %v10596_v29 = vld [vmem:[#allocation78_spill] sm:$0xff] }
 0x8c4   : > { %10535 = vst [vmem:[#allocation75_spill] sm:$0xff] %v8906_v21  ;;  %v3208_v24 = vpop.xlane.xlu0 %3207  ;;  %v2942_v51 = vpop.xlane.xlu1 %2941  ;;  %v2810_v3 = vsel %vm434_vm1, %v10542_v32, %v10541_v7  ;;  %v2842_v26 = vsel %vm434_vm1, %v10541_v7, %v10542_v32  ;;  %v10549_v7 = vld [vmem:[#allocation13_spill] sm:$0xff]  ;;  %v10550_v32 = vld [vmem:[#allocation46_spill] sm:$0xff]  ;;  %v10600_v21 = vld [vmem:[#allocation4_spill] sm:$0xff] }
 0x8c5   : > { %v3397_v35 = vmul.f32 0.0078125, %v3208_v24  ;;  %v3120_v9 = vmul.f32 0.0078125, %v2942_v51 }
 0x8c7   : > { %v8921_v63 = vsel %vm3491_vm12, %v3109_v39, %v3397_v35  ;;  %3099 = vadd.xlane.f32.xlu0 %v2907_v40  ;;  %3349 = vadd.xlane.f32.xlu1 %v2870_v43  ;;  %v2657_v39 = vsel %vm393_vm7, %v2594_v11, 0.0  ;;  %v2897_v35 = vsel %vm399_vm2, %v2810_v3, 0.0  ;;  %v10551_v3 = vld [vmem:[#allocation93_spill] sm:$0xff] }
 0x8c8   : > { %v2924_v8 = vpop.xlane.xlu0 %2923  ;;  %v3230_v10 = vpop.xlane.xlu1 %3229 }
 0x8c9   : > { %v3408_v41 = vmul.f32 0.0078125, %v3230_v10  ;;  %v3111_v31 = vmul.f32 0.0078125, %v2924_v8  ;;  %v2898_v10 = vsel %vm402_vm0, %v2842_v26, 0.0 }
 0x8cb   : > { %v8932_v47 = vsel %vm3491_vm12, %v3120_v9, %v3408_v41  ;;  %3387 = vadd.xlane.f32.xlu0 %v2908_v6  ;;  %3025 = vadd.xlane.f32.xlu1 %v10536_v59  ;;  %v10543_v41 = vld [vmem:[#allocation53_spill] sm:$0xff]  ;;  %v10544_v6 = vld [vmem:[#allocation30_spill] sm:$0xff] }
 0x8cc   : > { %v3212_v20 = vpop.xlane.xlu0 %3211  ;;  %v3070_v55 = vpop.xlane.xlu1 %3069  ;;  %v10545_v59 = vld [vmem:[#allocation29_spill] sm:$0xff] }
 0x8cd   : > { %v3399_v44 = vmul.f32 0.0078125, %v3212_v20  ;;  %v3184_v58 = vmul.f32 0.0078125, %v3070_v55  ;;  %v2794_v36 = vsel %vm434_vm1, %v10545_v59, %v10544_v6 }
 0x8cf   : > { %v8942_v33 = vsel %vm3491_vm12, %v3111_v31, %v3399_v44  ;;  %3263 = vadd.xlane.f32.xlu0 %v2656_v42  ;;  %3313 = vadd.xlane.f32.xlu1 %v10537_v61  ;;  %v2865_v61 = vsel %vm399_vm2, %v2794_v36, 0.0 }
 0x8d0   : > { %v2928_v23 = vpop.xlane.xlu0 %2927  ;;  %v3358_v60 = vpop.xlane.xlu1 %3357 }
 0x8d1   : > { %v3472_v18 = vmul.f32 0.0078125, %v3358_v60  ;;  %v3113_v4 = vmul.f32 0.0078125, %v2928_v23  ;;  %v10547_v23 = vld [vmem:[#allocation34_spill] sm:$0xff]  ;;  %v2826_v60 = vsel %vm434_vm1, %v10544_v6, %v10545_v59 }
 0x8d2   : > { %v2866_v56 = vsel %vm402_vm0, %v2826_v60, 0.0 }
 0x8d3   : > { %v8954_v25 = vsel %vm3491_vm12, %v3184_v58, %v3472_v18  ;;  %3103 = vadd.xlane.f32.xlu0 %v2911_v46  ;;  %2993 = vadd.xlane.f32.xlu1 %v10539_v1 }
 0x8d4   : > { %10538 = vst [vmem:[#allocation73_spill] sm:$0xff] %v8954_v25  ;;  %v3216_v30 = vpop.xlane.xlu0 %3215  ;;  %v2946_v13 = vpop.xlane.xlu1 %2945 }
 0x8d5   : > { %v3401_v15 = vmul.f32 0.0078125, %v3216_v30  ;;  %v3122_v24 = vmul.f32 0.0078125, %v2946_v13  ;;  %v10548_v13 = vld [vmem:[#allocation43_spill] sm:$0xff] }
 0x8d7   : > { %v8964_v37 = vsel %vm3491_vm12, %v3113_v4, %v3401_v15  ;;  %3391 = vadd.xlane.f32.xlu0 %v2912_v48  ;;  %3281 = vadd.xlane.f32.xlu1 %v10540_v28 }
 0x8d8   : > { %v2932_v14 = vpop.xlane.xlu0 %2931  ;;  %v3234_v53 = vpop.xlane.xlu1 %3233 }
 0x8d9   : > { %v3410_v51 = vmul.f32 0.0078125, %v3234_v53  ;;  %v3115_v22 = vmul.f32 0.0078125, %v2932_v14  ;;  %v10552_v14 = vld [vmem:[#allocation92_spill] sm:$0xff] }
 0x8da   : > { %v2811_v53 = vsel %vm434_vm1, %v10552_v14, %v10551_v3 }
 0x8db   : > { %v8982_v19 = vsel %vm3491_vm12, %v3122_v24, %v3410_v51  ;;  %2977 = vadd.xlane.f32.xlu0 %v2657_v39  ;;  %3089 = vadd.xlane.f32.xlu1 %v2897_v35 }
 0x8dc   : > { %v3220_v40 = vpop.xlane.xlu0 %3219  ;;  %v3074_v43 = vpop.xlane.xlu1 %3073 }
 0x8dd   : > { %v3403_v8 = vmul.f32 0.0078125, %v3220_v40  ;;  %v3186_v44 = vmul.f32 0.0078125, %v3074_v43  ;;  %v2899_v40 = vsel %vm399_vm2, %v2811_v53, 0.0 }
 0x8df   : > { %v8991_v9 = vsel %vm3491_vm12, %v3115_v22, %v3403_v8  ;;  %3027 = vadd.xlane.f32.xlu0 %v10543_v41  ;;  %3377 = vadd.xlane.f32.xlu1 %v2898_v10  ;;  %v10554_v22 = vld [vmem:[#allocation47_spill] sm:$0xff]  ;;  %v2843_v8 = vsel %vm434_vm1, %v10551_v3, %v10552_v14  ;;  %v10584_v10 = vld [vmem:[#allocation8_spill] sm:$0xff] }
 0x8e0   : > { %v2936_v55 = vpop.xlane.xlu0 %2935  ;;  %v3362_v31 = vpop.xlane.xlu1 %3361 }
 0x8e1   : > { %v3474_v42 = vmul.f32 0.0078125, %v3362_v31  ;;  %v3117_v46 = vmul.f32 0.0078125, %v2936_v55  ;;  %v2900_v55 = vsel %vm402_vm0, %v2843_v8, 0.0  ;;  %v10555_v31 = vld [vmem:[#allocation40_spill] sm:$0xff] }
 0x8e3   : > { %v9003_v16 = vsel %vm3491_vm12, %v3186_v44, %v3474_v42  ;;  %3315 = vadd.xlane.f32.xlu0 %v10547_v23  ;;  %3057 = vadd.xlane.f32.xlu1 %v2865_v61  ;;  %v10556_v44 = vld [vmem:[#allocation63_spill] sm:$0xff]  ;;  %v10557_v42 = vld [vmem:[#allocation62_spill] sm:$0xff] }
 0x8e4   : > { %10546 = vst [vmem:[#allocation74_spill] sm:$0xff] %v9003_v16  ;;  %v3224_v58 = vpop.xlane.xlu0 %3223  ;;  %v2950_v18 = vpop.xlane.xlu1 %2949  ;;  %v2795_v61 = vsel %vm434_vm1, %v10557_v42, %v10556_v44 }
 0x8e5   : > { %v3405_v1 = vmul.f32 0.0078125, %v3224_v58  ;;  %v3124_v28 = vmul.f32 0.0078125, %v2950_v18 }
 0x8e7   : > { %v9013_v30 = vsel %vm3491_vm12, %v3117_v46, %v3405_v1  ;;  %2995 = vadd.xlane.f32.xlu0 %v10548_v13  ;;  %3345 = vadd.xlane.f32.xlu1 %v2866_v56  ;;  %v2867_v1 = vsel %vm399_vm2, %v2795_v61, 0.0  ;;  %v10558_v13 = vld [vmem:[#allocation10_spill] sm:$0xff] }
 0x8e8   : > { %v3064_v15 = vpop.xlane.xlu0 %3063  ;;  %v3238_v48 = vpop.xlane.xlu1 %3237 }
 0x8e9   : > { %v3412_v11 = vmul.f32 0.0078125, %v3238_v48  ;;  %v3181_v35 = vmul.f32 0.0078125, %v3064_v15  ;;  %v2827_v15 = vsel %vm434_vm1, %v10556_v44, %v10557_v42  ;;  %v10559_v48 = vld [vmem:[#allocation87_spill] sm:$0xff] }
 0x8eb   : > { %3283 = vadd.xlane.f32.xlu0 %v10549_v7  ;;  %3021 = vadd.xlane.f32.xlu1 %v10550_v32  ;;  %v9025_v24 = vsel %vm3491_vm12, %v3124_v28, %v3412_v11  ;;  %v10560_v28 = vld [vmem:[#allocation86_spill] sm:$0xff] }
 0x8ec   : > { %v3352_v51 = vpop.xlane.xlu0 %3351  ;;  %v2954_v39 = vpop.xlane.xlu1 %2953  ;;  %v2808_v11 = vsel %vm434_vm1, %v10560_v28, %v10559_v48 }
 0x8ed   : > { %v3469_v26 = vmul.f32 0.0078125, %v3352_v51  ;;  %v3126_v59 = vmul.f32 0.0078125, %v2954_v39  ;;  %v2868_v51 = vsel %vm402_vm0, %v2827_v15, 0.0  ;;  %v2893_v39 = vsel %vm399_vm2, %v2808_v11, 0.0 }
 0x8ef   : > { %v9030_v43 = vsel %vm3491_vm12, %v3181_v35, %v3469_v26  ;;  %3091 = vadd.xlane.f32.xlu0 %v2899_v40  ;;  %3309 = vadd.xlane.f32.xlu1 %v10554_v22  ;;  %v2840_v35 = vsel %vm434_vm1, %v10559_v48, %v10560_v28 }
 0x8f0   : > { %10553 = vst [vmem:[#allocation69_spill] sm:$0xff] %v9030_v43  ;;  %v2940_v41 = vpop.xlane.xlu0 %2939  ;;  %v3242_v6 = vpop.xlane.xlu1 %3241 }
 0x8f1   : > { %v3414_v36 = vmul.f32 0.0078125, %v3242_v6  ;;  %v3119_v18 = vmul.f32 0.0078125, %v2940_v41  ;;  %v2894_v6 = vsel %vm402_vm0, %v2840_v35, 0.0 }
 0x8f3   : > { %3379 = vadd.xlane.f32.xlu0 %v2900_v55  ;;  %2989 = vadd.xlane.f32.xlu1 %v10555_v31  ;;  %v9047_v23 = vsel %vm3491_vm12, %v3126_v59, %v3414_v36  ;;  %v10562_v36 = vld [vmem:[#allocation48_spill] sm:$0xff]  ;;  %v10563_v55 = vld [vmem:[#allocation59_spill] sm:$0xff]  ;;  %v10564_v31 = vld [vmem:[#allocation58_spill] sm:$0xff] }
 0x8f4   : > { %v3228_v60 = vpop.xlane.xlu0 %3227  ;;  %v2958_v58 = vpop.xlane.xlu1 %2957  ;;  %v2792_v44 = vsel %vm434_vm1, %v10564_v31, %v10563_v55 }
 0x8f5   : > { %v3407_v46 = vmul.f32 0.0078125, %v3228_v60  ;;  %v3128_v14 = vmul.f32 0.0078125, %v2958_v58 }
 0x8f7   : > { %v9052_v56 = vsel %vm3491_vm12, %v3119_v18, %v3407_v46  ;;  %3059 = vadd.xlane.f32.xlu0 %v2867_v1  ;;  %3277 = vadd.xlane.f32.xlu1 %v10558_v13  ;;  %v2861_v46 = vsel %vm399_vm2, %v2792_v44, 0.0  ;;  %v10565_v1 = vld [vmem:[#allocation49_spill] sm:$0xff]  ;;  %v2824_v13 = vsel %vm434_vm1, %v10563_v55, %v10564_v31  ;;  %v10570_v55 = vld [vmem:[#allocation88_spill] sm:$0xff] }
 0x8f8   : > { %v3068_v32 = vpop.xlane.xlu0 %3067  ;;  %v3246_v3 = vpop.xlane.xlu1 %3245 }
 0x8f9   : > { %v3416_v53 = vmul.f32 0.0078125, %v3246_v3  ;;  %v3183_v8 = vmul.f32 0.0078125, %v3068_v32  ;;  %v2862_v3 = vsel %vm402_vm0, %v2824_v13, 0.0  ;;  %v10572_v13 = vld [vmem:[#allocation22_spill] sm:$0xff] }
 0x8fb   : > { %3347 = vadd.xlane.f32.xlu0 %v2868_v51  ;;  %3085 = vadd.xlane.f32.xlu1 %v2893_v39  ;;  %v9074_v26 = vsel %vm3491_vm12, %v3128_v14, %v3416_v53  ;;  %v10566_v53 = vld [vmem:[#allocation41_spill] sm:$0xff] }
 0x8fc   : > { %v3356_v40 = vpop.xlane.xlu0 %3355  ;;  %v2962_v22 = vpop.xlane.xlu1 %2961 }
 0x8fd   : > { %v3471_v41 = vmul.f32 0.0078125, %v3356_v40  ;;  %v3130_v58 = vmul.f32 0.0078125, %v2962_v22  ;;  %v6167_v40 = vld [vmem:[%s10208_s7 + $0x4] ss:$24 sps:$4 sm:$0xff]  }
 0x8fe   : > { %4436 = vmatprep.mubr.bf16.mxu0 %v6167_v40  ;;  %v10574_v40 = vld [vmem:[#allocation61_spill] sm:$0xff] }
 0x8ff   : > { %v9079_v59 = vsel %vm3491_vm12, %v3183_v8, %v3471_v41  ;;  %3023 = vadd.xlane.f32.xlu0 %v10562_v36  ;;  %3373 = vadd.xlane.f32.xlu1 %v2894_v6  ;;  %v10567_v41 = vld [vmem:[#allocation11_spill] sm:$0xff]  ;;  %v10568_v6 = vld [vmem:[#allocation21_spill] sm:$0xff] }
 0x900   : > { %10561 = vst [vmem:[#allocation72_spill] sm:$0xff] %v9079_v59  ;;  %v2944_v61 = vpop.xlane.xlu0 %2943  ;;  %v3250_v60 = vpop.xlane.xlu1 %3249  ;;  %v10569_v36 = vld [vmem:[#allocation89_spill] sm:$0xff]  ;;  %v10608_v59 = vld [vmem:[#allocation79_spill] sm:$0xff] }
 0x901   : > { %v3418_v18 = vmul.f32 0.0078125, %v3250_v60  ;;  %v3121_v11 = vmul.f32 0.0078125, %v2944_v61  ;;  %v2809_v31 = vsel %vm434_vm1, %v10570_v55, %v10569_v36 }
 0x903   : > { %3311 = vadd.xlane.f32.xlu0 %v10565_v1  ;;  %3053 = vadd.xlane.f32.xlu1 %v2861_v46  ;;  %v9096_v15 = vsel %vm3491_vm12, %v3130_v58, %v3418_v18  ;;  %v2895_v46 = vsel %vm399_vm2, %v2809_v31, 0.0 }
 0x904   : > { %v3232_v48 = vpop.xlane.xlu0 %3231  ;;  %v2966_v28 = vpop.xlane.xlu1 %2965 }
 0x905   : > { %v3409_v32 = vmul.f32 0.0078125, %v3232_v48  ;;  %v3132_v22 = vmul.f32 0.0078125, %v2966_v28  ;;  %v2841_v48 = vsel %vm434_vm1, %v10569_v36, %v10570_v55 }
 0x907   : > { %v9101_v14 = vsel %vm3491_vm12, %v3121_v11, %v3409_v32  ;;  %2991 = vadd.xlane.f32.xlu0 %v10566_v53  ;;  %3341 = vadd.xlane.f32.xlu1 %v2862_v3 }
 0x908   : > { %v3072_v39 = vpop.xlane.xlu0 %3071  ;;  %v3254_v35 = vpop.xlane.xlu1 %3253 }
 0x909   : > { %v3420_v8 = vmul.f32 0.0078125, %v3254_v35  ;;  %v3185_v58 = vmul.f32 0.0078125, %v3072_v39  ;;  %v2896_v39 = vsel %vm402_vm0, %v2841_v48, 0.0  ;;  %v10573_v35 = vld [vmem:[#allocation6_spill] sm:$0xff] }
 0x90b   : > { %3279 = vadd.xlane.f32.xlu0 %v10567_v41  ;;  %3017 = vadd.xlane.f32.xlu1 %v10568_v6  ;;  %v9116_v44 = vsel %vm3491_vm12, %v3132_v22, %v3420_v8  ;;  %v10575_v22 = vld [vmem:[#allocation60_spill] sm:$0xff] }
 0x90c   : > { %v3360_v61 = vpop.xlane.xlu0 %3359  ;;  %v2970_v60 = vpop.xlane.xlu1 %2969  ;;  %v2793_v8 = vsel %vm434_vm1, %v10575_v22, %v10574_v40 }
 0x90d   : > { %v3473_v18 = vmul.f32 0.0078125, %v3360_v61  ;;  %v3134_v3 = vmul.f32 0.0078125, %v2970_v60  ;;  %v2863_v61 = vsel %vm399_vm2, %v2793_v8, 0.0  ;;  %v10576_v60 = vld [vmem:[#allocation7_spill] sm:$0xff] }
 0x90f   : > { %v9121_v1 = vsel %vm3491_vm12, %v3185_v58, %v3473_v18  ;;  %3087 = vadd.xlane.f32.xlu0 %v2895_v46  ;;  %3305 = vadd.xlane.f32.xlu1 %v10572_v13  ;;  %v2825_v58 = vsel %vm434_vm1, %v10574_v40, %v10575_v22  ;;  %v10577_v18 = vld [vmem:[#allocation81_spill] sm:$0xff]  ;;  %v10578_v46 = vld [vmem:[#allocation28_spill] sm:$0xff] }
 0x910   : > { %10571 = vst [vmem:[#allocation27_spill] sm:$0xff] %v9121_v1  ;;  %v2948_v11 = vpop.xlane.xlu0 %2947  ;;  %v3258_v32 = vpop.xlane.xlu1 %3257  ;;  %v2806_v13 = vsel %vm434_vm1, %v10578_v46, %v10577_v18 }
 0x911   : > { %v3422_v53 = vmul.f32 0.0078125, %v3258_v32  ;;  %v3123_v55 = vmul.f32 0.0078125, %v2948_v11 }
 0x913   : > { %3375 = vadd.xlane.f32.xlu0 %v2896_v39  ;;  %2985 = vadd.xlane.f32.xlu1 %v10573_v35  ;;  %v9138_v41 = vsel %vm3491_vm12, %v3134_v3, %v3422_v53  ;;  %v2864_v53 = vsel %vm402_vm0, %v2825_v58, 0.0  ;;  %v2889_v39 = vsel %vm399_vm2, %v2806_v13, 0.0  ;;  %v2838_v35 = vsel %vm434_vm1, %v10577_v18, %v10578_v46 }
 0x914   : > { %v3236_v6 = vpop.xlane.xlu0 %3235  ;;  %v9140_v36 = vpop.xlane.xlu1 %3097 }
 0x915   : > { %v3411_v31 = vmul.f32 0.0078125, %v3236_v6  ;;  %v3198_v7 = vmul.f32 0.0078125, %v9140_v36 }
 0x917   : > { %3055 = vadd.xlane.f32.xlu0 %v2863_v61  ;;  %3273 = vadd.xlane.f32.xlu1 %v10576_v60  ;;  %v9154_v48 = vsel %vm3491_vm12, %v3123_v55, %v3411_v31  ;;  %v2890_v55 = vsel %vm402_vm0, %v2838_v35, 0.0  ;;  %v10579_v31 = vld [vmem:[#allocation24_spill] sm:$0xff]  ;;  %v10580_v61 = vld [vmem:[#allocation31_spill] sm:$0xff]  ;;  %v10581_v60 = vld [vmem:[#allocation54_spill] sm:$0xff] }
 0x918   : > { %v2952_v11 = vpop.xlane.xlu0 %2951  ;;  %v9156_v32 = vpop.xlane.xlu1 %3385  ;;  %v2790_v58 = vsel %vm434_vm1, %v10581_v60, %v10580_v61  ;;  %v2822_v35 = vsel %vm434_vm1, %v10580_v61, %v10581_v60 }
 0x919   : > { %v3125_v8 = vmul.f32 0.0078125, %v2952_v11 }
 0x91b   : > { %3343 = vadd.xlane.f32.xlu0 %v2864_v53  ;;  %3081 = vadd.xlane.f32.xlu1 %v2889_v39  ;;  %v2857_v53 = vsel %vm399_vm2, %v2790_v58, 0.0  ;;  %v10582_v39 = vld [vmem:[#allocation25_spill] sm:$0xff]  ;;  %v2818_v58 = vsel %vm434_vm1, %v8687_v50, %v8887_v54 }
 0x91c   : > { %v3240_v40 = vpop.xlane.xlu0 %3239  ;;  %v9168_v22 = vpop.xlane.xlu1 %2973 }
 0x91d   : > { %v3413_v6 = vmul.f32 0.0078125, %v3240_v40 }
 0x91f   : > { %3019 = vadd.xlane.f32.xlu0 %v10579_v31  ;;  %3369 = vadd.xlane.f32.xlu1 %v2890_v55  ;;  %v9178_v13 = vsel %vm3491_vm12, %v3125_v8, %v3413_v6  ;;  %v2858_v31 = vsel %vm402_vm0, %v2822_v35, 0.0  ;;  %v10586_v35 = vld [vmem:[#allocation9_spill] sm:$0xff] }
 0x920   : > { %v2956_v18 = vpop.xlane.xlu0 %2955  ;;  %v9180_v46 = vpop.xlane.xlu1 %3261 }
 0x921   : > { %v3127_v6 = vmul.f32 0.0078125, %v2956_v18 }
 0x923   : > { %3307 = vadd.xlane.f32.xlu0 %v10582_v39  ;;  %3049 = vadd.xlane.f32.xlu1 %v2857_v53  ;;  %v2913_v39 = vsel %vm399_vm2, %v2818_v58, 0.0 }
 0x924   : > { %v3244_v40 = vpop.xlane.xlu0 %3243  ;;  %v9191_v8 = vpop.xlane.xlu1 %3101 }
 0x925   : > { %10583 = vst [vmem:[#allocation83_spill] sm:$0xff] %v9191_v8  ;;  %v3415_v55 = vmul.f32 0.0078125, %v3244_v40  ;;  %v10588_v40 = vld [vmem:[#allocation82_spill] sm:$0xff] }
 0x927   : > { %2987 = vadd.xlane.f32.xlu0 %v10584_v10  ;;  %3337 = vadd.xlane.f32.xlu1 %v2858_v31  ;;  %v9201_v53 = vsel %vm3491_vm12, %v3127_v6, %v3415_v55  ;;  %v10587_v10 = vld [vmem:[#allocation84_spill] sm:$0xff]  ;;  %v2850_v6 = vsel %vm434_vm1, %v8887_v54, %v8687_v50 }
 0x928   : > { %v2960_v61 = vpop.xlane.xlu0 %2959  ;;  %v9203_v60 = vpop.xlane.xlu1 %3389  ;;  %v2807_v31 = vsel %vm434_vm1, %v10588_v40, %v10587_v10 }
 0x929   : > { %10585 = vst [vmem:[#allocation85_spill] sm:$0xff] %v9203_v60  ;;  %v3129_v28 = vmul.f32 0.0078125, %v2960_v61  ;;  %v2891_v58 = vsel %vm399_vm2, %v2807_v31, 0.0 }
 0x92b   : > { %3275 = vadd.xlane.f32.xlu0 %v10586_v35  ;;  %3105 = vadd.xlane.f32.xlu1 %v2913_v39  ;;  %v2914_v39 = vsel %vm402_vm0, %v2850_v6, 0.0  ;;  %v2839_v35 = vsel %vm434_vm1, %v10587_v10, %v10588_v40 }
 0x92c   : > { %v3248_v55 = vpop.xlane.xlu0 %3247  ;;  %v9218_v42 = vpop.xlane.xlu1 %2975  ;;  %v2892_v6 = vsel %vm402_vm0, %v2839_v35, 0.0 }
 0x92d   : > { %v3417_v3 = vmul.f32 0.0078125, %v3248_v55  ;;  %v10589_v55 = vld [vmem:[#allocation16_spill] sm:$0xff] }
 0x92f   : > { %3083 = vadd.xlane.f32.xlu0 %v2891_v58  ;;  %3393 = vadd.xlane.f32.xlu1 %v2914_v39  ;;  %v9229_v50 = vsel %vm3491_vm12, %v3129_v28, %v3417_v3  ;;  %v10590_v58 = vld [vmem:[#allocation32_spill] sm:$0xff]  ;;  %v10591_v39 = vld [vmem:[#allocation57_spill] sm:$0xff] }
 0x930   : > { %v9231_v54 = vpop.xlane.xlu0 %2963  ;;  %v9233_v61 = vpop.xlane.xlu1 %3029  ;;  %v2791_v10 = vsel %vm434_vm1, %v10591_v39, %v10590_v58  ;;  %v2823_v35 = vsel %vm434_vm1, %v10590_v58, %v10591_v39  ;;  %v10597_v58 = vld [vmem:[#allocation77_spill] sm:$0xff] }
 0x931   : > { %v2859_v40 = vsel %vm399_vm2, %v2791_v10, 0.0  ;;  %v2860_v11 = vsel %vm402_vm0, %v2823_v35, 0.0  ;;  %v2804_v39 = vsel %vm434_vm1, %v10597_v58, %v10596_v29  ;;  %v10598_v35 = vld [vmem:[#allocation20_spill] sm:$0xff] }
 0x933   : > { %3371 = vadd.xlane.f32.xlu0 %v2892_v6  ;;  %3013 = vadd.xlane.f32.xlu1 %v10589_v55 }
 0x934   : > { %v9244_v28 = vpop.xlane.xlu0 %3251  ;;  %v9246_v3 = vpop.xlane.xlu1 %3317 }
 0x937   : > { %3051 = vadd.xlane.f32.xlu0 %v2859_v40  ;;  %3301 = vadd.xlane.f32.xlu1 %v10592_v0  ;;  %v10594_v0 = vld [vmem:[#allocation19_spill] sm:$0xff]  ;;  %v10595_v40 = vld [vmem:[#allocation36_spill] sm:$0xff] }
 0x938   : > { %v9255_v6 = vpop.xlane.xlu0 %2967  ;;  %v9257_v55 = vpop.xlane.xlu1 %3265 }
 0x939   : > { %v3426_v8 = vmul.f32 0.0078125, %v9257_v55 }
 0x93b   : > { %3339 = vadd.xlane.f32.xlu0 %v2860_v11  ;;  %2981 = vadd.xlane.f32.xlu1 %v10593_v2  ;;  %v2885_v11 = vsel %vm399_vm2, %v2804_v39, 0.0  ;;  %v3486_v2 = vmul.f32 0.0078125, %v9156_v32  ;;  %v10601_v32 = vld [vmem:[#allocation35_spill] sm:$0xff] }
 0x93c   : > { %v9262_v18 = vpop.xlane.xlu0 %3255  ;;  %v9264_v10 = vpop.xlane.xlu1 %2997 }
 0x93f   : > { %3015 = vadd.xlane.f32.xlu0 %v10594_v0  ;;  %3269 = vadd.xlane.f32.xlu1 %v10595_v40  ;;  %v2836_v0 = vsel %vm434_vm1, %v10596_v29, %v10597_v58  ;;  %v9296_v58 = vsel %vm3491_vm12, %v3198_v7, %v3486_v2 }
 0x940   : > { %v3096_v31 = vpop.xlane.xlu0 %3095  ;;  %v9272_v20 = vpop.xlane.xlu1 %3285  ;;  %v2886_v39 = vsel %vm402_vm0, %v2836_v0, 0.0  ;;  %10604 = vst [vmem:[#allocation68_spill] sm:$0xff] %v9296_v58 }
 0x941   : > { %v3197_v51 = vmul.f32 0.0078125, %v3096_v31 }
 0x943   : > { %3303 = vadd.xlane.f32.xlu0 %v10598_v35  ;;  %3077 = vadd.xlane.f32.xlu1 %v2885_v11  ;;  %v10602_v11 = vld [vmem:[#allocation45_spill] sm:$0xff] }
 0x944   : > { %v3384_v40 = vpop.xlane.xlu0 %3383  ;;  %v9282_v4 = vpop.xlane.xlu1 %3093  ;;  %v2788_v35 = vsel %vm434_vm1, %v10602_v11, %v10601_v32  ;;  %v2820_v7 = vsel %vm434_vm1, %v10601_v32, %v10602_v11  ;;  %v10612_v11 = vld [vmem:[#allocation52_spill] sm:$0xff] }
 0x945   : > { %10599 = vst [vmem:[#allocation71_spill] sm:$0xff] %v9282_v4  ;;  %v3485_v43 = vmul.f32 0.0078125, %v3384_v40  ;;  %v10606_v40 = vld [vmem:[#allocation5_spill] sm:$0xff] }
 0x946   : > { %v10618_v4 = vld [vmem:[#allocation17_spill] sm:$0xff] }
 0x947   : > { %2983 = vadd.xlane.f32.xlu0 %v10600_v21  ;;  %3365 = vadd.xlane.f32.xlu1 %v2886_v39  ;;  %v9293_v29 = vsel %vm3491_vm12, %v3197_v51, %v3485_v43  ;;  %v2853_v21 = vsel %vm399_vm2, %v2788_v35, 0.0  ;;  %v10607_v39 = vld [vmem:[#allocation80_spill] sm:$0xff]  ;;  %v2854_v35 = vsel %vm402_vm0, %v2820_v7, 0.0 }
 0x948   : > { %10603 = vst [vmem:[#allocation70_spill] sm:$0xff] %v9293_v29  ;;  %v2972_v36 = vpop.xlane.xlu0 %2971  ;;  %v9298_v31 = vpop.xlane.xlu1 %3381  ;;  %v2805_v43 = vsel %vm434_vm1, %v10608_v59, %v10607_v39 }
 0x949   : > { %10605 = vst [vmem:[#allocation67_spill] sm:$0xff] %v9298_v31  ;;  %v2887_v0 = vsel %vm399_vm2, %v2805_v43, 0.0  ;;  %v10613_v43 = vld [vmem:[#allocation50_spill] sm:$0xff]  ;;  %v3424_v31 = vmul.f32 0.0078125, %v9180_v46 }
 0x94a   : > { %v2789_v7 = vsel %vm434_vm1, %v10613_v43, %v10612_v11 }
 0x94b   : > { %3271 = vadd.xlane.f32.xlu0 %v10606_v40  ;;  %3045 = vadd.xlane.f32.xlu1 %v2853_v21  ;;  %v2837_v21 = vsel %vm434_vm1, %v10607_v39, %v10608_v59  ;;  %v2855_v59 = vsel %vm399_vm2, %v2789_v7, 0.0  ;;  %v2821_v39 = vsel %vm434_vm1, %v10612_v11, %v10613_v43  ;;  %v3733_v7 = vld [vmem:[%s10209_s8 + $0x8] sm:$0xff]  ;;  %v3734_v43 = vld [vmem:[%s10209_s8 + $0x10] sm:$0xff] }
 0x94c   : > { %v3260_v51 = vpop.xlane.xlu0 %3259  ;;  %v9313_v2 = vpop.xlane.xlu1 %3061  ;;  %v2888_v32 = vsel %vm402_vm0, %v2837_v21, 0.0 }
 0x94d   : > { %10609 = vst [vmem:[#allocation66_spill] sm:$0xff] %v9313_v2  ;;  %v2856_v2 = vsel %vm402_vm0, %v2821_v39, 0.0 }
 0x94f   : > { %3079 = vadd.xlane.f32.xlu0 %v2887_v0  ;;  %3333 = vadd.xlane.f32.xlu1 %v2854_v35 }
 0x950   : > { %v9323_v40 = vpop.xlane.xlu0 %3099  ;;  %v9325_v29 = vpop.xlane.xlu1 %3349 }
 0x951   : > { %10610 = vst [vmem:[#allocation55_spill] sm:$0xff] %v9323_v40  ;;  %10611 = vst [vmem:[#allocation56_spill] sm:$0xff] %v9325_v29  ;;  %v3736_v40 = vld [vmem:[%s10209_s8 + $0x20] sm:$0xff] }
 0x953   : > { %3367 = vadd.xlane.f32.xlu0 %v2888_v32 }
 0x954   : > { %v9333_v0 = vpop.xlane.xlu0 %3387  ;;  %v9335_v35 = vpop.xlane.xlu1 %3025 }
 0x955   : > { %10614 = vst [vmem:[#allocation44_spill] sm:$0xff] %v9333_v0 }
 0x957   : > { %3047 = vadd.xlane.f32.xlu0 %v2855_v59  ;;  %v10616_v59 = vld [vmem:[#allocation15_spill] sm:$0xff] }
 0x958   : > { %v3264_v21 = vpop.xlane.xlu0 %3263  ;;  %v9343_v32 = vpop.xlane.xlu1 %3313 }
 0x959   : > { %v3425_v39 = vmul.f32 0.0078125, %v3264_v21  ;;  %v3421_v21 = vmul.f32 0.0078125, %v9262_v18 }
 0x95b   : > { %3335 = vadd.xlane.f32.xlu0 %v2856_v2  ;;  %v3423_v2 = vmul.f32 0.0078125, %v3260_v51  ;;  %v3136_v51 = vmul.f32 0.0078125, %v9168_v22  ;;  %v3738_v22 = vld [vmem:[%s10209_s8 + $0x30] sm:$0xff] }
 0x95c   : > { %v9347_v58 = vpop.xlane.xlu0 %3103  ;;  %v9349_v29 = vpop.xlane.xlu1 %2993 }
 0x95d   : > { %10615 = vst [vmem:[#allocation14_spill] sm:$0xff] %v9347_v58  ;;  %v3521_v18 = vsel %vm3491_vm12, %v3136_v51, %v3424_v31 }
 0x95f   : > { %3011 = vadd.xlane.f32.xlu0 %v10616_v59  ;;  %v3137_v59 = vmul.f32 0.0078125, %v9218_v42 }
 0x960   : > { %v9355_v25 = vpop.xlane.xlu0 %3391  ;;  %3771 = vperm.xlu1 %5832, %v3733_v7   ;;  %v9357_v11 = vpop.xlane.xlu1 %3281  ;;  %v3135_v7 = vmul.f32 0.0078125, %v2972_v36  ;;  %v3133_v36 = vmul.f32 0.0078125, %v9255_v6  ;;  %v10622_v6 = vld [vmem:[#allocation37_spill] sm:$0xff] }
 0x961   : > { %10617 = vst [vmem:[#allocation65_spill] sm:$0xff] %v9355_v25  ;;  %v3522_v46 = vsel %vm3491_vm12, %v3137_v59, %v3425_v39  ;;  %v10620_v59 = vld [vmem:[#allocation3_spill] sm:$0xff] }
 0x962   : > { %v3520_v42 = vsel %vm3491_vm12, %v3135_v7, %v3423_v2  ;;  %v3452_v2 = vmul.f32 0.0078125, %v9246_v3  ;;  %v3518_v7 = vsel %vm3491_vm12, %v3133_v36, %v3421_v21 }
 0x963   : > { %3299 = vadd.xlane.f32.xlu0 %v10618_v4  ;;  %v10619_v4 = vld [vmem:[#allocation39_spill] sm:$0xff]  ;;  %v3602_v39 = vpack.c.bf16 %v3521_v18, %v3520_v42  ;;  %v3436_v18 = vmul.f32 0.0078125, %v9272_v20  ;;  %v3148_v20 = vmul.f32 0.0078125, %v9264_v10 }
 0x964   : > { %v2978_v1 = vpop.xlane.xlu0 %2977  ;;  %3776 = vperm.xlu1 %5832, %v3734_v43   ;;  %v3090_v16 = vpop.xlane.xlu1 %3089 }
 0x965   : > { %v3138_v58 = vmul.f32 0.0078125, %v2978_v1  ;;  %v3194_v25 = vmul.f32 0.0078125, %v3090_v16  ;;  %v10623_v16 = vpack.c.bf16 %v8982_v19, %v9101_v14  ;;  %v3740_v19 = vld [vmem:[%s10209_s8 + $0x40] sm:$0xff] }
 0x967   : > { %2979 = vadd.xlane.f32.xlu0 %v10619_v4  ;;  %v3523_v43 = vsel %vm3491_vm12, %v3138_v58, %v3426_v8  ;;  %v10621_v8 = vld [vmem:[#allocation76_spill] sm:$0xff] }
 0x968   : > { %v3028_v60 = vpop.xlane.xlu0 %3027  ;;  %3786 = vperm.xlu1 %5832, %v3736_v40   ;;  %v3378_v55 = vpop.xlane.xlu1 %3377  ;;  %v3603_v1 = vpack.c.bf16 %v3523_v43, %v3522_v46  ;;  %v2803_v58 = vsel %vm434_vm1, %v10621_v8, %v10620_v59  ;;  %v3419_v40 = vmul.f32 0.0078125, %v9244_v28  ;;  %v3131_v46 = vmul.f32 0.0078125, %v9231_v54 }
 0x969   : > { %v3482_v0 = vmul.f32 0.0078125, %v3378_v55  ;;  %v3164_v28 = vmul.f32 0.0078125, %v9233_v61  ;;  %v3163_v3 = vmul.f32 0.0078125, %v3028_v60  ;;  %v2883_v14 = vsel %vm399_vm2, %v2803_v58, 0.0  ;;  %v10627_v58 = vld [vmem:[#allocation23_spill] sm:$0xff] }
 0x96a   : > { %5432 = vmatprep.subr.bf16.mxu0 %v3603_v1  ;;  %v10624_v54 = vpack.c.bf16 %v8932_v47, %v9052_v56  ;;  %v3516_v21 = vsel %vm3491_vm12, %v3131_v46, %v3419_v40 }
 0x96b   : > { %3267 = vadd.xlane.f32.xlu0 %v10622_v6  ;;  %5433 = vmatpush3.bf16.msra.mxu0 %v10623_v16  ;;  %v9392_v31 = vsel %vm3491_vm12, %v3194_v25, %v3482_v0  ;;  %v3601_v25 = vpack.c.bf16 %v9138_v41, %v3518_v7  ;;  %v2835_v0 = vsel %vm434_vm1, %v10620_v59, %v10621_v8  ;;  %v10626_v8 = vld [vmem:[#allocation26_spill] sm:$0xff] }
 0x96c   : > { %v3316_v51 = vpop.xlane.xlu0 %3315  ;;  %3796 = vperm.xlu1 %5832, %v3738_v22   ;;  %5434 = vmatprep.subr.bf16.mxu0 %v3602_v39  ;;  %v3058_v4 = vpop.xlane.xlu1 %3057  ;;  %v3549_v61 = vsel %vm3491_vm12, %v3164_v28, %v3452_v2  ;;  %v3742_v22 = vld [vmem:[%s10209_s8 + $0x50] sm:$0xff]  ;;  %v2884_v47 = vsel %vm402_vm0, %v2835_v0, 0.0  ;;  %v3600_v56 = vpack.c.bf16 %v9116_v44, %v3516_v21  ;;  %v10625_v59 = vpack.c.bf16 %v8877_v12, %v9013_v30  ;;  %v3744_v7 = vld [vmem:[%s10209_s8 + $0x60] sm:$0xff] }
 0x96d   : > { %v3451_v43 = vmul.f32 0.0078125, %v3316_v51  ;;  %v3178_v1 = vmul.f32 0.0078125, %v3058_v4  ;;  %v2787_v40 = vsel %vm434_vm1, %v10627_v58, %v10626_v8  ;;  %v3533_v30 = vsel %vm3491_vm12, %v3148_v20, %v3436_v18 }
 0x96e   : > { %v2851_v12 = vsel %vm399_vm2, %v2787_v40, 0.0  ;;  %v10628_v4 = vpack.c.bf16 %v8854_v62, %v8991_v9  ;;  %v2819_v10 = vsel %vm434_vm1, %v10626_v8, %v10627_v58  ;;  %v3746_v62 = vld [vmem:[%s10209_s8 + $0x70] sm:$0xff]  ;;  %v3108_v0 = vmul.f32 0.0078125, %v8627_v27 }
 0x96f   : > { %3075 = vadd.xlane.f32.xlu0 %v2883_v14  ;;  %5435 = vmatpush3.bf16.msra.mxu0 %v10624_v54  ;;  %v3548_v60 = vsel %vm3491_vm12, %v3163_v3, %v3451_v43  ;;  %v10629_v3 = vpack.c.bf16 %v9096_v15, %v9229_v50  ;;  %v2852_v9 = vsel %vm402_vm0, %v2819_v10, 0.0  ;;  %v10631_v50 = vpack.c.bf16 %v9074_v26, %v9201_v53  ;;  %v6170_v8 = vld [vmem:[%s10208_s7 + $0x30] ss:$24 sps:$4 sm:$0xff]  }
 0x970   : > { %v2996_v42 = vpop.xlane.xlu0 %2995  ;;  %3806 = vperm.xlu1 %5832, %v3740_v19   ;;  %5436 = vmatprep.subr.bf16.mxu0 %v3601_v25  ;;  %v3346_v41 = vpop.xlane.xlu1 %3345  ;;  %v3616_v55 = vpack.c.bf16 %v3549_v61, %v3548_v60  ;;  %v10630_v19 = vpack.c.bf16 %v8832_v45, %v8964_v37  ;;  %v3396_v25 = vmul.f32 0.0078125, %v8643_v49  ;;  %v10632_v45 = vpack.c.bf16 %v8816_v34, %v8942_v33  ;;  %v3750_v49 = vld [vmem:[%s10209_s8 + $0x90] sm:$0xff] }
 0x971   : > { %v3466_v36 = vmul.f32 0.0078125, %v3346_v41  ;;  %v3147_v44 = vmul.f32 0.0078125, %v2996_v42  ;;  %v3395_v37 = vmul.f32 0.0078125, %v8613_v38  ;;  %v10633_v26 = vpack.c.bf16 %v9047_v23, %v9178_v13  ;;  %v3754_v41 = vld [vmem:[%s10209_s8 + $0xb0] sm:$0xff] }
 0x972   : > { %5550 = vmatprep.subr.bf16.mxu1 %v3616_v55  ;;  %v3107_v34 = vmul.f32 0.0078125, %v8597_v17  ;;  %v3493_v33 = vsel %vm3491_vm12, %v3108_v0, %v3396_v25  ;;  %v10634_v38 = vpack.c.bf16 %v8792_v57, %v8921_v63  ;;  %v10635_v23 = vpack.c.bf16 %v9025_v24, %v9154_v48  ;;  %v3752_v17 = vld [vmem:[%s10209_s8 + $0xa0] sm:$0xff]  ;;  %v6168_v63 = vld [vmem:[%s10208_s7 + $0x34] ss:$24 sps:$4 sm:$0xff]  }
 0x973   : > { %v9420_v39 = vsel %vm3491_vm12, %v3178_v1, %v3466_v36  ;;  %3363 = vadd.xlane.f32.xlu0 %v2884_v47  ;;  %5437 = vmatpush3.bf16.msra.mxu0 %v10625_v59  ;;  %v6165_v57 = vld [vmem:[%s10208_s7] ss:$24 sps:$4 sm:$0xff]   ;;  %v3450_v55 = vmul.f32 0.0078125, %v9343_v32  ;;  %v3162_v47 = vmul.f32 0.0078125, %v9335_v35  ;;  %v6171_v35 = vld [vmem:[%s10208_s7 + $0x64] ss:$24 sps:$4 sm:$0xff]  }
 0x974   : > { %v3284_v2 = vpop.xlane.xlu0 %3283  ;;  %3816 = vperm.xlu1 %5832, %v3742_v22   ;;  %5438 = vmatprep.subr.bf16.mxu0 %v3600_v56  ;;  %v9429_v6 = vpop.xlane.xlu1 %3021  ;;  %v3492_v27 = vsel %vm3491_vm12, %v3107_v34, %v3395_v37  ;;  %v3756_v59 = vld [vmem:[%s10209_s8 + $0xc0] sm:$0xff]  ;;  %v3762_v25 = vld [vmem:[%s10209_s8 + $0xf0] sm:$0xff] }
 0x975   : > { %v3435_v16 = vmul.f32 0.0078125, %v3284_v2  ;;  %v3588_v61 = vpack.c.bf16 %v3493_v33, %v3492_v27  ;;  %v3732_v32 = vld [vmem:[%s10209_s8] sm:$0xff]  ;;  %v3547_v40 = vsel %vm3491_vm12, %v3162_v47, %v3450_v55  ;;  %v3743_v27 = vld [vmem:[%s10209_s8 + $0x58] sm:$0xff]  ;;  %v3160_v55 = vmul.f32 0.0078125, %v9429_v6 }
 0x976   : > { %v6177_v34 = vld [vmem:[%s10208_s7 + $0xc4] ss:$24 sps:$4 sm:$0xff]  }
 0x977   : > { %v3532_v51 = vsel %vm3491_vm12, %v3147_v44, %v3435_v16  ;;  %3043 = vadd.xlane.f32.xlu0 %v2851_v12  ;;  %5439 = vmatpush3.bf16.msra.mxu0 %v10628_v4  ;;  %v3758_v16 = vld [vmem:[%s10209_s8 + $0xd0] sm:$0xff]  ;;  %v3434_v12 = vmul.f32 0.0078125, %v9357_v11  ;;  %v3146_v4 = vmul.f32 0.0078125, %v9349_v29  ;;  %v6173_v11 = vld [vmem:[%s10208_s7 + $0x60] ss:$24 sps:$4 sm:$0xff]  }
 0x978   : > { %v3608_v46 = vpack.c.bf16 %v3533_v30, %v3532_v51  ;;  %v9446_v28 = vpop.xlane.xlu0 %3091  ;;  %3826 = vperm.xlu1 %5832, %v3744_v7   ;;  %5440 = vmatprep.subr.bf16.mxu0 %v10629_v3  ;;  %v9451_v43 = vpop.xlane.xlu1 %3309  ;;  %v3735_v7 = vld [vmem:[%s10209_s8 + $0x18] sm:$0xff]  ;;  %v3760_v3 = vld [vmem:[%s10209_s8 + $0xe0] sm:$0xff]  ;;  %v6174_v29 = vld [vmem:[%s10208_s7 + $0x94] ss:$24 sps:$4 sm:$0xff]  }
 0x97a   : > { %5551 = vmatpush3.bf16.msra.mxu1 %v3608_v46 }
 0x97b   : > { %3331 = vadd.xlane.f32.xlu0 %v2852_v9  ;;  %5441 = vmatpush3.bf16.msra.mxu0 %v10630_v19  ;;  %v3531_v9 = vsel %vm3491_vm12, %v3146_v4, %v3434_v12  ;;  %v6185_v4 = vld [vmem:[%s10208_s7 + $0x120] ss:$24 sps:$4 sm:$0xff]  }
 0x97c   : > { %v9464_v15 = vpop.xlane.xlu0 %3379  ;;  %3836 = vperm.xlu1 %5832, %v3746_v62   ;;  %5442 = vmatprep.subr.bf16.mxu0 %v10631_v50  ;;  %v9469_v14 = vpop.xlane.xlu1 %2989  ;;  %v3737_v62 = vld [vmem:[%s10209_s8 + $0x28] sm:$0xff] }
 0x97f   : > { %5443 = vmatpush3.bf16.msra.mxu0 %v10632_v45  ;;  %v3739_v45 = vld [vmem:[%s10209_s8 + $0x38] sm:$0xff] }
 0x980   : > { %v9480_v54 = vpop.xlane.xlu0 %3059  ;;  %5444 = vmatprep.subr.bf16.mxu0 %v10633_v26  ;;  %3846 = vperm.xlu1 %5832, %v3748_v52   ;;  %v9485_v53 = vpop.xlane.xlu1 %3277  ;;  %v3741_v26 = vld [vmem:[%s10209_s8 + $0x48] sm:$0xff] }
 0x983   : > { %5445 = vmatpush3.bf16.msra.mxu0 %v10634_v38 }
 0x984   : > { %v9496_v60 = vpop.xlane.xlu0 %3347  ;;  %5446 = vmatprep.subr.bf16.mxu0 %v10635_v23  ;;  %3856 = vperm.xlu1 %5832, %v3750_v49   ;;  %v3086_v13 = vpop.xlane.xlu1 %3085  ;;  %v6176_v49 = vld [vmem:[%s10208_s7 + $0x90] ss:$24 sps:$4 sm:$0xff]  }
 0x985   : > { %v3192_v48 = vmul.f32 0.0078125, %v3086_v13 }
 0x987   : > { %5447 = vmatpush3.bf16.msra.mxu0 %v3588_v61  ;;  %v3745_v61 = vld [vmem:[%s10209_s8 + $0x68] sm:$0xff] }
 0x988   : > { %v3024_v21 = vpop.xlane.xlu0 %3023  ;;  %3866 = vperm.xlu1 %5832, %v3752_v17   ;;  %v3374_v24 = vpop.xlane.xlu1 %3373  ;;  %v6179_v17 = vld [vmem:[%s10208_s7 + $0xc0] ss:$24 sps:$4 sm:$0xff]  }
 0x989   : > { %v3480_v42 = vmul.f32 0.0078125, %v3374_v24  ;;  %v3161_v56 = vmul.f32 0.0078125, %v3024_v21  ;;  %v3747_v24 = vld [vmem:[%s10209_s8 + $0x78] sm:$0xff] }
 0x98a   : > { %4437 = vmatmul.mubr.bf16.vlgmr.msra.gmra.mxu0 %v6165_v57  ;;  %v6180_v57 = vld [vmem:[%s10208_s7 + $0xf4] ss:$24 sps:$4 sm:$0xff]  }
 0x98b   : > { %4444 = vmatprep.mubr.bf16.mxu0 %v6168_v63  ;;  %v9515_v1 = vsel %vm3491_vm12, %v3192_v48, %v3480_v42  ;;  %v3448_v48 = vmul.f32 0.0078125, %v9451_v43 }
 0x98c   : > { %v3312_v36 = vpop.xlane.xlu0 %3311  ;;  %3876 = vperm.xlu1 %5832, %v3754_v41   ;;  %v9517_v22 = vpop.xlane.xlu1 %3053 }
 0x98d   : > { %v3449_v18 = vmul.f32 0.0078125, %v3312_v36  ;;  %v3545_v43 = vsel %vm3491_vm12, %v3160_v55, %v3448_v48 }
 0x98f   : > { %v3546_v58 = vsel %vm3491_vm12, %v3161_v56, %v3449_v18  ;;  %v3749_v56 = vld [vmem:[%s10209_s8 + $0x88] sm:$0xff] }
 0x990   : > { %v2992_v2 = vpop.xlane.xlu0 %2991  ;;  %3886 = vperm.xlu1 %5832, %v3756_v59   ;;  %v9534_v20 = vpop.xlane.xlu1 %3341  ;;  %v3615_v44 = vpack.c.bf16 %v3547_v40, %v3546_v58  ;;  %v6182_v18 = vld [vmem:[%s10208_s7 + $0xf0] ss:$24 sps:$4 sm:$0xff]   ;;  %v3751_v40 = vld [vmem:[%s10209_s8 + $0x98] sm:$0xff] }
 0x991   : > { %3766 = vperm.xlu0 %5821, %v3732_v32   ;;  %v3145_v10 = vmul.f32 0.0078125, %v2992_v2  ;;  %v6183_v32 = vld [vmem:[%s10208_s7 + $0x124] ss:$24 sps:$4 sm:$0xff]  }
 0x992   : > { %4445 = vmatmul.mubr.bf16.gmra.mxu0 %v6170_v8  ;;  %5552 = vmatprep.subr.bf16.mxu1 %v3615_v44 }
 0x993   : > { %4452 = vmatprep.mubr.bf16.mxu0 %v6171_v35  ;;  %v3432_v35 = vmul.f32 0.0078125, %v9485_v53 }
 0x994   : > { %v3280_v30 = vpop.xlane.xlu0 %3279  ;;  %3896 = vperm.xlu1 %5832, %v3758_v16   ;;  %v9543_v51 = vpop.xlane.xlu1 %3017  ;;  %v3144_v16 = vmul.f32 0.0078125, %v9469_v14  ;;  %v6186_v14 = vld [vmem:[%s10208_s7 + $0x154] ss:$24 sps:$4 sm:$0xff]  }
 0x995   : > { %v3433_v46 = vmul.f32 0.0078125, %v3280_v30  ;;  %3781 = vperm.xlu0 %5821, %v3735_v7   ;;  %v3753_v30 = vld [vmem:[%s10209_s8 + $0xa8] sm:$0xff] }
 0x997   : > { %v3530_v5 = vsel %vm3491_vm12, %v3145_v10, %v3433_v46  ;;  %v10636_v10 = vld [vmem:[#allocation44_spill] sm:$0xff] }
 0x998   : > { %v3607_v19 = vpack.c.bf16 %v3531_v9, %v3530_v5  ;;  %v9560_v50 = vpop.xlane.xlu0 %3087  ;;  %3906 = vperm.xlu1 %5832, %v3760_v3   ;;  %v9562_v52 = vpop.xlane.xlu1 %3305  ;;  %v3487_v46 = vmul.f32 0.0078125, %v10636_v10  ;;  %v10637_v3 = vld [vmem:[#allocation65_spill] sm:$0xff] }
 0x999   : > { %3791 = vperm.xlu0 %5821, %v3737_v62   ;;  %v3489_v53 = vmul.f32 0.0078125, %v10637_v3  ;;  %v3529_v62 = vsel %vm3491_vm12, %v3144_v16, %v3432_v35  ;;  %v10638_v9 = vld [vmem:[#allocation85_spill] sm:$0xff]  ;;  %v3195_v16 = vmul.f32 0.0078125, %v9446_v28  ;;  %v10650_v28 = vld [vmem:[#allocation56_spill] sm:$0xff] }
 0x99a   : > { %4453 = vmatmul.mubr.bf16.gmra.mxu0 %v6173_v11  ;;  %5553 = vmatpush3.bf16.msra.mxu1 %v3607_v19  ;;  %v3488_v5 = vmul.f32 0.0078125, %v10638_v9  ;;  %v10647_v10 = vld [vmem:[#allocation73_spill] sm:$0xff]  ;;  %v10652_v9 = vld [vmem:[#allocation70_spill] sm:$0xff] }
 0x99b   : > { %4460 = vmatprep.mubr.bf16.mxu0 %v6174_v29 }
 0x99c   : > { %v9570_v37 = vpop.xlane.xlu0 %3375  ;;  %3916 = vperm.xlu1 %5832, %v3762_v25   ;;  %v9572_v0 = vpop.xlane.xlu1 %2985 }
 0x99d   : > { %3801 = vperm.xlu0 %5821, %v3739_v45   ;;  %v10639_v45 = vld [vmem:[#allocation55_spill] sm:$0xff] }
 0x9a0   : > { %v9583_v33 = vpop.xlane.xlu0 %3055  ;;  %v9585_v38 = vpop.xlane.xlu1 %3273 }
 0x9a1   : > { %3811 = vperm.xlu0 %5821, %v3741_v26   ;;  %v3199_v26 = vmul.f32 0.0078125, %v10639_v45 }
 0x9a2   : > { %4461 = vmatmul.mubr.bf16.gmra.mxu0 %v6176_v49  ;;  %v10640_v49 = vld [vmem:[#allocation14_spill] sm:$0xff] }
 0x9a3   : > { %4468 = vmatprep.mubr.bf16.mxu0 %v6177_v34  ;;  %v3201_v34 = vmul.f32 0.0078125, %v10640_v49 }
 0x9a4   : > { %v9590_v23 = vpop.xlane.xlu0 %3343  ;;  %v9592_v13 = vpop.xlane.xlu1 %3081 }
 0x9a5   : > { %3821 = vperm.xlu0 %5821, %v3743_v27   ;;  %v3465_v49 = vmul.f32 0.0078125, %v9590_v23  ;;  %v6192_v23 = vld [vmem:[%s10208_s7 + $0x1b4] ss:$24 sps:$4 sm:$0xff]  }
 0x9a8   : > { %v3020_v63 = vpop.xlane.xlu0 %3019  ;;  %v9603_v21 = vpop.xlane.xlu1 %3369 }
 0x9a9   : > { %3831 = vperm.xlu0 %5821, %v3745_v61   ;;  %v3159_v36 = vmul.f32 0.0078125, %v3020_v63 }
 0x9aa   : > { %4469 = vmatmul.mubr.bf16.gmra.mxu0 %v6179_v17  ;;  %v3755_v17 = vld [vmem:[%s10209_s8 + $0xb8] sm:$0xff] }
 0x9ab   : > { %4476 = vmatprep.mubr.bf16.mxu0 %v6180_v57  ;;  %v10641_v57 = vld [vmem:[#allocation83_spill] sm:$0xff] }
 0x9ac   : > { %v3308_v42 = vpop.xlane.xlu0 %3307  ;;  %v9609_v41 = vpop.xlane.xlu1 %3049  ;;  %v3200_v63 = vmul.f32 0.0078125, %v10641_v57 }
 0x9ad   : > { %v3447_v47 = vmul.f32 0.0078125, %v3308_v42  ;;  %3841 = vperm.xlu0 %5821, %v3747_v24   ;;  %v3586_v24 = vsel %vm3491_vm12, %v3201_v34, %v3489_v53  ;;  %v3584_v42 = vsel %vm3491_vm12, %v3199_v26, %v3487_v46  ;;  %v10648_v46 = vld [vmem:[#allocation72_spill] sm:$0xff] }
 0x9ae   : > { %v10649_v3 = vpack.c.bf16 %v10647_v10, %v10648_v46 }
 0x9af   : > { %v3544_v59 = vsel %vm3491_vm12, %v3159_v36, %v3447_v47  ;;  %v3585_v47 = vsel %vm3491_vm12, %v3200_v63, %v3488_v5 }
 0x9b0   : > { %v2988_v6 = vpop.xlane.xlu0 %2987  ;;  %v9623_v8 = vpop.xlane.xlu1 %3337  ;;  %v3614_v58 = vpack.c.bf16 %v3545_v43, %v3544_v59  ;;  %v6188_v59 = vld [vmem:[%s10208_s7 + $0x150] ss:$24 sps:$4 sm:$0xff]   ;;  %v3483_v43 = vmul.f32 0.0078125, %v9464_v15  ;;  %v3759_v15 = vld [vmem:[%s10209_s8 + $0xd8] sm:$0xff] }
 0x9b1   : > { %3851 = vperm.xlu0 %5821, %v3749_v56   ;;  %v3143_v7 = vmul.f32 0.0078125, %v2988_v6  ;;  %v3634_v56 = vpack.c.bf16 %v3585_v47, %v3584_v42  ;;  %v10643_v6 = vld [vmem:[#allocation27_spill] sm:$0xff] }
 0x9b2   : > { %4477 = vmatmul.mubr.bf16.gmra.mxu0 %v6182_v18  ;;  %5554 = vmatprep.subr.bf16.mxu1 %v3614_v58  ;;  %v3757_v18 = vld [vmem:[%s10209_s8 + $0xc8] sm:$0xff]  ;;  %v3580_v53 = vsel %vm3491_vm12, %v3195_v16, %v3483_v43  ;;  %v3446_v43 = vmul.f32 0.0078125, %v9562_v52 }
 0x9b3   : > { %4484 = vmatprep.mubr.bf16.mxu0 %v6183_v32  ;;  %v10642_v32 = vld [vmem:[#allocation74_spill] sm:$0xff] }
 0x9b4   : > { %v3276_v2 = vpop.xlane.xlu0 %3275  ;;  %v3106_v44 = vpop.xlane.xlu1 %3105  ;;  %v10644_v58 = vpack.c.bf16 %v10642_v32, %v10643_v6  ;;  %v3464_v32 = vmul.f32 0.0078125, %v9534_v20  ;;  %v6194_v20 = vld [vmem:[%s10208_s7 + $0x1b0] ss:$24 sps:$4 sm:$0xff]  }
 0x9b5   : > { %v3431_v12 = vmul.f32 0.0078125, %v3276_v2  ;;  %3861 = vperm.xlu0 %5821, %v3751_v40   ;;  %v3202_v27 = vmul.f32 0.0078125, %v3106_v44  ;;  %v6189_v40 = vld [vmem:[%s10208_s7 + $0x184] ss:$24 sps:$4 sm:$0xff]  }
 0x9b6   : > { %v10645_v2 = vld [vmem:[#allocation67_spill] sm:$0xff] }
 0x9b7   : > { %v3528_v11 = vsel %vm3491_vm12, %v3143_v7, %v3431_v12  ;;  %v3484_v44 = vmul.f32 0.0078125, %v10645_v2  ;;  %v3467_v7 = vmul.f32 0.0078125, %v9496_v60  ;;  %v10646_v12 = vld [vmem:[#allocation71_spill] sm:$0xff]  ;;  %v3179_v60 = vmul.f32 0.0078125, %v9480_v54 }
 0x9b8   : > { %v3606_v29 = vpack.c.bf16 %v3529_v62, %v3528_v11  ;;  %v3084_v19 = vpop.xlane.xlu0 %3083  ;;  %v3394_v25 = vpop.xlane.xlu1 %3393  ;;  %v3468_v62 = vmul.f32 0.0078125, %v10650_v28  ;;  %v3761_v54 = vld [vmem:[%s10209_s8 + $0xe8] sm:$0xff] }
 0x9b9   : > { %v3490_v61 = vmul.f32 0.0078125, %v3394_v25  ;;  %3871 = vperm.xlu0 %5821, %v3753_v30   ;;  %v3196_v30 = vmul.f32 0.0078125, %v10646_v12  ;;  %v10654_v25 = vld [vmem:[#allocation66_spill] sm:$0xff]  ;;  %v3564_v26 = vsel %vm3491_vm12, %v3179_v60, %v3467_v7  ;;  %v3191_v47 = vmul.f32 0.0078125, %v3084_v19 }
 0x9ba   : > { %4485 = vmatmul.mubr.bf16.gmra.mxu0 %v6185_v4  ;;  %5555 = vmatpush3.bf16.msra.mxu1 %v3606_v29  ;;  %v3481_v4 = vmul.f32 0.0078125, %v9570_v37  ;;  %v3193_v29 = vmul.f32 0.0078125, %v9560_v50  ;;  %v3180_v45 = vmul.f32 0.0078125, %v10654_v25  ;;  %v10655_v50 = vld [vmem:[#allocation75_spill] sm:$0xff] }
 0x9bb   : > { %v3587_v48 = vsel %vm3491_vm12, %v3202_v27, %v3490_v61  ;;  %4492 = vmatprep.mubr.bf16.mxu0 %v6186_v14  ;;  %v10651_v14 = vld [vmem:[#allocation68_spill] sm:$0xff]  ;;  %v3581_v37 = vsel %vm3491_vm12, %v3196_v30, %v3484_v44  ;;  %v6191_v27 = vld [vmem:[%s10208_s7 + $0x180] ss:$24 sps:$4 sm:$0xff]   ;;  %v3176_v44 = vmul.f32 0.0078125, %v9517_v22 }
 0x9bc   : > { %v3372_v55 = vpop.xlane.xlu0 %3371  ;;  %v3635_v36 = vpack.c.bf16 %v3587_v48, %v3586_v24  ;;  %v10653_v5 = vpack.c.bf16 %v10651_v14, %v10652_v9  ;;  %v3632_v34 = vpack.c.bf16 %v3581_v37, %v3580_v53  ;;  %v3578_v63 = vsel %vm3491_vm12, %v3193_v29, %v3481_v4  ;;  %v6197_v53 = vld [vmem:[%s10208_s7 + $0x1e0] ss:$24 sps:$4 sm:$0xff]   ;;  %v6200_v25 = vld [vmem:[%s10208_s7 + $0x210] ss:$24 sps:$4 sm:$0xff]  }
 0x9bd   : > { %3881 = vperm.xlu0 %5821, %v3755_v17   ;;  %v3479_v61 = vmul.f32 0.0078125, %v3372_v55  ;;  %v10656_v17 = vld [vmem:[#allocation69_spill] sm:$0xff]  ;;  %v3565_v24 = vsel %vm3491_vm12, %v3180_v45, %v3468_v62  ;;  %v3177_v48 = vmul.f32 0.0078125, %v9583_v33  ;;  %v3561_v7 = vsel %vm3491_vm12, %v3176_v44, %v3464_v32  ;;  %v6209_v32 = vld [vmem:[%s10208_s7 + $0x2a4] ss:$24 sps:$4 sm:$0xff]  }
 0x9be   : > { %5656 = vmatprep.subr.bf16.mxu0 %v3635_v36  ;;  %v10657_v57 = vpack.c.bf16 %v10655_v50, %v10656_v17  ;;  %v3624_v36 = vpack.c.bf16 %v3565_v24, %v3564_v26  ;;  %v3142_v4 = vmul.f32 0.0078125, %v9572_v0  ;;  %v3478_v0 = vmul.f32 0.0078125, %v9603_v21  ;;  %v6206_v24 = vld [vmem:[%s10208_s7 + $0x274] ss:$24 sps:$4 sm:$0xff]  }
 0x9bf   : > { %5657 = vmatpush3.bf16.msra.mxu0 %v10644_v58  ;;  %v3562_v55 = vsel %vm3491_vm12, %v3177_v48, %v3465_v49  ;;  %v3576_v33 = vsel %vm3491_vm12, %v3191_v47, %v3479_v61  ;;  %v3158_v58 = vmul.f32 0.0078125, %v9543_v51  ;;  %v6201_v49 = vld [vmem:[%s10208_s7 + $0x244] ss:$24 sps:$4 sm:$0xff]   ;;  %v3174_v61 = vmul.f32 0.0078125, %v9609_v41 }
 0x9c0   : > { %v3052_v35 = vpop.xlane.xlu0 %3051  ;;  %5658 = vmatprep.subr.bf16.mxu0 %v3634_v56  ;;  %v3630_v16 = vpack.c.bf16 %v9515_v1, %v3576_v33  ;;  %v3430_v1 = vmul.f32 0.0078125, %v9585_v38  ;;  %v6198_v38 = vld [vmem:[%s10208_s7 + $0x214] ss:$24 sps:$4 sm:$0xff]  }
 0x9c1   : > { %3891 = vperm.xlu0 %5821, %v3757_v18   ;;  %v3631_v18 = vpack.c.bf16 %v9392_v31, %v3578_v63  ;;  %v3175_v19 = vmul.f32 0.0078125, %v3052_v35  ;;  %v3543_v51 = vsel %vm3491_vm12, %v3158_v58, %v3446_v43 }
 0x9c2   : > { %4493 = vmatmul.mubr.bf16.gmra.mxu0 %v6188_v59  ;;  %v3763_v59 = vld [vmem:[%s10209_s8 + $0xf8] sm:$0xff]  ;;  %v3527_v28 = vsel %vm3491_vm12, %v3142_v4, %v3430_v1 }
 0x9c3   : > { %5659 = vmatpush3.bf16.msra.mxu0 %v10649_v3  ;;  %4500 = vmatprep.mubr.bf16.mxu0 %v6189_v40  ;;  %v3623_v40 = vpack.c.bf16 %v9420_v39, %v3562_v55  ;;  %v6195_v39 = vld [vmem:[%s10208_s7 + $0x1e4] ss:$24 sps:$4 sm:$0xff]   ;;  %v3014_v3 = vpop.xlane.xlu1 %3013 }
 0x9c4   : > { %v3340_v11 = vpop.xlane.xlu0 %3339  ;;  %5660 = vmatprep.subr.bf16.mxu0 %v10653_v5  ;;  %v3190_v5 = vmul.f32 0.0078125, %v9592_v13  ;;  %v3462_v13 = vmul.f32 0.0078125, %v9623_v8  ;;  %v3156_v47 = vmul.f32 0.0078125, %v3014_v3  ;;  %v6213_v3 = vld [vmem:[%s10208_s7 + $0x2d0] ss:$24 sps:$4 sm:$0xff]  }
 0x9c5   : > { %3901 = vperm.xlu0 %5821, %v3759_v15   ;;  %v3463_v56 = vmul.f32 0.0078125, %v3340_v11 }
 0x9c6   : > { %v3575_v26 = vsel %vm3491_vm12, %v3190_v5, %v3478_v0  ;;  %v3559_v63 = vsel %vm3491_vm12, %v3174_v61, %v3462_v13  ;;  %v6216_v0 = vld [vmem:[%s10208_s7 + $0x38] ss:$24 sps:$4 sm:$0xff]   ;;  %v6230_v13 = vld [vmem:[%s10208_s7 + $0x44] ss:$24 sps:$4 sm:$0xff]  }
 0x9c7   : > { %5661 = vmatpush3.bf16.msra.mxu0 %v10657_v57  ;;  %v3560_v52 = vsel %vm3491_vm12, %v3175_v19, %v3463_v56  ;;  %v3302_v14 = vpop.xlane.xlu1 %3301  ;;  %v6203_v57 = vld [vmem:[%s10208_s7 + $0x240] ss:$24 sps:$4 sm:$0xff]  }
 0x9c8   : > { %v3016_v42 = vpop.xlane.xlu0 %3015  ;;  %5662 = vmatprep.subr.bf16.mxu0 %v3632_v34  ;;  %v3622_v12 = vpack.c.bf16 %v3561_v7, %v3560_v52  ;;  %v6228_v61 = vld [vmem:[%s10208_s7 + $0x40] ss:$24 sps:$4 sm:$0xff]  }
 0x9c9   : > { %3911 = vperm.xlu0 %5821, %v3761_v54   ;;  %v3157_v31 = vmul.f32 0.0078125, %v3016_v42 }
 0x9ca   : > { %4501 = vmatmul.mubr.bf16.gmra.mxu0 %v6191_v27 }
 0x9cb   : > { %5663 = vmatpush3.bf16.msra.mxu0 %v3624_v36  ;;  %4508 = vmatprep.mubr.bf16.mxu0 %v6192_v23  ;;  %v2982_v54 = vpop.xlane.xlu1 %2981  ;;  %v3444_v36 = vmul.f32 0.0078125, %v3302_v14  ;;  %v6221_v14 = vld [vmem:[%s10208_s7 + $0x6c] ss:$24 sps:$4 sm:$0xff]  }
 0x9cc   : > { %v3304_v6 = vpop.xlane.xlu0 %3303  ;;  %5664 = vmatprep.subr.bf16.mxu0 %v3631_v18 }
 0x9cd   : > { %v3445_v2 = vmul.f32 0.0078125, %v3304_v6  ;;  %3921 = vperm.xlu0 %5821, %v3763_v59   ;;  %v6204_v59 = vld [vmem:[%s10208_s7 + $0x270] ss:$24 sps:$4 sm:$0xff]   ;;  %v3541_v33 = vsel %vm3491_vm12, %v3156_v47, %v3444_v36  ;;  %v6248_v36 = vld [vmem:[%s10208_s7 + $0xd4] ss:$24 sps:$4 sm:$0xff]  }
 0x9ce   : > { %v6246_v47 = vld [vmem:[%s10208_s7 + $0xd0] ss:$24 sps:$4 sm:$0xff]  }
 0x9cf   : > { %5665 = vmatpush3.bf16.msra.mxu0 %v3623_v40  ;;  %v3542_v35 = vsel %vm3491_vm12, %v3157_v31, %v3445_v2  ;;  %v3270_v48 = vpop.xlane.xlu1 %3269  ;;  %v3140_v2 = vmul.f32 0.0078125, %v2982_v54  ;;  %v6227_v54 = vld [vmem:[%s10208_s7 + $0x9c] ss:$24 sps:$4 sm:$0xff]  }
 0x9d0   : > { %v2984_v22 = vpop.xlane.xlu0 %2983  ;;  %5666 = vmatprep.subr.bf16.mxu0 %v3630_v16  ;;  %v3613_v15 = vpack.c.bf16 %v3543_v51, %v3542_v35  ;;  %v3428_v58 = vmul.f32 0.0078125, %v3270_v48  ;;  %v6207_v16 = vld [vmem:[%s10208_s7 + $0x2a0] ss:$24 sps:$4 sm:$0xff]   ;;  %v6215_v51 = vld [vmem:[%s10208_s7 + $0x2d4] ss:$24 sps:$4 sm:$0xff]  }
 0x9d1   : > { %v3141_v10 = vmul.f32 0.0078125, %v2984_v22  ;;  %v6210_v22 = vld [vmem:[%s10208_s7 + $0x8] ss:$24 sps:$4 sm:$0xff]   ;;  %v6237_v48 = vld [vmem:[%s10208_s7 + $0xf8] ss:$24 sps:$4 sm:$0xff]  }
 0x9d2   : > { %4509 = vmatmul.mubr.bf16.gmra.mxu0 %v6194_v20  ;;  %5556 = vmatprep.subr.bf16.mxu1 %v3613_v15  ;;  %v3525_v20 = vsel %vm3491_vm12, %v3140_v2, %v3428_v58  ;;  %v6266_v58 = vld [vmem:[%s10208_s7 + $0x164] ss:$24 sps:$4 sm:$0xff]  }
 0x9d3   : > { %5667 = vmatpush3.bf16.msra.mxu0 %v3622_v12  ;;  %4516 = vmatprep.mubr.bf16.mxu0 %v6195_v39  ;;  %v3078_v18 = vpop.xlane.xlu1 %3077  ;;  %v6218_v12 = vld [vmem:[%s10208_s7 + $0x3c] ss:$24 sps:$4 sm:$0xff]   ;;  %v6269_v2 = vld [vmem:[%s10208_s7 + $0x1ec] ss:$24 sps:$4 sm:$0xff]  }
 0x9d4   : > { %v3272_v30 = vpop.xlane.xlu0 %3271  ;;  %v3188_v4 = vmul.f32 0.0078125, %v3078_v18  ;;  %v6249_v18 = vld [vmem:[%s10208_s7 + $0x158] ss:$24 sps:$4 sm:$0xff]  }
 0x9d5   : > { %v3429_v46 = vmul.f32 0.0078125, %v3272_v30 }
 0x9d7   : > { %v3526_v62 = vsel %vm3491_vm12, %v3141_v10, %v3429_v46  ;;  %v3366_v40 = vpop.xlane.xlu1 %3365 }
 0x9d8   : > { %v3605_v60 = vpack.c.bf16 %v3527_v28, %v3526_v62  ;;  %v3080_v11 = vpop.xlane.xlu0 %3079  ;;  %v3476_v1 = vmul.f32 0.0078125, %v3366_v40  ;;  %v6224_v62 = vld [vmem:[%s10208_s7 + $0x14] ss:$24 sps:$4 sm:$0xff]   ;;  %v6261_v40 = vld [vmem:[%s10208_s7 + $0x1b8] ss:$24 sps:$4 sm:$0xff]  }
 0x9d9   : > { %v3189_v29 = vmul.f32 0.0078125, %v3080_v11 }
 0x9da   : > { %4517 = vmatmul.mubr.bf16.gmra.mxu0 %v6197_v53  ;;  %5557 = vmatpush3.bf16.msra.mxu1 %v3605_v60  ;;  %v3573_v28 = vsel %vm3491_vm12, %v3188_v4, %v3476_v1  ;;  %v6273_v1 = vld [vmem:[%s10208_s7 + $0x218] ss:$24 sps:$4 sm:$0xff]  }
 0x9db   : > { %4524 = vmatprep.mubr.bf16.mxu0 %v6198_v38  ;;  %v3046_v15 = vpop.xlane.xlu1 %3045 }
 0x9dc   : > { %v3368_v9 = vpop.xlane.xlu0 %3367 }
 0x9dd   : > { %v3477_v37 = vmul.f32 0.0078125, %v3368_v9 }
 0x9df   : > { %v3574_v45 = vsel %vm3491_vm12, %v3189_v29, %v3477_v37  ;;  %v3334_v38 = vpop.xlane.xlu1 %3333  ;;  %v3172_v29 = vmul.f32 0.0078125, %v3046_v15 }
 0x9e0   : > { %v3048_v21 = vpop.xlane.xlu0 %3047  ;;  %v3629_v34 = vpack.c.bf16 %v3575_v26, %v3574_v45  ;;  %v3460_v9 = vmul.f32 0.0078125, %v3334_v38 }
 0x9e1   : > { %v3173_v50 = vmul.f32 0.0078125, %v3048_v21  ;;  %v6219_v21 = vld [vmem:[%s10208_s7 + $0x68] ss:$24 sps:$4 sm:$0xff]  }
 0x9e2   : > { %4525 = vmatmul.mubr.bf16.gmra.mxu0 %v6200_v25  ;;  %5668 = vmatprep.subr.bf16.mxu0 %v3629_v34  ;;  %v3557_v45 = vsel %vm3491_vm12, %v3172_v29, %v3460_v9  ;;  %v6222_v34 = vld [vmem:[%s10208_s7 + $0x10] ss:$24 sps:$4 sm:$0xff]   ;;  %v6290_v9 = vld [vmem:[%s10208_s7 + $0x224] ss:$24 sps:$4 sm:$0xff]  }
 0x9e3   : > { %4532 = vmatprep.mubr.bf16.mxu0 %v6201_v49 }
 0x9e4   : > { %v3336_v27 = vpop.xlane.xlu0 %3335 }
 0x9e5   : > { %v3461_v17 = vmul.f32 0.0078125, %v3336_v27  ;;  %v6225_v27 = vld [vmem:[%s10208_s7 + $0x98] ss:$24 sps:$4 sm:$0xff]  }
 0x9e7   : > { %v3558_v23 = vsel %vm3491_vm12, %v3173_v50, %v3461_v17  ;;  %v6233_v50 = vld [vmem:[%s10208_s7 + $0xcc] ss:$24 sps:$4 sm:$0xff]  }
 0x9e8   : > { %v3621_v8 = vpack.c.bf16 %v3559_v63, %v3558_v23  ;;  %v3012_v42 = vpop.xlane.xlu0 %3011  ;;  %v6236_v17 = vld [vmem:[%s10208_s7 + $0x74] ss:$24 sps:$4 sm:$0xff]   ;;  %v6234_v63 = vld [vmem:[%s10208_s7 + $0x70] ss:$24 sps:$4 sm:$0xff]  }
 0x9e9   : > { %v3155_v55 = vmul.f32 0.0078125, %v3012_v42  ;;  %v6239_v23 = vld [vmem:[%s10208_s7 + $0xfc] ss:$24 sps:$4 sm:$0xff]   ;;  %v6245_v42 = vld [vmem:[%s10208_s7 + $0x12c] ss:$24 sps:$4 sm:$0xff]  }
 0x9ea   : > { %4533 = vmatmul.mubr.bf16.gmra.mxu0 %v6203_v57  ;;  %v6231_v57 = vld [vmem:[%s10208_s7 + $0xc8] ss:$24 sps:$4 sm:$0xff]  }
 0x9eb   : > { %5669 = vmatpush3.bf16.msra.mxu0 %v3621_v8  ;;  %4540 = vmatprep.mubr.bf16.mxu0 %v6206_v24  ;;  %v6242_v24 = vld [vmem:[%s10208_s7 + $0xa4] ss:$24 sps:$4 sm:$0xff]   ;;  %v6240_v8 = vld [vmem:[%s10208_s7 + $0xa0] ss:$24 sps:$4 sm:$0xff]  }
 0x9ec   : > { %v3300_v41 = vpop.xlane.xlu0 %3299 }
 0x9ed   : > { %v3443_v56 = vmul.f32 0.0078125, %v3300_v41  ;;  %v6243_v41 = vld [vmem:[%s10208_s7 + $0x128] ss:$24 sps:$4 sm:$0xff]  }
 0x9ef   : > { %v3540_v43 = vsel %vm3491_vm12, %v3155_v55, %v3443_v56  ;;  %v6251_v55 = vld [vmem:[%s10208_s7 + $0x15c] ss:$24 sps:$4 sm:$0xff]  }
 0x9f0   : > { %v2980_v19 = vpop.xlane.xlu0 %2979  ;;  %v3612_v6 = vpack.c.bf16 %v3541_v33, %v3540_v43  ;;  %v6254_v56 = vld [vmem:[%s10208_s7 + $0x104] ss:$24 sps:$4 sm:$0xff]   ;;  %v6260_v33 = vld [vmem:[%s10208_s7 + $0x134] ss:$24 sps:$4 sm:$0xff]  }
 0x9f1   : > { %v3139_v44 = vmul.f32 0.0078125, %v2980_v19  ;;  %v6257_v43 = vld [vmem:[%s10208_s7 + $0x18c] ss:$24 sps:$4 sm:$0xff]   ;;  %v6258_v19 = vld [vmem:[%s10208_s7 + $0x130] ss:$24 sps:$4 sm:$0xff]  }
 0x9f2   : > { %4541 = vmatmul.mubr.bf16.gmra.mxu0 %v6204_v59  ;;  %5558 = vmatprep.subr.bf16.mxu1 %v3612_v6  ;;  %v6252_v59 = vld [vmem:[%s10208_s7 + $0x100] ss:$24 sps:$4 sm:$0xff]   ;;  %v6263_v6 = vld [vmem:[%s10208_s7 + $0x1bc] ss:$24 sps:$4 sm:$0xff]  }
 0x9f3   : > { %4548 = vmatprep.mubr.bf16.mxu0 %v6209_v32  ;;  %v6255_v32 = vld [vmem:[%s10208_s7 + $0x188] ss:$24 sps:$4 sm:$0xff]  }
 0x9f4   : > { %v3268_v31 = vpop.xlane.xlu0 %3267 }
 0x9f5   : > { %v3427_v52 = vmul.f32 0.0078125, %v3268_v31  ;;  %v6264_v31 = vld [vmem:[%s10208_s7 + $0x160] ss:$24 sps:$4 sm:$0xff]  }
 0x9f7   : > { %v3524_v35 = vsel %vm3491_vm12, %v3139_v44, %v3427_v52  ;;  %v6272_v44 = vld [vmem:[%s10208_s7 + $0x194] ss:$24 sps:$4 sm:$0xff]   ;;  %v6267_v52 = vld [vmem:[%s10208_s7 + $0x1e8] ss:$24 sps:$4 sm:$0xff]  }
 0x9f8   : > { %v3604_v39 = vpack.c.bf16 %v3525_v20, %v3524_v35  ;;  %v3076_v7 = vpop.xlane.xlu0 %3075  ;;  %v6275_v35 = vld [vmem:[%s10208_s7 + $0x21c] ss:$24 sps:$4 sm:$0xff]  }
 0x9f9   : > { %v3187_v10 = vmul.f32 0.0078125, %v3076_v7 }
 0x9fa   : > { %4549 = vmatmul.mubr.bf16.gmra.mxu0 %v6207_v16  ;;  %5559 = vmatpush3.bf16.msra.mxu1 %v3604_v39  ;;  %v6270_v16 = vld [vmem:[%s10208_s7 + $0x190] ss:$24 sps:$4 sm:$0xff]  }
 0x9fb   : > { %4556 = vmatprep.mubr.bf16.mxu0 %v6215_v51  ;;  %v6278_v51 = vld [vmem:[%s10208_s7 + $0x1c4] ss:$24 sps:$4 sm:$0xff]  }
 0x9fc   : > { %v3364_v30 = vpop.xlane.xlu0 %3363 }
 0x9fd   : > { %v3475_v46 = vmul.f32 0.0078125, %v3364_v30  ;;  %4598 = vmatmul.mubr.bf16.vlgmr.msra.gmra.mxu1 %v6210_v22  ;;  %v6276_v30 = vld [vmem:[%s10208_s7 + $0x1c0] ss:$24 sps:$4 sm:$0xff]  }
 0x9fe   : > { %4605 = vmatprep.mubr.bf16.mxu1 %v6218_v12 }
 0x9ff   : > { %v3572_v53 = vsel %vm3491_vm12, %v3187_v10, %v3475_v46  ;;  %v6281_v10 = vld [vmem:[%s10208_s7 + $0x24c] ss:$24 sps:$4 sm:$0xff]  }
 0xa00   : > { %v3044_v60 = vpop.xlane.xlu0 %3043  ;;  %v3628_v11 = vpack.c.bf16 %v3573_v28, %v3572_v53  ;;  %v6284_v46 = vld [vmem:[%s10208_s7 + $0x1f4] ss:$24 sps:$4 sm:$0xff]  }
 0xa01   : > { %v3171_v37 = vmul.f32 0.0078125, %v3044_v60  ;;  %v6279_v60 = vld [vmem:[%s10208_s7 + $0x248] ss:$24 sps:$4 sm:$0xff]  }
 0xa02   : > { %4557 = vmatmul.mubr.bf16.gmra.mxu0 %v6213_v3  ;;  %5670 = vmatprep.subr.bf16.mxu0 %v3628_v11  ;;  %v6282_v11 = vld [vmem:[%s10208_s7 + $0x1f0] ss:$24 sps:$4 sm:$0xff]  }
 0xa03   : > { %4758 = vmatprep.mubr.bf16.mxu0 %v6224_v62 }
 0xa04   : > { %v3332_v5 = vpop.xlane.xlu0 %3331 }
 0xa05   : > { %v3459_v25 = vmul.f32 0.0078125, %v3332_v5  ;;  %4606 = vmatmul.mubr.bf16.gmra.mxu1 %v6216_v0 }
 0xa06   : > { %4613 = vmatprep.mubr.bf16.mxu1 %v6221_v14  ;;  %v6287_v14 = vld [vmem:[%s10208_s7 + $0x27c] ss:$24 sps:$4 sm:$0xff]  }
 0xa07   : > { %v3556_v26 = vsel %vm3491_vm12, %v3171_v37, %v3459_v25 }
 0xa08   : > { %v3620_v49 = vpack.c.bf16 %v3557_v45, %v3556_v26  ;;  %v6285_v26 = vld [vmem:[%s10208_s7 + $0x278] ss:$24 sps:$4 sm:$0xff]  }
 0xa0a   : > { %5671 = vmatpush3.bf16.msra.mxu0 %v3620_v49  ;;  %v6288_v49 = vld [vmem:[%s10208_s7 + $0x220] ss:$24 sps:$4 sm:$0xff]  }
 0xa0d   : > { %4614 = vmatmul.mubr.bf16.gmra.mxu1 %v6219_v21  ;;  %4759 = vmatmul.mubr.bf16.vlgmr.msra.gmra.mxu0 %v6222_v34  ;;  %v6293_v34 = vld [vmem:[%s10208_s7 + $0x2ac] ss:$24 sps:$4 sm:$0xff]  }
 0xa0e   : > { %4621 = vmatprep.mubr.bf16.mxu1 %v6227_v54  ;;  %4766 = vmatprep.mubr.bf16.mxu0 %v6230_v13  ;;  %v6296_v54 = vld [vmem:[%s10208_s7 + $0x254] ss:$24 sps:$4 sm:$0xff]  }
 0xa15   : > { %4622 = vmatmul.mubr.bf16.gmra.mxu1 %v6225_v27  ;;  %4767 = vmatmul.mubr.bf16.gmra.mxu0 %v6228_v61 }
 0xa16   : > { %4629 = vmatprep.mubr.bf16.mxu1 %v6233_v50  ;;  %4774 = vmatprep.mubr.bf16.mxu0 %v6236_v17 }
 0xa1d   : > { %4630 = vmatmul.mubr.bf16.gmra.mxu1 %v6231_v57  ;;  %4775 = vmatmul.mubr.bf16.gmra.mxu0 %v6234_v63  ;;  %v6291_v57 = vld [vmem:[%s10208_s7 + $0x2a8] ss:$24 sps:$4 sm:$0xff]  }
 0xa1e   : > { %4637 = vmatprep.mubr.bf16.mxu1 %v6239_v23  ;;  %4782 = vmatprep.mubr.bf16.mxu0 %v6242_v24  ;;  %v6294_v63 = vld [vmem:[%s10208_s7 + $0x250] ss:$24 sps:$4 sm:$0xff]   ;;  %v6299_v24 = vld [vmem:[%s10208_s7 + $0x2dc] ss:$24 sps:$4 sm:$0xff]  }
 0xa25   : > { %4638 = vmatmul.mubr.bf16.gmra.mxu1 %v6237_v48  ;;  %4783 = vmatmul.mubr.bf16.gmra.mxu0 %v6240_v8  ;;  %v6302_v48 = vld [vmem:[%s10208_s7 + $0x284] ss:$24 sps:$4 sm:$0xff]  }
 0xa26   : > { %4645 = vmatprep.mubr.bf16.mxu1 %v6245_v42  ;;  %4790 = vmatprep.mubr.bf16.mxu0 %v6248_v36 }
 0xa2d   : > { %4646 = vmatmul.mubr.bf16.gmra.mxu1 %v6243_v41  ;;  %4791 = vmatmul.mubr.bf16.gmra.mxu0 %v6246_v47 }
 0xa2e   : > { %4653 = vmatprep.mubr.bf16.mxu1 %v6251_v55  ;;  %4798 = vmatprep.mubr.bf16.mxu0 %v6254_v56  ;;  %v6297_v55 = vld [vmem:[%s10208_s7 + $0x2d8] ss:$24 sps:$4 sm:$0xff]  }
 0xa2f   : > { %v6300_v56 = vld [vmem:[%s10208_s7 + $0x280] ss:$24 sps:$4 sm:$0xff]  }
 0xa35   : > { %4654 = vmatmul.mubr.bf16.gmra.mxu1 %v6249_v18  ;;  %4799 = vmatmul.mubr.bf16.gmra.mxu0 %v6252_v59  ;;  %v6305_v59 = vld [vmem:[%s10208_s7 + $0x2b4] ss:$24 sps:$4 sm:$0xff]  }
 0xa36   : > { %4661 = vmatprep.mubr.bf16.mxu1 %v6257_v43  ;;  %4806 = vmatprep.mubr.bf16.mxu0 %v6260_v33 }
 0xa3d   : > { %4662 = vmatmul.mubr.bf16.gmra.mxu1 %v6255_v32  ;;  %4807 = vmatmul.mubr.bf16.gmra.mxu0 %v6258_v19 }
 0xa3e   : > { %4669 = vmatprep.mubr.bf16.mxu1 %v6263_v6  ;;  %4814 = vmatprep.mubr.bf16.mxu0 %v6266_v58  ;;  %v6303_v58 = vld [vmem:[%s10208_s7 + $0x2b0] ss:$24 sps:$4 sm:$0xff]  }
 0xa45   : > { %4670 = vmatmul.mubr.bf16.gmra.mxu1 %v6261_v40  ;;  %4815 = vmatmul.mubr.bf16.gmra.mxu0 %v6264_v31  ;;  %v6308_v31 = vld [vmem:[%s10208_s7 + $0x2e4] ss:$24 sps:$4 sm:$0xff]  }
 0xa46   : > { %4677 = vmatprep.mubr.bf16.mxu1 %v6269_v2  ;;  %4822 = vmatprep.mubr.bf16.mxu0 %v6272_v44 }
 0xa4a   : > { %v5448_v20 = vpop.f32.mrf.mxu0 }
 0xa4c   : > { %v5449_v39 = vpop.f32.mrf.mxu0 }
 0xa4d   : > { %v9902_v7 = vadd.f32 %v5449_v39, %v5448_v20  ;;  %4678 = vmatmul.mubr.bf16.gmra.mxu1 %v6267_v52  ;;  %4823 = vmatmul.mubr.bf16.gmra.mxu0 %v6270_v16 }
 0xa4e   : > { %v5451_v22 = vpop.f32.mrf.mxu0  ;;  %4685 = vmatprep.mubr.bf16.mxu1 %v6275_v35  ;;  %4830 = vmatprep.mubr.bf16.mxu0 %v6278_v51  ;;  %v6306_v35 = vld [vmem:[%s10208_s7 + $0x2e0] ss:$24 sps:$4 sm:$0xff]  }
 0xa50   : > { %v5452_v15 = vpop.f32.mrf.mxu0 }
 0xa51   : > { %v9904_v12 = vadd.f32 %v5452_v15, %v5451_v22 }
 0xa52   : > { %v5454_v4 = vpop.f32.mrf.mxu0 }
 0xa54   : > { %v5455_v3 = vpop.f32.mrf.mxu0 }
 0xa55   : > { %v9918_v53 = vadd.f32 %v5455_v3, %v5454_v4  ;;  %4686 = vmatmul.mubr.bf16.gmra.mxu1 %v6273_v1  ;;  %4831 = vmatmul.mubr.bf16.gmra.mxu0 %v6276_v30 }
 0xa56   : > { %v5457_v28 = vpop.f32.mrf.mxu0  ;;  %4693 = vmatprep.mubr.bf16.mxu1 %v6281_v10  ;;  %4838 = vmatprep.mubr.bf16.mxu0 %v6284_v46 }
 0xa58   : > { %v5458_v62 = vpop.f32.mrf.mxu0 }
 0xa59   : > { %v9920_v38 = vadd.f32 %v5458_v62, %v5457_v28 }
 0xa5a   : > { %v5460_v0 = vpop.f32.mrf.mxu0 }
 0xa5c   : > { %v5461_v5 = vpop.f32.mrf.mxu0 }
 0xa5d   : > { %v9934_v29 = vadd.f32 %v5461_v5, %v5460_v0  ;;  %4694 = vmatmul.mubr.bf16.gmra.mxu1 %v6279_v60  ;;  %4839 = vmatmul.mubr.bf16.gmra.mxu0 %v6282_v11 }
 0xa5e   : > { %v5463_v37 = vpop.f32.mrf.mxu0  ;;  %4701 = vmatprep.mubr.bf16.mxu1 %v6287_v14  ;;  %4846 = vmatprep.mubr.bf16.mxu0 %v6290_v9 }
 0xa60   : > { %v5464_v25 = vpop.f32.mrf.mxu0 }
 0xa61   : > { %v9936_v45 = vadd.f32 %v5464_v25, %v5463_v37 }
 0xa62   : > { %v5466_v21 = vpop.f32.mrf.mxu0 }
 0xa64   : > { %v5467_v13 = vpop.f32.mrf.mxu0 }
 0xa65   : > { %v9950_v27 = vadd.f32 %v5467_v13, %v5466_v21  ;;  %4702 = vmatmul.mubr.bf16.gmra.mxu1 %v6285_v26  ;;  %4847 = vmatmul.mubr.bf16.gmra.mxu0 %v6288_v49 }
 0xa66   : > { %v5469_v61 = vpop.f32.mrf.mxu0  ;;  %4709 = vmatprep.mubr.bf16.mxu1 %v6293_v34  ;;  %4854 = vmatprep.mubr.bf16.mxu0 %v6296_v54 }
 0xa68   : > { %v5470_v50 = vpop.f32.mrf.mxu0 }
 0xa69   : > { %v9952_v17 = vadd.f32 %v5470_v50, %v5469_v61 }
 0xa6a   : > { %v5472_v23 = vpop.f32.mrf.mxu0 }
 0xa6c   : > { %v5473_v8 = vpop.f32.mrf.mxu0 }
 0xa6d   : > { %v9966_v42 = vadd.f32 %v5473_v8, %v5472_v23  ;;  %4710 = vmatmul.mubr.bf16.gmra.mxu1 %v6291_v57  ;;  %4855 = vmatmul.mubr.bf16.gmra.mxu0 %v6294_v63 }
 0xa6e   : > { %v5475_v36 = vpop.f32.mrf.mxu0  ;;  %4717 = vmatprep.mubr.bf16.mxu1 %v6299_v24  ;;  %4862 = vmatprep.mubr.bf16.mxu0 %v6302_v48 }
 0xa70   : > { %v5476_v41 = vpop.f32.mrf.mxu0 }
 0xa71   : > { %v9968_v47 = vadd.f32 %v5476_v41, %v5475_v36 }
 0xa72   : > { %v5478_v18 = vpop.f32.mrf.mxu0 }
 0xa74   : > { %v5479_v43 = vpop.f32.mrf.mxu0 }
 0xa75   : > { %v9979_v33 = vadd.f32 %v5479_v43, %v5478_v18  ;;  %4718 = vmatmul.mubr.bf16.gmra.mxu1 %v6297_v55  ;;  %4863 = vmatmul.mubr.bf16.gmra.mxu0 %v6300_v56 }
 0xa76   : > { %v5481_v32 = vpop.f32.mrf.mxu0  ;;  %4870 = vmatprep.mubr.bf16.mxu0 %v6305_v59 }
 0xa78   : > { %v5482_v19 = vpop.f32.mrf.mxu0 }
 0xa79   : > { %v9981_v6 = vadd.f32 %v5482_v19, %v5481_v32 }
 0xa7a   : > { %v5484_v40 = vpop.f32.mrf.mxu0 }
 0xa7c   : > { %v5485_v2 = vpop.f32.mrf.mxu0 }
 0xa7d   : > { %v9989_v44 = vadd.f32 %v5485_v2, %v5484_v40  ;;  %4871 = vmatmul.mubr.bf16.gmra.mxu0 %v6303_v58 }
 0xa7e   : > { %v5487_v52 = vpop.f32.mrf.mxu0  ;;  %4878 = vmatprep.mubr.bf16.mxu0 %v6308_v31 }
 0xa80   : > { %v5488_v16 = vpop.f32.mrf.mxu0 }
 0xa81   : > { %v9991_v20 = vadd.f32 %v5488_v16, %v5487_v52  ;;  %v3767_v52 = vpop.permute.xlu0 %3766 }
 0xa82   : > { %v5490_v51 = vpop.f32.mrf.mxu0 }
 0xa84   : > { %v5491_v39 = vpop.f32.mrf.mxu0 }
 0xa85   : > { %v9996_v22 = vadd.f32 %v5491_v39, %v5490_v51  ;;  %4879 = vmatmul.mubr.bf16.gmra.mxu0 %v6306_v35  ;;  %v4439_v35 = vadd.f32 %v9902_v7, %v3767_v52 }
 0xa86   : > { %v5493_v15 = vpop.f32.mrf.mxu0 }
 0xa88   : > { %v5494_v1 = vpop.f32.mrf.mxu0 }
 0xa89   : > { %v9998_v30 = vadd.f32 %v5494_v1, %v5493_v15 }
 0xa8a   : > { %v5496_v4 = vpop.f32.mrf.mxu0 }
 0xa8c   : > { %v5497_v10 = vpop.f32.mrf.mxu0 }
 0xa8d   : > { %v10000_v46 = vadd.f32 %v5497_v10, %v5496_v4 }
 0xa8e   : > { %v5499_v3 = vpop.f32.mrf.mxu0 }
 0xa90   : > { %v5500_v28 = vpop.f32.mrf.mxu0 }
 0xa91   : > { %v10002_v62 = vadd.f32 %v5500_v28, %v5499_v3 }
 0xa92   : > { %v5502_v60 = vpop.f32.mrf.mxu0 }
 0xa94   : > { %v5503_v11 = vpop.f32.mrf.mxu0 }
 0xa95   : > { %v10004_v0 = vadd.f32 %v5503_v11, %v5502_v60 }
 0xa96   : > { %v5505_v14 = vpop.f32.mrf.mxu0 }
 0xa98   : > { %v5506_v9 = vpop.f32.mrf.mxu0 }
 0xa99   : > { %v10006_v5 = vadd.f32 %v5506_v9, %v5505_v14 }
 0xa9a   : > { %v5508_v37 = vpop.f32.mrf.mxu0 }
 0xa9c   : > { %v5509_v25 = vpop.f32.mrf.mxu0 }
 0xa9d   : > { %v10008_v26 = vadd.f32 %v5509_v25, %v5508_v37 }
 0xa9e   : > { %v5511_v49 = vpop.f32.mrf.mxu0 }
 0xaa0   : > { %v5512_v21 = vpop.f32.mrf.mxu0 }
 0xaa1   : > { %v10010_v34 = vadd.f32 %v5512_v21, %v5511_v49 }
 0xaa2   : > { %v5514_v54 = vpop.f32.mrf.mxu0 }
 0xaa4   : > { %v5515_v13 = vpop.f32.mrf.mxu0 }
 0xaa5   : > { %v10012_v61 = vadd.f32 %v5515_v13, %v5514_v54  ;;  %v3772_v13 = vpop.permute.xlu1 %3771 }
 0xaa6   : > { %v5517_v50 = vpop.f32.mrf.mxu0 }
 0xaa8   : > { %v5518_v57 = vpop.f32.mrf.mxu0 }
 0xaa9   : > { %v10014_v63 = vadd.f32 %v5518_v57, %v5517_v50 }
 0xaaa   : > { %v5520_v23 = vpop.f32.mrf.mxu0 }
 0xaac   : > { %v5521_v24 = vpop.f32.mrf.mxu0 }
 0xaad   : > { %v10016_v48 = vadd.f32 %v5521_v24, %v5520_v23 }
 0xaae   : > { %v5523_v8 = vpop.f32.mrf.mxu0 }
 0xab0   : > { %v5524_v36 = vpop.f32.mrf.mxu0 }
 0xab1   : > { %v10018_v41 = vadd.f32 %v5524_v36, %v5523_v8 }
 0xab2   : > { %v5526_v55 = vpop.f32.mrf.mxu0 }
 0xab4   : > { %v5527_v56 = vpop.f32.mrf.mxu0 }
 0xab5   : > { %v10020_v18 = vadd.f32 %v5527_v56, %v5526_v55  ;;  %v4442_v55 = vadd.f32 %v9904_v12, %v3772_v13 }
 0xab6   : > { %v5529_v59 = vpop.f32.mrf.mxu0 }
 0xab8   : > { %v5530_v43 = vpop.f32.mrf.mxu0 }
 0xab9   : > { %v10022_v32 = vadd.f32 %v5530_v43, %v5529_v59  ;;  %v4887_v59 = vld [vmem:[%s10210_s9] sm:$0xff] }
 0xaba   : > { %v5532_v19 = vpop.f32.mrf.mxu0 }
 0xabc   : > { %v5533_v58 = vpop.f32.mrf.mxu0 }
 0xabd   : > { %v10024_v40 = vadd.f32 %v5533_v58, %v5532_v19  ;;  %v5560_v31 = vpop.f32.mrf.mxu1  ;;  %v3777_v58 = vpop.permute.xlu1 %3776 }
 0xabe   : > { %v5535_v2 = vpop.f32.mrf.mxu0 }
 0xabf   : > { %v5561_v16 = vpop.f32.mrf.mxu1 }
 0xac0   : > { %v5562_v51 = vadd.f32 %v5561_v16, %v5560_v31  ;;  %v5536_v39 = vpop.f32.mrf.mxu0  ;;  %v4888_v16 = vld [vmem:[%s10210_s9 + $0x8] sm:$0xff] }
 0xac1   : > { %v10027_v15 = vadd.f32 %v5536_v39, %v5535_v2  ;;  %v5563_v1 = vpop.f32.mrf.mxu1  ;;  %v4447_v39 = vadd.f32 %v9918_v53, %v3777_v58 }
 0xac2   : > { %v4600_v4 = vadd.f32 %v5562_v51, %v4439_v35  ;;  %v5538_v10 = vpop.f32.mrf.mxu0 }
 0xac3   : > { %v5564_v3 = vpop.f32.mrf.mxu1 }
 0xac4   : > { %v5539_v28 = vpop.f32.mrf.mxu0  ;;  %v5565_v23 = vadd.f32 %v5564_v3, %v5563_v1  ;;  %v3782_v3 = vpop.permute.xlu0 %3781 }
 0xac5   : > { %v10029_v60 = vadd.f32 %v5539_v28, %v5538_v10  ;;  %v5566_v11 = vpop.f32.mrf.mxu1 }
 0xac6   : > { %v5541_v14 = vpop.f32.mrf.mxu0  ;;  %v4603_v31 = vadd.f32 %v5565_v23, %v4442_v55 }
 0xac7   : > { %v5567_v9 = vpop.f32.mrf.mxu1 }
 0xac8   : > { %v5542_v37 = vpop.f32.mrf.mxu0  ;;  %v5568_v2 = vadd.f32 %v5567_v9, %v5566_v11  ;;  %v4889_v11 = vld [vmem:[%s10210_s9 + $0x10] sm:$0xff] }
 0xac9   : > { %v10031_v25 = vadd.f32 %v5542_v37, %v5541_v14  ;;  %v5569_v49 = vpop.f32.mrf.mxu1 }
 0xaca   : > { %v4608_v28 = vadd.f32 %v5568_v2, %v4447_v39 }
 0xacb   : > { %v5570_v21 = vpop.f32.mrf.mxu1 }
 0xacc   : > { %v5571_v14 = vadd.f32 %v5570_v21, %v5569_v49 }
 0xacd   : > { %v5572_v7 = vpop.f32.mrf.mxu1  ;;  %v5672_v54 = vpop.f32.mrf.mxu0 }
 0xacf   : > { %v5573_v50 = vpop.f32.mrf.mxu1  ;;  %v5673_v57 = vpop.f32.mrf.mxu0 }
 0xad0   : > { %v5674_v24 = vadd.f32 %v5673_v57, %v5672_v54  ;;  %v4450_v57 = vadd.f32 %v9920_v38, %v3782_v3  ;;  %v5574_v21 = vadd.f32 %v5573_v50, %v5572_v7 }
 0xad1   : > { %v5575_v8 = vpop.f32.mrf.mxu1  ;;  %v5675_v36 = vpop.f32.mrf.mxu0 }
 0xad2   : > { %v4761_v56 = vadd.f32 %v5674_v24, %v4600_v4  ;;  %v4611_v49 = vadd.f32 %v5571_v14, %v4450_v57  ;;  %v4891_v14 = vld [vmem:[%s10210_s9 + $0x20] sm:$0xff] }
 0xad3   : > { %v5576_v43 = vpop.f32.mrf.mxu1  ;;  %v5676_v19 = vpop.f32.mrf.mxu0 }
 0xad4   : > { %v5677_v52 = vadd.f32 %v5676_v19, %v5675_v36  ;;  %v4919_v12 = vmul.f32 %v4887_v59, %v4761_v56  ;;  %v3787_v59 = vpop.permute.xlu1 %3786 }
 0xad5   : > { %v5578_v35 = vpop.f32.mrf.mxu1  ;;  %v5678_v51 = vpop.f32.mrf.mxu0  ;;  %v4455_v38 = vadd.f32 %v9934_v29, %v3787_v59  ;;  %v4892_v59 = vld [vmem:[%s10210_s9 + $0x28] sm:$0xff] }
 0xad6   : > { %v4764_v1 = vadd.f32 %v5677_v52, %v4603_v31  ;;  %v4952_v53 = vsel %vm4951_vm13, %v4919_v12, 0.0  ;;  %v4890_v31 = vld [vmem:[%s10210_s9 + $0x18] sm:$0xff] }
 0xad7   : > { %v5579_v4 = vpop.f32.mrf.mxu1  ;;  %v5679_v10 = vpop.f32.mrf.mxu0  ;;  %v4616_v3 = vadd.f32 %v5574_v21, %v4455_v38 }
 0xad8   : > { %v4920_v37 = vmul.f32 %v4888_v16, %v4764_v1  ;;  %v5680_v54 = vadd.f32 %v5679_v10, %v5678_v51  ;;  %v3792_v10 = vpop.permute.xlu0 %3791 }
 0xad9   : > { %v5581_v9 = vpop.f32.mrf.mxu1  ;;  %v5681_v13 = vpop.f32.mrf.mxu0 }
 0xada   : > { %v4953_v23 = vsel %vm4951_vm13, %v4920_v37, 0.0  ;;  %v4769_v24 = vadd.f32 %v5680_v54, %v4608_v28  ;;  %v5577_v28 = vadd.f32 %v5576_v43, %v5575_v8 }
 0xadb   : > { %v4954_v36 = vadd.f32 %v4953_v23, %v4952_v53  ;;  %v5582_v55 = vpop.f32.mrf.mxu1  ;;  %v5682_v56 = vpop.f32.mrf.mxu0 }
 0xadc   : > { %v4921_v19 = vmul.f32 %v4889_v11, %v4769_v24  ;;  %v5683_v58 = vadd.f32 %v5682_v56, %v5681_v13  ;;  %v4458_v11 = vadd.f32 %v9936_v45, %v3792_v10  ;;  %v3797_v24 = vpop.permute.xlu1 %3796  ;;  %v5580_v56 = vadd.f32 %v5579_v4, %v5578_v35 }
 0xadd   : > { %v5584_v2 = vpop.f32.mrf.mxu1  ;;  %v5684_v52 = vpop.f32.mrf.mxu0 }
 0xade   : > { %v4955_v16 = vsel %vm4951_vm13, %v4921_v19, 0.0  ;;  %v4772_v51 = vadd.f32 %v5683_v58, %v4611_v49  ;;  %v4463_v19 = vadd.f32 %v9950_v27, %v3797_v24 }
 0xadf   : > { %v4956_v39 = vadd.f32 %v4955_v16, %v4954_v36  ;;  %v5585_v12 = vpop.f32.mrf.mxu1  ;;  %v5685_v1 = vpop.f32.mrf.mxu0  ;;  %v4619_v36 = vadd.f32 %v5577_v28, %v4458_v11 }
 0xae0   : > { %v4922_v7 = vmul.f32 %v4890_v31, %v4772_v51  ;;  %v5686_v50 = vadd.f32 %v5685_v1, %v5684_v52  ;;  %v3802_v16 = vpop.permute.xlu0 %3801  ;;  %v4624_v51 = vadd.f32 %v5580_v56, %v4463_v19  ;;  %v4893_v1 = vld [vmem:[%s10210_s9 + $0x30] sm:$0xff]  ;;  %v3807_v11 = vpop.permute.xlu1 %3806 }
 0xae1   : > { %v5587_v37 = vpop.f32.mrf.mxu1  ;;  %v5687_v54 = vpop.f32.mrf.mxu0  ;;  %v4466_v28 = vadd.f32 %v9952_v17, %v3802_v16 }
 0xae2   : > { %v4957_v29 = vsel %vm4951_vm13, %v4922_v7, 0.0  ;;  %v4777_v13 = vadd.f32 %v5686_v50, %v4616_v3 }
 0xae3   : > { %v4958_v57 = vadd.f32 %v4957_v29, %v4956_v39  ;;  %v5588_v53 = vpop.f32.mrf.mxu1  ;;  %v5688_v23 = vpop.f32.mrf.mxu0  ;;  %v5583_v39 = vadd.f32 %v5582_v55, %v5581_v9 }
 0xae4   : > { %v4923_v8 = vmul.f32 %v4891_v14, %v4777_v13  ;;  %v5689_v43 = vadd.f32 %v5688_v23, %v5687_v54  ;;  %v5586_v13 = vadd.f32 %v5585_v12, %v5584_v2 }
 0xae5   : > { %v5590_v49 = vpop.f32.mrf.mxu1  ;;  %v5690_v21 = vpop.f32.mrf.mxu0  ;;  %v4627_v29 = vadd.f32 %v5583_v39, %v4466_v28 }
 0xae6   : > { %v4959_v45 = vsel %vm4951_vm13, %v4923_v8, 0.0  ;;  %v4780_v58 = vadd.f32 %v5689_v43, %v4619_v36  ;;  %v4471_v36 = vadd.f32 %v9966_v42, %v3807_v11 }
 0xae7   : > { %v4960_v31 = vadd.f32 %v4959_v45, %v4958_v57  ;;  %v5591_v52 = vpop.f32.mrf.mxu1  ;;  %v5691_v38 = vpop.f32.mrf.mxu0  ;;  %v4894_v57 = vld [vmem:[%s10210_s9 + $0x38] sm:$0xff]  ;;  %v5589_v45 = vadd.f32 %v5588_v53, %v5587_v37 }
 0xae8   : > { %v4924_v35 = vmul.f32 %v4892_v59, %v4780_v58  ;;  %v5692_v4 = vadd.f32 %v5691_v38, %v5690_v21  ;;  %v3812_v21 = vpop.permute.xlu0 %3811  ;;  %v4632_v19 = vadd.f32 %v5586_v13, %v4471_v36  ;;  %v4895_v58 = vld [vmem:[%s10210_s9 + $0x40] sm:$0xff]  ;;  %v5592_v28 = vadd.f32 %v5591_v52, %v5590_v49  ;;  %v4897_v36 = vld [vmem:[%s10210_s9 + $0x50] sm:$0xff] }
 0xae9   : > { %v5593_v10 = vpop.f32.mrf.mxu1  ;;  %v5693_v3 = vpop.f32.mrf.mxu0  ;;  %v4474_v16 = vadd.f32 %v9968_v47, %v3812_v21 }
 0xaea   : > { %v4961_v27 = vsel %vm4951_vm13, %v4924_v35, 0.0  ;;  %v4785_v7 = vadd.f32 %v5692_v4, %v4624_v51 }
 0xaeb   : > { %v4962_v50 = vadd.f32 %v4961_v27, %v4960_v31  ;;  %v5594_v14 = vpop.f32.mrf.mxu1  ;;  %v5694_v54 = vpop.f32.mrf.mxu0  ;;  %v4896_v27 = vld [vmem:[%s10210_s9 + $0x48] sm:$0xff] }
 0xaec   : > { %v4925_v9 = vmul.f32 %v4893_v1, %v4785_v7  ;;  %v5695_v55 = vadd.f32 %v5694_v54, %v5693_v3  ;;  %v3817_v1 = vpop.permute.xlu1 %3816  ;;  %v4635_v3 = vadd.f32 %v5589_v45, %v4474_v16 }
 0xaed   : > { %v5596_v23 = vpop.f32.mrf.mxu1  ;;  %v5696_v24 = vpop.f32.mrf.mxu0  ;;  %v4479_v54 = vadd.f32 %v9979_v33, %v3817_v1 }
 0xaee   : > { %v4963_v17 = vsel %vm4951_vm13, %v4925_v9, 0.0  ;;  %v4788_v56 = vadd.f32 %v5695_v55, %v4627_v29  ;;  %v3822_v55 = vpop.permute.xlu0 %3821 }
 0xaef   : > { %v4964_v8 = vadd.f32 %v4963_v17, %v4962_v50  ;;  %v5597_v43 = vpop.f32.mrf.mxu1  ;;  %v5697_v59 = vpop.f32.mrf.mxu0 }
 0xaf0   : > { %v4926_v2 = vmul.f32 %v4894_v57, %v4788_v56  ;;  %v5698_v12 = vadd.f32 %v5697_v59, %v5696_v24  ;;  %v4640_v57 = vadd.f32 %v5592_v28, %v4479_v54  ;;  %v5595_v24 = vadd.f32 %v5594_v14, %v5593_v10 }
 0xaf1   : > { %v5599_v31 = vpop.f32.mrf.mxu1  ;;  %v5699_v38 = vpop.f32.mrf.mxu0 }
 0xaf2   : > { %v4965_v42 = vsel %vm4951_vm13, %v4926_v2, 0.0  ;;  %v4793_v51 = vadd.f32 %v5698_v12, %v4632_v19  ;;  %v3827_v2 = vpop.permute.xlu1 %3826  ;;  %v3832_v28 = vpop.permute.xlu0 %3831 }
 0xaf3   : > { %v4966_v39 = vadd.f32 %v4965_v42, %v4964_v8  ;;  %v5600_v35 = vpop.f32.mrf.mxu1  ;;  %v5700_v4 = vpop.f32.mrf.mxu0  ;;  %v4482_v8 = vadd.f32 %v9981_v6, %v3822_v55 }
 0xaf4   : > { %v4927_v37 = vmul.f32 %v4895_v58, %v4793_v51  ;;  %v5701_v53 = vadd.f32 %v5700_v4, %v5699_v38  ;;  %v5598_v58 = vadd.f32 %v5597_v43, %v5596_v23  ;;  %v4898_v38 = vld [vmem:[%s10210_s9 + $0x58] sm:$0xff]  ;;  %v4487_v51 = vadd.f32 %v9989_v44, %v3827_v2 }
 0xaf5   : > { %v5602_v7 = vpop.f32.mrf.mxu1  ;;  %v5702_v50 = vpop.f32.mrf.mxu0  ;;  %v4643_v12 = vadd.f32 %v5595_v24, %v4482_v8 }
 0xaf6   : > { %v4967_v47 = vsel %vm4951_vm13, %v4927_v37, 0.0  ;;  %v4796_v11 = vadd.f32 %v5701_v53, %v4635_v3  ;;  %v4648_v37 = vadd.f32 %v5598_v58, %v4487_v51  ;;  %v5601_v53 = vadd.f32 %v5600_v35, %v5599_v31  ;;  %v3842_v2 = vpop.permute.xlu0 %3841 }
 0xaf7   : > { %v4968_v29 = vadd.f32 %v4967_v47, %v4966_v39  ;;  %v5603_v13 = vpop.f32.mrf.mxu1  ;;  %v5703_v9 = vpop.f32.mrf.mxu0  ;;  %v4490_v47 = vadd.f32 %v9991_v20, %v3832_v28 }
 0xaf8   : > { %v4928_v49 = vmul.f32 %v4896_v27, %v4796_v11  ;;  %v5704_v52 = vadd.f32 %v5703_v9, %v5702_v50  ;;  %v4899_v27 = vld [vmem:[%s10210_s9 + $0x60] sm:$0xff] }
 0xaf9   : > { %v5605_v17 = vpop.f32.mrf.mxu1  ;;  %v5705_v56 = vpop.f32.mrf.mxu0  ;;  %v4651_v24 = vadd.f32 %v5601_v53, %v4490_v47  ;;  %v4902_v53 = vld [vmem:[%s10210_s9 + $0x78] sm:$0xff] }
 0xafa   : > { %v4969_v33 = vsel %vm4951_vm13, %v4928_v49, 0.0  ;;  %v4801_v59 = vadd.f32 %v5704_v52, %v4640_v57  ;;  %v3837_v57 = vpop.permute.xlu1 %3836  ;;  %v5604_v49 = vadd.f32 %v5603_v13, %v5602_v7  ;;  %v4900_v52 = vld [vmem:[%s10210_s9 + $0x68] sm:$0xff] }
 0xafb   : > { %v4970_v21 = vadd.f32 %v4969_v33, %v4968_v29  ;;  %v5606_v19 = vpop.f32.mrf.mxu1  ;;  %v5706_v45 = vpop.f32.mrf.mxu0  ;;  %v4495_v8 = vadd.f32 %v9996_v22, %v3837_v57 }
 0xafc   : > { %v4929_v10 = vmul.f32 %v4897_v36, %v4801_v59  ;;  %v5707_v14 = vadd.f32 %v5706_v45, %v5705_v56  ;;  %v5607_v58 = vadd.f32 %v5606_v19, %v5605_v17 }
 0xafd   : > { %v5608_v16 = vpop.f32.mrf.mxu1  ;;  %v5708_v42 = vpop.f32.mrf.mxu0 }
 0xafe   : > { %v4971_v6 = vsel %vm4951_vm13, %v4929_v10, 0.0  ;;  %v4804_v39 = vadd.f32 %v5707_v14, %v4643_v12  ;;  %v4656_v12 = vadd.f32 %v5604_v49, %v4495_v8  ;;  %v4901_v10 = vld [vmem:[%s10210_s9 + $0x70] sm:$0xff] }
 0xaff   : > { %v4972_v4 = vadd.f32 %v4971_v6, %v4970_v21  ;;  %v5609_v1 = vpop.f32.mrf.mxu1  ;;  %v5709_v3 = vpop.f32.mrf.mxu0 }
 0xb00   : > { %v4930_v23 = vmul.f32 %v4898_v38, %v4804_v39  ;;  %v5710_v43 = vadd.f32 %v5709_v3, %v5708_v42  ;;  %v4498_v42 = vadd.f32 %v9998_v30, %v3842_v2  ;;  %v3847_v3 = vpop.permute.xlu1 %3846  ;;  %v4904_v2 = vld [vmem:[%s10210_s9 + $0x88] sm:$0xff] }
 0xb01   : > { %v5611_v50 = vpop.f32.mrf.mxu1  ;;  %v5711_v54 = vpop.f32.mrf.mxu0 }
 0xb02   : > { %v4973_v44 = vsel %vm4951_vm13, %v4930_v23, 0.0  ;;  %v4809_v11 = vadd.f32 %v5710_v43, %v4648_v37  ;;  %v4659_v28 = vadd.f32 %v5607_v58, %v4498_v42  ;;  %v5610_v37 = vadd.f32 %v5609_v1, %v5608_v16 }
 0xb03   : > { %v4974_v29 = vadd.f32 %v4973_v44, %v4972_v4  ;;  %v5612_v9 = vpop.f32.mrf.mxu1  ;;  %v5712_v55 = vpop.f32.mrf.mxu0 }
 0xb04   : > { %v4931_v31 = vmul.f32 %v4899_v27, %v4809_v11  ;;  %v5713_v35 = vadd.f32 %v5712_v55, %v5711_v54  ;;  %v4503_v27 = vadd.f32 %v10000_v46, %v3847_v3  ;;  %v5613_v57 = vadd.f32 %v5612_v9, %v5611_v50 }
 0xb05   : > { %v5614_v36 = vpop.f32.mrf.mxu1  ;;  %v5714_v56 = vpop.f32.mrf.mxu0 }
 0xb06   : > { %v4975_v20 = vsel %vm4951_vm13, %v4931_v31, 0.0  ;;  %v4812_v33 = vadd.f32 %v5713_v35, %v4651_v24  ;;  %v4664_v55 = vadd.f32 %v5610_v37, %v4503_v27  ;;  %v4903_v24 = vld [vmem:[%s10210_s9 + $0x80] sm:$0xff] }
 0xb07   : > { %v4976_v59 = vadd.f32 %v4975_v20, %v4974_v29  ;;  %v5615_v21 = vpop.f32.mrf.mxu1  ;;  %v5715_v45 = vpop.f32.mrf.mxu0 }
 0xb08   : > { %v4932_v7 = vmul.f32 %v4900_v52, %v4812_v33  ;;  %v5716_v13 = vadd.f32 %v5715_v45, %v5714_v56  ;;  %v3852_v29 = vpop.permute.xlu0 %3851  ;;  %v3857_v33 = vpop.permute.xlu1 %3856  ;;  %v5616_v45 = vadd.f32 %v5615_v21, %v5614_v36 }
 0xb09   : > { %v5617_v14 = vpop.f32.mrf.mxu1  ;;  %v5717_v38 = vpop.f32.mrf.mxu0  ;;  %v4506_v35 = vadd.f32 %v10002_v62, %v3852_v29 }
 0xb0a   : > { %v4977_v22 = vsel %vm4951_vm13, %v4932_v7, 0.0  ;;  %v4817_v51 = vadd.f32 %v5716_v13, %v4656_v12  ;;  %v4511_v7 = vadd.f32 %v10004_v0, %v3857_v33 }
 0xb0b   : > { %v4978_v6 = vadd.f32 %v4977_v22, %v4976_v59  ;;  %v5618_v39 = vpop.f32.mrf.mxu1  ;;  %v5718_v4 = vpop.f32.mrf.mxu0  ;;  %v4667_v59 = vadd.f32 %v5613_v57, %v4506_v35 }
 0xb0c   : > { %v4933_v17 = vmul.f32 %v4901_v10, %v4817_v51  ;;  %v5719_v19 = vadd.f32 %v5718_v4, %v5717_v38  ;;  %v3862_v22 = vpop.permute.xlu0 %3861  ;;  %v4672_v51 = vadd.f32 %v5616_v45, %v4511_v7  ;;  %v4905_v4 = vld [vmem:[%s10210_s9 + $0x90] sm:$0xff]  ;;  %v3867_v27 = vpop.permute.xlu1 %3866 }
 0xb0d   : > { %v5620_v23 = vpop.f32.mrf.mxu1  ;;  %v5720_v43 = vpop.f32.mrf.mxu0  ;;  %v4514_v37 = vadd.f32 %v10006_v5, %v3862_v22 }
 0xb0e   : > { %v4979_v30 = vsel %vm4951_vm13, %v4933_v17, 0.0  ;;  %v4820_v54 = vadd.f32 %v5719_v19, %v4659_v28 }
 0xb0f   : > { %v4980_v47 = vadd.f32 %v4979_v30, %v4978_v6  ;;  %v5621_v44 = vpop.f32.mrf.mxu1  ;;  %v5721_v11 = vpop.f32.mrf.mxu0  ;;  %v5619_v6 = vadd.f32 %v5618_v39, %v5617_v14 }
 0xb10   : > { %v4934_v16 = vmul.f32 %v4902_v53, %v4820_v54  ;;  %v5722_v1 = vadd.f32 %v5721_v11, %v5720_v43  ;;  %v5622_v54 = vadd.f32 %v5621_v44, %v5620_v23 }
 0xb11   : > { %v5623_v49 = vpop.f32.mrf.mxu1  ;;  %v5723_v31 = vpop.f32.mrf.mxu0  ;;  %v4675_v30 = vadd.f32 %v5619_v6, %v4514_v37  ;;  %v4909_v37 = vld [vmem:[%s10210_s9 + $0xb0] sm:$0xff] }
 0xb12   : > { %v4981_v46 = vsel %vm4951_vm13, %v4934_v16, 0.0  ;;  %v4825_v52 = vadd.f32 %v5722_v1, %v4664_v55  ;;  %v4519_v55 = vadd.f32 %v10008_v26, %v3867_v27 }
 0xb13   : > { %v4982_v56 = vadd.f32 %v4981_v46, %v4980_v47  ;;  %v5624_v8 = vpop.f32.mrf.mxu1  ;;  %v5724_v20 = vpop.f32.mrf.mxu0  ;;  %v4906_v47 = vld [vmem:[%s10210_s9 + $0x98] sm:$0xff] }
 0xb14   : > { %v4935_v50 = vmul.f32 %v4903_v24, %v4825_v52  ;;  %v5725_v9 = vadd.f32 %v5724_v20, %v5723_v31  ;;  %v3872_v31 = vpop.permute.xlu0 %3871  ;;  %v4680_v35 = vadd.f32 %v5622_v54, %v4519_v55  ;;  %v5625_v46 = vadd.f32 %v5624_v8, %v5623_v49  ;;  %v4907_v52 = vld [vmem:[%s10210_s9 + $0xa0] sm:$0xff] }
 0xb15   : > { %v5626_v12 = vpop.f32.mrf.mxu1  ;;  %v5726_v58 = vpop.f32.mrf.mxu0  ;;  %v4522_v33 = vadd.f32 %v10010_v34, %v3872_v31 }
 0xb16   : > { %v4983_v62 = vsel %vm4951_vm13, %v4935_v50, 0.0  ;;  %v4828_v13 = vadd.f32 %v5725_v9, %v4667_v59 }
 0xb17   : > { %v4984_v10 = vadd.f32 %v4983_v62, %v4982_v56  ;;  %v5627_v38 = vpop.f32.mrf.mxu1  ;;  %v5727_v42 = vpop.f32.mrf.mxu0  ;;  %v4908_v62 = vld [vmem:[%s10210_s9 + $0xa8] sm:$0xff] }
 0xb18   : > { %v4936_v36 = vmul.f32 %v4904_v2, %v4828_v13  ;;  %v5728_v21 = vadd.f32 %v5727_v42, %v5726_v58  ;;  %v3877_v2 = vpop.permute.xlu1 %3876  ;;  %v4683_v58 = vadd.f32 %v5625_v46, %v4522_v33  ;;  %v5628_v7 = vadd.f32 %v5627_v38, %v5626_v12 }
 0xb19   : > { %v5629_v3 = vpop.f32.mrf.mxu1  ;;  %v5729_v28 = vpop.f32.mrf.mxu0  ;;  %v4527_v42 = vadd.f32 %v10012_v61, %v3877_v2 }
 0xb1a   : > { %v4985_v0 = vsel %vm4951_vm13, %v4936_v36, 0.0  ;;  %v4833_v17 = vadd.f32 %v5728_v21, %v4672_v51  ;;  %v3882_v21 = vpop.permute.xlu0 %3881 }
 0xb1b   : > { %v4986_v19 = vadd.f32 %v4985_v0, %v4984_v10  ;;  %v5630_v53 = vpop.f32.mrf.mxu1  ;;  %v5730_v43 = vpop.f32.mrf.mxu0 }
 0xb1c   : > { %v4937_v14 = vmul.f32 %v4905_v4, %v4833_v17  ;;  %v5731_v39 = vadd.f32 %v5730_v43, %v5729_v28  ;;  %v4688_v4 = vadd.f32 %v5628_v7, %v4527_v42  ;;  %v5631_v28 = vadd.f32 %v5630_v53, %v5629_v3 }
 0xb1d   : > { %v5632_v11 = vpop.f32.mrf.mxu1  ;;  %v5732_v29 = vpop.f32.mrf.mxu0 }
 0xb1e   : > { %v4987_v5 = vsel %vm4951_vm13, %v4937_v14, 0.0  ;;  %v4836_v57 = vadd.f32 %v5731_v39, %v4675_v30  ;;  %v3887_v14 = vpop.permute.xlu1 %3886  ;;  %v3892_v46 = vpop.permute.xlu0 %3891 }
 0xb1f   : > { %v4988_v16 = vadd.f32 %v4987_v5, %v4986_v19  ;;  %v5633_v1 = vpop.f32.mrf.mxu1  ;;  %v5733_v24 = vpop.f32.mrf.mxu0  ;;  %v4530_v19 = vadd.f32 %v10014_v63, %v3882_v21 }
 0xb20   : > { %v4938_v23 = vmul.f32 %v4906_v47, %v4836_v57  ;;  %v5734_v44 = vadd.f32 %v5733_v24, %v5732_v29  ;;  %v5634_v47 = vadd.f32 %v5633_v1, %v5632_v11  ;;  %v4910_v29 = vld [vmem:[%s10210_s9 + $0xb8] sm:$0xff]  ;;  %v4535_v57 = vadd.f32 %v10016_v48, %v3887_v14 }
 0xb21   : > { %v5635_v56 = vpop.f32.mrf.mxu1  ;;  %v5735_v20 = vpop.f32.mrf.mxu0  ;;  %v4691_v39 = vadd.f32 %v5631_v28, %v4530_v19  ;;  %v4913_v28 = vld [vmem:[%s10210_s9 + $0xd0] sm:$0xff]  ;;  %v4914_v14 = vld [vmem:[%s10210_s9 + $0xd8] sm:$0xff] }
 0xb22   : > { %v4989_v26 = vsel %vm4951_vm13, %v4938_v23, 0.0  ;;  %v4841_v59 = vadd.f32 %v5734_v44, %v4680_v35  ;;  %v4696_v23 = vadd.f32 %v5634_v47, %v4535_v57  ;;  %v3897_v2 = vpop.permute.xlu1 %3896 }
 0xb23   : > { %v4990_v45 = vadd.f32 %v4989_v26, %v4988_v16  ;;  %v5636_v50 = vpop.f32.mrf.mxu1  ;;  %v5736_v9 = vpop.f32.mrf.mxu0  ;;  %v4538_v26 = vadd.f32 %v10018_v41, %v3892_v46 }
 0xb24   : > { %v4939_v49 = vmul.f32 %v4907_v52, %v4841_v59  ;;  %v5737_v8 = vadd.f32 %v5736_v9, %v5735_v20  ;;  %v5637_v44 = vadd.f32 %v5636_v50, %v5635_v56  ;;  %v4911_v52 = vld [vmem:[%s10210_s9 + $0xc0] sm:$0xff] }
 0xb25   : > { %v5638_v13 = vpop.f32.mrf.mxu1  ;;  %v5738_v10 = vpop.f32.mrf.mxu0 }
 0xb26   : > { %v4991_v34 = vsel %vm4951_vm13, %v4939_v49, 0.0  ;;  %v4844_v22 = vadd.f32 %v5737_v8, %v4683_v58  ;;  %v4699_v58 = vadd.f32 %v5637_v44, %v4538_v26  ;;  %v4912_v8 = vld [vmem:[%s10210_s9 + $0xc8] sm:$0xff] }
 0xb27   : > { %v4992_v51 = vadd.f32 %v4991_v34, %v4990_v45  ;;  %v5639_v6 = vpop.f32.mrf.mxu1  ;;  %v5739_v36 = vpop.f32.mrf.mxu0 }
 0xb28   : > { %v4940_v12 = vmul.f32 %v4908_v62, %v4844_v22  ;;  %v5740_v38 = vadd.f32 %v5739_v36, %v5738_v10  ;;  %v5640_v7 = vadd.f32 %v5639_v6, %v5638_v13  ;;  %v4543_v10 = vadd.f32 %v10020_v18, %v3897_v2 }
 0xb29   : > { %v5641_v0 = vpop.f32.mrf.mxu1  ;;  %v5741_v17 = vpop.f32.mrf.mxu0 }
 0xb2a   : > { %v4993_v61 = vsel %vm4951_vm13, %v4940_v12, 0.0  ;;  %v4849_v43 = vadd.f32 %v5740_v38, %v4688_v4  ;;  %v4704_v36 = vadd.f32 %v5640_v7, %v4543_v10  ;;  %v4917_v10 = vld [vmem:[%s10210_s9 + $0xf0] sm:$0xff] }
 0xb2b   : > { %v4994_v27 = vadd.f32 %v4993_v61, %v4992_v51  ;;  %v5642_v30 = vpop.f32.mrf.mxu1  ;;  %v5742_v54 = vpop.f32.mrf.mxu0 }
 0xb2c   : > { %v4941_v3 = vmul.f32 %v4909_v37, %v4849_v43  ;;  %v5743_v53 = vadd.f32 %v5742_v54, %v5741_v17  ;;  %v3902_v51 = vpop.permute.xlu0 %3901  ;;  %v5643_v21 = vadd.f32 %v5642_v30, %v5641_v0  ;;  %v3907_v61 = vpop.permute.xlu1 %3906 }
 0xb2d   : > { %v5644_v55 = vpop.f32.mrf.mxu1  ;;  %v5744_v5 = vpop.f32.mrf.mxu0  ;;  %v4546_v38 = vadd.f32 %v10022_v32, %v3902_v51  ;;  %v4551_v47 = vadd.f32 %v10024_v40, %v3907_v61 }
 0xb2e   : > { %v4995_v63 = vsel %vm4951_vm13, %v4941_v3, 0.0  ;;  %v4852_v16 = vadd.f32 %v5743_v53, %v4691_v39 }
 0xb2f   : > { %v4996_v24 = vadd.f32 %v4995_v63, %v4994_v27  ;;  %v5645_v31 = vpop.f32.mrf.mxu1  ;;  %v5745_v35 = vpop.f32.mrf.mxu0  ;;  %v4707_v43 = vadd.f32 %v5643_v21, %v4546_v38 }
 0xb30   : > { %v4942_v11 = vmul.f32 %v4910_v29, %v4852_v16  ;;  %v5746_v1 = vadd.f32 %v5745_v35, %v5744_v5  ;;  %v5646_v27 = vadd.f32 %v5645_v31, %v5644_v55  ;;  %v3912_v5 = vpop.permute.xlu0 %3911  ;;  %v4915_v31 = vld [vmem:[%s10210_s9 + $0xe0] sm:$0xff] }
 0xb31   : > { %v5647_v20 = vpop.f32.mrf.mxu1  ;;  %v5747_v33 = vpop.f32.mrf.mxu0  ;;  %v4554_v46 = vadd.f32 %v10027_v15, %v3912_v5 }
 0xb32   : > { %v4997_v48 = vsel %vm4951_vm13, %v4942_v11, 0.0  ;;  %v4857_v59 = vadd.f32 %v5746_v1, %v4696_v23  ;;  %v4712_v57 = vadd.f32 %v5646_v27, %v4551_v47  ;;  %v3917_v1 = vpop.permute.xlu1 %3916 }
 0xb33   : > { %v4998_v45 = vadd.f32 %v4997_v48, %v4996_v24  ;;  %v5748_v9 = vpop.f32.mrf.mxu0  ;;  %v5648_v50 = vpop.f32.mrf.mxu1 }
 0xb34   : > { %v4943_v49 = vmul.f32 %v4911_v52, %v4857_v59  ;;  %v5749_v56 = vadd.f32 %v5748_v9, %v5747_v33  ;;  %v5649_v63 = vadd.f32 %v5648_v50, %v5647_v20  ;;  %v4916_v59 = vld [vmem:[%s10210_s9 + $0xe8] sm:$0xff]  ;;  %v4559_v9 = vadd.f32 %v10029_v60, %v3917_v1 }
 0xb35   : > { %v5750_v62 = vpop.f32.mrf.mxu0  ;;  %v5650_v6 = vpop.f32.mrf.mxu1 }
 0xb36   : > { %v4999_v41 = vsel %vm4951_vm13, %v4943_v49, 0.0  ;;  %v4860_v42 = vadd.f32 %v5749_v56, %v4699_v58  ;;  %v4715_v52 = vadd.f32 %v5649_v63, %v4554_v46 }
 0xb37   : > { %v5000_v34 = vadd.f32 %v4999_v41, %v4998_v45  ;;  %v5751_v22 = vpop.f32.mrf.mxu0  ;;  %v5651_v30 = vpop.f32.mrf.mxu1 }
 0xb38   : > { %v4944_v4 = vmul.f32 %v4912_v8, %v4860_v42  ;;  %v5752_v13 = vadd.f32 %v5751_v22, %v5750_v62  ;;  %v5652_v33 = vadd.f32 %v5651_v30, %v5650_v6  ;;  %v3922_v62 = vpop.permute.xlu0 %3921 }
 0xb39   : > { %v5753_v12 = vpop.f32.mrf.mxu0  ;;  %v5653_v24 = vpop.f32.mrf.mxu1  ;;  %v4562_v42 = vadd.f32 %v10031_v25, %v3922_v62 }
 0xb3a   : > { %v5001_v18 = vsel %vm4951_vm13, %v4944_v4, 0.0  ;;  %v4865_v37 = vadd.f32 %v5752_v13, %v4704_v36  ;;  %v4720_v49 = vadd.f32 %v5652_v33, %v4559_v9  ;;  %v4918_v13 = vld [vmem:[%s10210_s9 + $0xf8] sm:$0xff] }
 0xb3b   : > { %v5002_v17 = vadd.f32 %v5001_v18, %v5000_v34  ;;  %v5754_v19 = vpop.f32.mrf.mxu0  ;;  %v5654_v48 = vpop.f32.mrf.mxu1 }
 0xb3c   : > { %v4945_v54 = vmul.f32 %v4913_v28, %v4865_v37  ;;  %v5755_v0 = vadd.f32 %v5754_v19, %v5753_v12  ;;  %v5655_v56 = vadd.f32 %v5654_v48, %v5653_v24 }
 0xb3d   : > { %v5756_v39 = vpop.f32.mrf.mxu0 }
 0xb3e   : > { %v5003_v32 = vsel %vm4951_vm13, %v4945_v54, 0.0  ;;  %v4868_v3 = vadd.f32 %v5755_v0, %v4707_v43  ;;  %v4723_v36 = vadd.f32 %v5655_v56, %v4562_v42  ;;  %v5024_v0 = vld [vmem:[#allocation2] sm:$0x1] }
 0xb3f   : > { %v5004_v53 = vadd.f32 %v5003_v32, %v5002_v17  ;;  %v5757_v29 = vpop.f32.mrf.mxu0 }
 0xb40   : > { %v4946_v16 = vmul.f32 %v4914_v14, %v4868_v3  ;;  %v5758_v55 = vadd.f32 %v5757_v29, %v5756_v39 }
 0xb41   : > { %v5759_v35 = vpop.f32.mrf.mxu0 }
 0xb42   : > { %v5005_v40 = vsel %vm4951_vm13, %v4946_v16, 0.0  ;;  %v4873_v23 = vadd.f32 %v5758_v55, %v4712_v57 }
 0xb43   : > { %v5006_v44 = vadd.f32 %v5005_v40, %v5004_v53  ;;  %v5760_v11 = vpop.f32.mrf.mxu0  ;;  %v10658_v53 = vlaneseq }
 0xb44   : > { %v4947_v26 = vmul.f32 %v4915_v31, %v4873_v23  ;;  %v5761_v20 = vadd.f32 %v5760_v11, %v5759_v35 }
 0xb45   : > { %v5762_v45 = vpop.f32.mrf.mxu0  ;;  %v5038_v29 = vshrl.u32 %v10658_v53, 7 }
 0xb46   : > { %v5007_v15 = vsel %vm4951_vm13, %v4947_v26, 0.0  ;;  %v4876_v2 = vadd.f32 %v5761_v20, %v4715_v52 }
 0xb47   : > { %v5008_v58 = vadd.f32 %v5007_v15, %v5006_v44  ;;  %v5763_v7 = vpop.f32.mrf.mxu0  ;;  %v5039_v5 = vsub.s32 0, %v5038_v29 }
 0xb48   : > { %v4948_v50 = vmul.f32 %v4916_v59, %v4876_v2  ;;  %v5764_v8 = vadd.f32 %v5763_v7, %v5762_v45 }
 0xb49   : > { %v5765_v41 = vpop.f32.mrf.mxu0 }
 0xb4a   : > { %v5009_v34 = vsel %vm4951_vm13, %v4948_v50, 0.0  ;;  %v4881_v60 = vadd.f32 %v5764_v8, %v4720_v49 }
 0xb4b   : > { %v5010_v22 = vadd.f32 %v5009_v34, %v5008_v58  ;;  %v5766_v51 = vpop.f32.mrf.mxu0 }
 0xb4c   : > { %v4949_v21 = vmul.f32 %v4917_v10, %v4881_v60  ;;  %v5767_v4 = vadd.f32 %v5766_v51, %v5765_v41 }
 0xb4e   : > { %v5011_v6 = vsel %vm4951_vm13, %v4949_v21, 0.0  ;;  %v4884_v28 = vadd.f32 %v5767_v4, %v4723_v36 }
 0xb4f   : > { %v5012_v12 = vadd.f32 %v5011_v6, %v5010_v22 }
 0xb50   : > { %v4950_v38 = vmul.f32 %v4918_v13, %v4884_v28 }
 0xb52   : > { %v5013_v18 = vsel %vm4951_vm13, %v4950_v38, 0.0 }
 0xb53   : > { %v5014_v25 = vadd.f32 %v5013_v18, %v5012_v12 }
 0xb55   : > { %v5015_v37 = vrot.slane %v5014_v25, 4 }
 0xb57   : > { %v5016_v17 = vadd.f32 %v5015_v37, %v5014_v25 }
 0xb59   : > { %v5017_v19 = vrot.slane %v5016_v17, 2 }
 0xb5b   : > { %v5018_v61 = vadd.f32 %v5017_v19, %v5016_v17 }
 0xb5d   : > { %v5019_v43 = vrot.slane %v5018_v61, 1 }
 0xb5f   : > { %v5020_v27 = vadd.f32 %v5019_v43, %v5018_v61 }
 0xb61   : > { %v5021_v54 = vsel %vm4951_vm13, %v5020_v27, 0.0 }
 0xb62   : > { %5022 = vadd.xlane.f32.xlu1 %v5021_v54 }
 0xbeb   : > { %v5023_v30 = vpop.xlane.xlu1 %5022 }
 0xbec   : > { %v5025_v14 = vadd.f32 %v5024_v0, %v5023_v30 }
 0xbee   : > { %v5428_v39 = vmul.f32 -1.442695, %v5025_v14 }
 0xbf0   : > { %6309 = vpow2.f32 %v5428_v39 }
 0xbfd   : > { %v6310_v47 = vpop.eup %6309 }
 0xbfe   : > { %v5029_v32 = vadd.f32 1.0, %v6310_v47 }
 0xc00   : > { %6311 = vrcp.f32 %v5029_v32 }
 0xc0d   : > { %v6312_v3 = vpop.eup %6311 }
 0xc0e   : > { %5034 = vperm.xlu0 %5821, %v6312_v3  }
 0xc89   : > { %v5035_v57 = vpop.permute.xlu0 %5034 }
 0xc8a   : > { %v5040_v63 = vrot.slane %v5035_v57, %v5039_v5 }
 0xc8c   : > { %5041 = vst [vmem:[%s384_s13] sm:$0x1] %v5040_v63 }
 0xc8d PF: > { %s23_s19 = sadd.s32 1, %s6319_s19  }
 0xc8e   : > { %p20_p4 = scmp.ge.s32.totalorder %s23_s19, 4  }
 0xc90   :  { %22 = sbr.rel (!%p20_p4) target bundleno = 3 (0x3), region = 94 }

</bundles_post_ra>
